<compile_context>
chip_gen: v7x
topology: tpu7x:2x2x1
jax: 0.10.0
libtpu: 0.0.40
codegen_flags: <defaults>
</compile_context>

<pallas_src>
import functools

import jax
import jax.numpy as jnp
import numpy as np
from jax import lax
from jax.experimental import pallas as pl
from jax.experimental.pallas import tpu as pltpu


def _lstm_recurrent_kernel(x_ref, wih0_ref, whh0_ref, b0_ref, *args,
                           n_layers, hidden_size, t_chunk, t_valid):
    """One grid step == `t_chunk` sequential time steps for one batch split."""
    if n_layers > 1:
        wihu_ref, whhu_ref, bup_ref = args[:3]
        args = args[3:]
    h0_ref, c0_ref, y_ref, h_ref, c_ref = args

    H = hidden_size
    Bsp = h_ref.shape[1]
    chunk = pl.program_id(1)                      # sequential (time) axis
    mask_tail = (t_valid % t_chunk) != 0          # static python bool

    # h_ref / c_ref are constant-index (per batch-split) outputs -> VMEM
    # resident across the sequential axis; they double as the running state.
    @pl.when(chunk == 0)
    def _():
        h_ref[...] = h0_ref[...]
        c_ref[...] = c0_ref[...]

    # Hoist bias loads + broadcasts out of the unrolled time loop
    # (JAX does not CSE broadcast_in_dim; unrolling would re-emit them).
    b0 = jnp.broadcast_to(b0_ref[...], (Bsp, 4 * H))
    if n_layers > 1:
        b_up = [jnp.broadcast_to(bup_ref[l], (Bsp, 4 * H))
                for l in range(n_layers - 1)]

    def lstm_gates(gates, c):
        # torch.nn.LSTMCell gate order: i, f, g, o  (gate math kept in f32)
        i_g = jax.nn.sigmoid(gates[:, 0 * H:1 * H])
        f_g = jax.nn.sigmoid(gates[:, 1 * H:2 * H])
        g_g = jnp.tanh(gates[:, 2 * H:3 * H])
        o_g = jax.nn.sigmoid(gates[:, 3 * H:4 * H])
        c_new = f_g * c + i_g * g_g
        h_new = o_g * jnp.tanh(c_new)
        return h_new, c_new

    def step(ts, carry):
        if mask_tail:
            valid = (chunk * t_chunk + ts) < t_valid

        def keep(new, old):
            # padded tail steps must not advance the recurrent state
            return jnp.where(valid, new, old) if mask_tail else new

        x_t = x_ref[ts]                                       # (Bsp, E) bf16

        # ---- layer 0. The x @ W_ih0 matmul has no serial dependence (only
        # the h @ W_hh0 one does), so it overlaps with previous-step gate math
        # instead of being streamed as a (T, B, 4H) tensor through HBM.
        h = h_ref[0]
        c = c_ref[0]
        gates = (jnp.dot(x_t, wih0_ref[...],
                         preferred_element_type=jnp.float32)
                 + jnp.dot(h.astype(jnp.bfloat16), whh0_ref[...],
                           preferred_element_type=jnp.float32)
                 + b0)
        h_new, c_new = lstm_gates(gates, c)
        h_new = keep(h_new, h)
        c_new = keep(c_new, c)
        h_ref[0] = h_new
        c_ref[0] = c_new
        inp = h_new + x_t.astype(jnp.float32)     # residual (E == H)

        # ---- layers 1..L-1: two accumulating dots, no concat([x, h]) buffer
        for l in range(1, n_layers):
            h = h_ref[l]
            c = c_ref[l]
            gates = (jnp.dot(inp.astype(jnp.bfloat16), wihu_ref[l - 1],
                             preferred_element_type=jnp.float32)
                     + jnp.dot(h.astype(jnp.bfloat16), whhu_ref[l - 1],
                               preferred_element_type=jnp.float32)
                     + b_up[l - 1])
            h_new, c_new = lstm_gates(gates, c)
            h_new = keep(h_new, h)
            c_new = keep(c_new, c)
            h_ref[l] = h_new
            c_ref[l] = c_new
            inp = h_new + inp                      # residual (dims match)

        y_ref[ts] = inp.astype(y_ref.dtype)        # per-step rnn output
        return carry

    lax.fori_loop(0, t_chunk, step, None, unroll=True)


def decoder_forward(params, dec_input, hidden, *, t_chunk=None, batch_splits=1):
    """dec_input: (B, T) int32 token ids; hidden: (h0, c0), each (L, B, H)."""
    f32, bf16 = jnp.float32, jnp.bfloat16

    emb_table = params['embedding']                                   # (V, E)
    # embedding gather + identity dropout + ReLU: parallel-in-time XLA glue
    embedded = jnp.maximum(jnp.take(emb_table, dec_input, axis=0), 0.0)   # (B,T,E)
    x_tbe = jnp.transpose(embedded, (1, 0, 2)).astype(f32)                # (T,B,E)

    T, B, E = x_tbe.shape
    h0, c0 = hidden
    L, _, H = h0.shape
    assert E == H, "residual/stacked-weight layout requires embedding_dim == rnn_dim"

    # rows per batch split: 16-row alignment (full bf16 sublane-packed group)
    per_split = -(-B // batch_splits)
    Bsp = max(16, ((per_split + 15) // 16) * 16)
    Bp = Bsp * batch_splits

    # time chunking: pad T up to a multiple of t_chunk, mask the tail in-kernel
    if t_chunk is None:
        t_chunk = min(T, 16)
    n_chunks = -(-T // t_chunk)
    T_pad = n_chunks * t_chunk

    if Bp != B or T_pad != T:
        x_tbe = jnp.pad(x_tbe, ((0, T_pad - T), (0, Bp - B), (0, 0)))
    if Bp != B:
        h0 = jnp.pad(h0, ((0, 0), (0, Bp - B), (0, 0)))
        c0 = jnp.pad(c0, ((0, 0), (0, Bp - B), (0, 0)))
    h0 = h0.astype(f32)
    c0 = c0.astype(f32)

    # ---- weight prep: bf16 residents, pre-summed f32 biases ----------------
    x_bf = x_tbe.astype(bf16)
    wih0 = params['wih_t'][0].astype(bf16)                         # (E, 4H)
    whh0 = params['whh_t'][0].astype(bf16)                         # (H, 4H)
    b0 = (params['bih'][0] + params['bhh'][0]).astype(f32)         # (1, 4H)
    if L > 1:
        wih_up = params['wih_t'][1:].astype(bf16)                  # (L-1, H, 4H)
        whh_up = params['whh_t'][1:].astype(bf16)                  # (L-1, H, 4H)
        b_up = (params['bih'][1:] + params['bhh'][1:]).astype(f32) # (L-1, 1, 4H)

    kernel = functools.partial(_lstm_recurrent_kernel, n_layers=L,
                               hidden_size=H, t_chunk=t_chunk, t_valid=T)

    # explicit VMEM limit with per-generation headroom (96 MiB on 128-MiB
    # parts, 48 MiB on v7x's 64 MiB)
    try:
        vmem_cap = pltpu.get_tpu_info().vmem_capacity_bytes
    except Exception:
        vmem_cap = 64 * 1024 * 1024
    vmem_limit = min(int(vmem_cap * 3 // 4), 100 * 1024 * 1024)

    def const_spec(shape, index_map, single_buffer):
        # Constant-index blocks never change across the sequential axis;
        # Buffered(1) stops default double-buffering from wasting VMEM.
        if single_buffer and hasattr(pl, "Buffered"):
            try:
                return pl.BlockSpec(shape, index_map,
                                    pipeline_mode=pl.Buffered(1))
            except TypeError:
                pass
        return pl.BlockSpec(shape, index_map)

    def run(single_buffer):
        in_specs = [
            pl.BlockSpec((t_chunk, Bsp, E), lambda b, i: (i, b, 0)),        # x
            const_spec((E, 4 * H), lambda b, i: (0, 0), single_buffer),     # W_ih0^T
            const_spec((H, 4 * H), lambda b, i: (0, 0), single_buffer),     # W_hh0^T
            const_spec((1, 4 * H), lambda b, i: (0, 0), single_buffer),     # b0
        ]
        inputs = [x_bf, wih0, whh0, b0]
        if L > 1:
            in_specs += [
                const_spec((L - 1, H, 4 * H), lambda b, i: (0, 0, 0), single_buffer),
                const_spec((L - 1, H, 4 * H), lambda b, i: (0, 0, 0), single_buffer),
                const_spec((L - 1, 1, 4 * H), lambda b, i: (0, 0, 0), single_buffer),
            ]
            inputs += [wih_up, whh_up, b_up]
        in_specs += [
            const_spec((L, Bsp, H), lambda b, i: (0, b, 0), single_buffer),  # h0
            const_spec((L, Bsp, H), lambda b, i: (0, b, 0), single_buffer),  # c0
        ]
        inputs += [h0, c0]

        return pl.pallas_call(
            kernel,
            out_shape=(jax.ShapeDtypeStruct((T_pad, Bp, H), bf16),   # rnn outputs
                       jax.ShapeDtypeStruct((L, Bp, H), f32),        # final h
                       jax.ShapeDtypeStruct((L, Bp, H), f32)),       # final c
            grid_spec=pltpu.PrefetchScalarGridSpec(
                num_scalar_prefetch=0,
                grid=(batch_splits, n_chunks),
                in_specs=in_specs,
                out_specs=[
                    pl.BlockSpec((t_chunk, Bsp, H), lambda b, i: (i, b, 0)),
                    pl.BlockSpec((L, Bsp, H), lambda b, i: (0, b, 0)),
                    pl.BlockSpec((L, Bsp, H), lambda b, i: (0, b, 0)),
                ]),
            compiler_params=pltpu.CompilerParams(
                dimension_semantics=("parallel", "arbitrary"),
                vmem_limit_bytes=vmem_limit),
        )(*inputs)

    try:
        y, hT, cT = run(True)
    except Exception:
        # Fallback if this JAX build rejects pipeline_mode=pl.Buffered(1).
        y, hT, cT = run(False)

    # ---- hoisted classifier: one big (T, B, H) @ (H, V) matmul -------------
    y = y[:T, :B, :].astype(f32)
    logits_tbv = jnp.einsum('tbh,hv->tbv', y, params['wc_t']) + params['bc']
    logits = jnp.transpose(logits_tbv, (1, 0, 2))                    # (B, T, V)
    return logits, (hT[:, :B, :], cT[:, :B, :])


def decoder_ref(params, dec_input, hidden):
    """Pure-JAX f32 reference mirroring the PyTorch forward (verification)."""
    emb_table = params['embedding']
    embedded = jnp.maximum(jnp.take(emb_table, dec_input, axis=0), 0.0)  # (B,T,E)
    h, c = hidden
    L, B, H = h.shape
    T = embedded.shape[1]
    h_list = [h[i] for i in range(L)]
    c_list = [c[i] for i in range(L)]
    outs = []
    for t in range(T):
        inp = embedded[:, t, :]
        for l in range(L):
            gates = (inp @ params['wih_t'][l] + params['bih'][l]
                     + h_list[l] @ params['whh_t'][l] + params['bhh'][l])
            i_g = jax.nn.sigmoid(gates[:, 0 * H:1 * H])
            f_g = jax.nn.sigmoid(gates[:, 1 * H:2 * H])
            g_g = jnp.tanh(gates[:, 2 * H:3 * H])
            o_g = jax.nn.sigmoid(gates[:, 3 * H:4 * H])
            c_new = f_g * c_list[l] + i_g * g_g
            h_new = o_g * jnp.tanh(c_new)
            h_list[l] = h_new
            c_list[l] = c_new
            inp = h_new + inp if inp.shape[-1] == h_new.shape[-1] else h_new
        outs.append(inp)
    out = jnp.stack(outs, axis=1)                          # (B, T, H)
    logits = out @ params['wc_t'] + params['bc']           # (B, T, V)
    return logits, (jnp.stack(h_list, 0), jnp.stack(c_list, 0))


def make_params(key, vocab_size, emb_dim, hidden, n_layers, pad_id):
    assert emb_dim == hidden, "weights stacked per layer require E == H"
    ks = jax.random.split(key, 8)
    emb = 0.1 * jax.random.normal(ks[0], (vocab_size, emb_dim), jnp.float32)
    emb = emb.at[pad_id].set(0.0)                          # padding_idx row = 0
    params = {
        'embedding': emb,
        # W_ih^T / W_hh^T stacked over layers: (L, in, 4H)
        'wih_t': 0.3 * jax.random.normal(ks[1], (n_layers, emb_dim, 4 * hidden),
                                         jnp.float32),
        'whh_t': 0.3 * jax.random.normal(ks[2], (n_layers, hidden, 4 * hidden),
                                         jnp.float32),
        'bih': 0.1 * jax.random.normal(ks[3], (n_layers, 1, 4 * hidden),
                                       jnp.float32),
        'bhh': 0.1 * jax.random.normal(ks[4], (n_layers, 1, 4 * hidden),
                                       jnp.float32),
        # classifier: Linear(rnn_dim -> vocab_size), stored transposed (H, V)
        'wc_t': 0.3 * jax.random.normal(ks[5], (hidden, vocab_size), jnp.float32),
        'bc': 0.1 * jax.random.normal(ks[6], (1, vocab_size), jnp.float32),
    }
    return params


if __name__ == "__main__":
    B, T = 2, 8            # batch, decode sequence length
    E = H = 32             # embedding_dim == rnn_dim (enables residual path)
    V = 64                 # embedding_size (vocab)
    L = 2                  # n_layers
    PAD = 0

    key = jax.random.PRNGKey(0)
    kp, ki, kh, kc = jax.random.split(key, 4)

    params = make_params(kp, V, E, H, L, PAD)
    dec_input = jax.random.randint(ki, (B, T), 0, V, dtype=jnp.int32)
    h0 = 0.1 * jax.random.normal(kh, (L, B, H), jnp.float32)
    c0 = 0.1 * jax.random.normal(kc, (L, B, H), jnp.float32)

    # t_chunk=3 (does not divide T=8) exercises the masked tail and the
    # resident-state carry across chunks; batch_splits=2 exercises the
    # leading "parallel" grid axis (sharded across TensorCores on v7x).
    logits, (hT, cT) = decoder_forward(params, dec_input, (h0, c0),
                                       t_chunk=3, batch_splits=2)
    jax.block_until_ready((logits, hT, cT))

    # verify against the pure-f32 JAX reference of the PyTorch forward.
    # bf16 weights/streams (with f32 accumulation) leave a few e-3 relative
    # error that compounds over the recurrence, hence the 4e-2 tolerance.
    ref_logits, (ref_h, ref_c) = decoder_ref(params, dec_input, (h0, c0))
    np.testing.assert_allclose(np.asarray(logits), np.asarray(ref_logits),
                               rtol=4e-2, atol=4e-2)
    np.testing.assert_allclose(np.asarray(hT), np.asarray(ref_h),
                               rtol=4e-2, atol=4e-2)
    np.testing.assert_allclose(np.asarray(cT), np.asarray(ref_c),
                               rtol=4e-2, atol=4e-2)

    assert logits.shape == (B, T, V) and hT.shape == (L, B, H)
    print("KERNEL_OK")
</pallas_src>

<mosaic_0001>
module attributes {stable_mosaic.version = 11 : i64} {
  func.func @_lstm_recurrent_kernel(%arg0: i32, %arg1: i32, %arg2: memref<3x16x32xbf16, #tpu.memory_space<vmem>>, %arg3: memref<32x128xbf16, #tpu.memory_space<vmem>>, %arg4: memref<32x128xbf16, #tpu.memory_space<vmem>>, %arg5: memref<1x128xf32, #tpu.memory_space<vmem>>, %arg6: memref<1x32x128xbf16, #tpu.memory_space<vmem>>, %arg7: memref<1x32x128xbf16, #tpu.memory_space<vmem>>, %arg8: memref<1x1x128xf32, #tpu.memory_space<vmem>>, %arg9: memref<2x16x32xf32, #tpu.memory_space<vmem>>, %arg10: memref<2x16x32xf32, #tpu.memory_space<vmem>>, %arg11: memref<3x16x32xbf16, #tpu.memory_space<vmem>>, %arg12: memref<2x16x32xf32, #tpu.memory_space<vmem>>, %arg13: memref<2x16x32xf32, #tpu.memory_space<vmem>>) attributes {dimension_semantics = [#tpu.dimension_semantics<parallel>, #tpu.dimension_semantics<arbitrary>], iteration_bounds = array<i64: 2, 3>, scalar_prefetch = 0 : i64, scratch_operands = 0 : i64, tpu.core_type = #tpu.core_type<tc>, window_params = [{transform_indices = @transform_0, window_bounds = array<i64: 3, 16, 32>}, {pipeline_mode = #tpu.pipeline_mode<synchronous>, transform_indices = @transform_1, window_bounds = array<i64: 32, 128>}, {pipeline_mode = #tpu.pipeline_mode<synchronous>, transform_indices = @transform_2, window_bounds = array<i64: 32, 128>}, {pipeline_mode = #tpu.pipeline_mode<synchronous>, transform_indices = @transform_3, window_bounds = array<i64: 1, 128>}, {pipeline_mode = #tpu.pipeline_mode<synchronous>, transform_indices = @transform_4, window_bounds = array<i64: 1, 32, 128>}, {pipeline_mode = #tpu.pipeline_mode<synchronous>, transform_indices = @transform_5, window_bounds = array<i64: 1, 32, 128>}, {pipeline_mode = #tpu.pipeline_mode<synchronous>, transform_indices = @transform_6, window_bounds = array<i64: 1, 1, 128>}, {pipeline_mode = #tpu.pipeline_mode<synchronous>, transform_indices = @transform_7, window_bounds = array<i64: 2, 16, 32>}, {pipeline_mode = #tpu.pipeline_mode<synchronous>, transform_indices = @transform_8, window_bounds = array<i64: 2, 16, 32>}, {transform_indices = @transform_9, window_bounds = array<i64: 3, 16, 32>}, {transform_indices = @transform_10, window_bounds = array<i64: 2, 16, 32>}, {transform_indices = @transform_11, window_bounds = array<i64: 2, 16, 32>}]} {
    %c0_i32 = arith.constant 0 : i32
    %0 = arith.cmpi eq, %arg1, %c0_i32 : i32
    %1 = arith.extui %0 : i1 to i32
    %c0_i32_0 = arith.constant 0 : i32
    %2 = arith.cmpi ne, %1, %c0_i32_0 : i32
    scf.if %2 {
      %c0_153 = arith.constant 0 : index
      %c0_154 = arith.constant 0 : index
      %c0_155 = arith.constant 0 : index
      %325 = vector.load %arg9[%c0_153, %c0_154, %c0_155] : memref<2x16x32xf32, #tpu.memory_space<vmem>>, vector<2x16x32xf32>
      %c0_156 = arith.constant 0 : index
      %c0_157 = arith.constant 0 : index
      %c0_158 = arith.constant 0 : index
      %326 = vector.load %arg12[%c0_156, %c0_157, %c0_158] : memref<2x16x32xf32, #tpu.memory_space<vmem>>, vector<2x16x32xf32>
      tpu.vector_store %arg12[%c0_156, %c0_157, %c0_158], %325 {strides = array<i32>} : memref<2x16x32xf32, #tpu.memory_space<vmem>>, vector<2x16x32xf32>,
      %c0_159 = arith.constant 0 : index
      %c0_160 = arith.constant 0 : index
      %c0_161 = arith.constant 0 : index
      %327 = vector.load %arg10[%c0_159, %c0_160, %c0_161] : memref<2x16x32xf32, #tpu.memory_space<vmem>>, vector<2x16x32xf32>
      %c0_162 = arith.constant 0 : index
      %c0_163 = arith.constant 0 : index
      %c0_164 = arith.constant 0 : index
      %328 = vector.load %arg13[%c0_162, %c0_163, %c0_164] : memref<2x16x32xf32, #tpu.memory_space<vmem>>, vector<2x16x32xf32>
      tpu.vector_store %arg13[%c0_162, %c0_163, %c0_164], %327 {strides = array<i32>} : memref<2x16x32xf32, #tpu.memory_space<vmem>>, vector<2x16x32xf32>,
    } else {
    }
    %c0 = arith.constant 0 : index
    %c0_1 = arith.constant 0 : index
    %3 = vector.load %arg5[%c0, %c0_1] : memref<1x128xf32, #tpu.memory_space<vmem>>, vector<1x128xf32>
    %4 = vector.shape_cast %3 : vector<1x128xf32> to vector<1x128xf32>
    %5 = vector.broadcast %4 : vector<1x128xf32> to vector<16x128xf32>
    %c0_2 = arith.constant 0 : index
    %c0_3 = arith.constant 0 : index
    %c0_4 = arith.constant 0 : index
    %6 = vector.load %arg8[%c0_2, %c0_3, %c0_4] : memref<1x1x128xf32, #tpu.memory_space<vmem>>, vector<1x1x128xf32>
    %7 = vector.shape_cast %6 : vector<1x1x128xf32> to vector<1x128xf32>
    %8 = vector.shape_cast %7 : vector<1x128xf32> to vector<1x128xf32>
    %9 = vector.broadcast %8 : vector<1x128xf32> to vector<16x128xf32>
    %c0_i32_5 = arith.constant 0 : i32
    %c3_i32 = arith.constant 3 : i32
    %10 = arith.muli %arg1, %c3_i32 : i32
    %11 = arith.addi %10, %c0_i32_5 : i32
    %c8_i32 = arith.constant 8 : i32
    %12 = arith.cmpi slt, %11, %c8_i32 : i32
    %13 = arith.index_cast %c0_i32_5 : i32 to index
    %c0_6 = arith.constant 0 : index
    %c0_7 = arith.constant 0 : index
    %14 = vector.load %arg2[%13, %c0_6, %c0_7] : memref<3x16x32xbf16, #tpu.memory_space<vmem>>, vector<1x16x32xbf16>
    %15 = vector.shape_cast %14 : vector<1x16x32xbf16> to vector<16x32xbf16>
    %c0_8 = arith.constant 0 : index
    %c0_9 = arith.constant 0 : index
    %c0_10 = arith.constant 0 : index
    %16 = vector.load %arg12[%c0_8, %c0_9, %c0_10] : memref<2x16x32xf32, #tpu.memory_space<vmem>>, vector<1x16x32xf32>
    %17 = vector.shape_cast %16 : vector<1x16x32xf32> to vector<16x32xf32>
    %c0_11 = arith.constant 0 : index
    %c0_12 = arith.constant 0 : index
    %c0_13 = arith.constant 0 : index
    %18 = vector.load %arg13[%c0_11, %c0_12, %c0_13] : memref<2x16x32xf32, #tpu.memory_space<vmem>>, vector<1x16x32xf32>
    %19 = vector.shape_cast %18 : vector<1x16x32xf32> to vector<16x32xf32>
    %c0_14 = arith.constant 0 : index
    %c0_15 = arith.constant 0 : index
    %20 = vector.load %arg3[%c0_14, %c0_15] : memref<32x128xbf16, #tpu.memory_space<vmem>>, vector<32x128xbf16>
    %cst = arith.constant dense<0.000000e+00> : vector<16x128xf32>
    %21 = tpu.matmul %15, %20, %cst {dimension_numbers = #tpu.dot_dimension_numbers<[1], [0], [0], [1], [0, 0, 1, 1], [], []>} : vector<16x32xbf16>, vector<32x128xbf16>, vector<16x128xf32> -> vector<16x128xf32>
    %22 = arith.truncf %17 : vector<16x32xf32> to vector<16x32xbf16>
    %c0_16 = arith.constant 0 : index
    %c0_17 = arith.constant 0 : index
    %23 = vector.load %arg4[%c0_16, %c0_17] : memref<32x128xbf16, #tpu.memory_space<vmem>>, vector<32x128xbf16>
    %cst_18 = arith.constant dense<0.000000e+00> : vector<16x128xf32>
    %24 = tpu.matmul %22, %23, %cst_18 {dimension_numbers = #tpu.dot_dimension_numbers<[1], [0], [0], [1], [0, 0, 1, 1], [], []>} : vector<16x32xbf16>, vector<32x128xbf16>, vector<16x128xf32> -> vector<16x128xf32>
    %25 = arith.addf %21, %24 : vector<16x128xf32>
    %26 = arith.addf %25, %5 : vector<16x128xf32>
    %27 = vector.extract_strided_slice %26 {offsets = [0, 0], sizes = [16, 32], strides = [1, 1]} : vector<16x128xf32> to vector<16x32xf32>
    %28 = arith.negf %27 : vector<16x32xf32>
    %29 = math.exp %28 : vector<16x32xf32>
    %cst_19 = arith.constant 1.000000e+00 : f32
    %30 = vector.broadcast %cst_19 : f32 to vector<16x32xf32>
    %31 = arith.addf %30, %29 : vector<16x32xf32>
    %32 = arith.divf %30, %31 : vector<16x32xf32>
    %33 = vector.extract_strided_slice %26 {offsets = [0, 32], sizes = [16, 32], strides = [1, 1]} : vector<16x128xf32> to vector<16x32xf32>
    %34 = arith.negf %33 : vector<16x32xf32>
    %35 = math.exp %34 : vector<16x32xf32>
    %cst_20 = arith.constant 1.000000e+00 : f32
    %36 = vector.broadcast %cst_20 : f32 to vector<16x32xf32>
    %37 = arith.addf %36, %35 : vector<16x32xf32>
    %38 = arith.divf %36, %37 : vector<16x32xf32>
    %39 = vector.extract_strided_slice %26 {offsets = [0, 64], sizes = [16, 32], strides = [1, 1]} : vector<16x128xf32> to vector<16x32xf32>
    %40 = math.tanh %39 : vector<16x32xf32>
    %41 = vector.extract_strided_slice %26 {offsets = [0, 96], sizes = [16, 32], strides = [1, 1]} : vector<16x128xf32> to vector<16x32xf32>
    %42 = arith.negf %41 : vector<16x32xf32>
    %43 = math.exp %42 : vector<16x32xf32>
    %cst_21 = arith.constant 1.000000e+00 : f32
    %44 = vector.broadcast %cst_21 : f32 to vector<16x32xf32>
    %45 = arith.addf %44, %43 : vector<16x32xf32>
    %46 = arith.divf %44, %45 : vector<16x32xf32>
    %47 = arith.mulf %38, %19 : vector<16x32xf32>
    %48 = arith.mulf %32, %40 : vector<16x32xf32>
    %49 = arith.addf %47, %48 : vector<16x32xf32>
    %50 = math.tanh %49 : vector<16x32xf32>
    %51 = arith.mulf %46, %50 : vector<16x32xf32>
    %52 = arith.select %12, %51, %17 : vector<16x32xf32>
    %53 = arith.select %12, %49, %19 : vector<16x32xf32>
    %c0_22 = arith.constant 0 : index
    %c0_23 = arith.constant 0 : index
    %c0_24 = arith.constant 0 : index
    %54 = vector.load %arg12[%c0_22, %c0_23, %c0_24] : memref<2x16x32xf32, #tpu.memory_space<vmem>>, vector<1x16x32xf32>
    %55 = vector.shape_cast %54 : vector<1x16x32xf32> to vector<16x32xf32>
    %56 = vector.shape_cast %52 : vector<16x32xf32> to vector<1x16x32xf32>
    tpu.vector_store %arg12[%c0_22, %c0_23, %c0_24], %56 {strides = array<i32>} : memref<2x16x32xf32, #tpu.memory_space<vmem>>, vector<1x16x32xf32>,
    %c0_25 = arith.constant 0 : index
    %c0_26 = arith.constant 0 : index
    %c0_27 = arith.constant 0 : index
    %57 = vector.load %arg13[%c0_25, %c0_26, %c0_27] : memref<2x16x32xf32, #tpu.memory_space<vmem>>, vector<1x16x32xf32>
    %58 = vector.shape_cast %57 : vector<1x16x32xf32> to vector<16x32xf32>
    %59 = vector.shape_cast %53 : vector<16x32xf32> to vector<1x16x32xf32>
    tpu.vector_store %arg13[%c0_25, %c0_26, %c0_27], %59 {strides = array<i32>} : memref<2x16x32xf32, #tpu.memory_space<vmem>>, vector<1x16x32xf32>,
    %60 = arith.extf %15 : vector<16x32xbf16> to vector<16x32xf32>
    %61 = arith.addf %52, %60 : vector<16x32xf32>
    %c1 = arith.constant 1 : index
    %c0_28 = arith.constant 0 : index
    %c0_29 = arith.constant 0 : index
    %62 = vector.load %arg12[%c1, %c0_28, %c0_29] : memref<2x16x32xf32, #tpu.memory_space<vmem>>, vector<1x16x32xf32>
    %63 = vector.shape_cast %62 : vector<1x16x32xf32> to vector<16x32xf32>
    %c1_30 = arith.constant 1 : index
    %c0_31 = arith.constant 0 : index
    %c0_32 = arith.constant 0 : index
    %64 = vector.load %arg13[%c1_30, %c0_31, %c0_32] : memref<2x16x32xf32, #tpu.memory_space<vmem>>, vector<1x16x32xf32>
    %65 = vector.shape_cast %64 : vector<1x16x32xf32> to vector<16x32xf32>
    %66 = arith.truncf %61 : vector<16x32xf32> to vector<16x32xbf16>
    %c0_33 = arith.constant 0 : index
    %c0_34 = arith.constant 0 : index
    %c0_35 = arith.constant 0 : index
    %67 = vector.load %arg6[%c0_33, %c0_34, %c0_35] : memref<1x32x128xbf16, #tpu.memory_space<vmem>>, vector<1x32x128xbf16>
    %68 = vector.shape_cast %67 : vector<1x32x128xbf16> to vector<32x128xbf16>
    %cst_36 = arith.constant dense<0.000000e+00> : vector<16x128xf32>
    %69 = tpu.matmul %66, %68, %cst_36 {dimension_numbers = #tpu.dot_dimension_numbers<[1], [0], [0], [1], [0, 0, 1, 1], [], []>} : vector<16x32xbf16>, vector<32x128xbf16>, vector<16x128xf32> -> vector<16x128xf32>
    %70 = arith.truncf %63 : vector<16x32xf32> to vector<16x32xbf16>
    %c0_37 = arith.constant 0 : index
    %c0_38 = arith.constant 0 : index
    %c0_39 = arith.constant 0 : index
    %71 = vector.load %arg7[%c0_37, %c0_38, %c0_39] : memref<1x32x128xbf16, #tpu.memory_space<vmem>>, vector<1x32x128xbf16>
    %72 = vector.shape_cast %71 : vector<1x32x128xbf16> to vector<32x128xbf16>
    %cst_40 = arith.constant dense<0.000000e+00> : vector<16x128xf32>
    %73 = tpu.matmul %70, %72, %cst_40 {dimension_numbers = #tpu.dot_dimension_numbers<[1], [0], [0], [1], [0, 0, 1, 1], [], []>} : vector<16x32xbf16>, vector<32x128xbf16>, vector<16x128xf32> -> vector<16x128xf32>
    %74 = arith.addf %69, %73 : vector<16x128xf32>
    %75 = arith.addf %74, %9 : vector<16x128xf32>
    %76 = vector.extract_strided_slice %75 {offsets = [0, 0], sizes = [16, 32], strides = [1, 1]} : vector<16x128xf32> to vector<16x32xf32>
    %77 = arith.negf %76 : vector<16x32xf32>
    %78 = math.exp %77 : vector<16x32xf32>
    %cst_41 = arith.constant 1.000000e+00 : f32
    %79 = vector.broadcast %cst_41 : f32 to vector<16x32xf32>
    %80 = arith.addf %79, %78 : vector<16x32xf32>
    %81 = arith.divf %79, %80 : vector<16x32xf32>
    %82 = vector.extract_strided_slice %75 {offsets = [0, 32], sizes = [16, 32], strides = [1, 1]} : vector<16x128xf32> to vector<16x32xf32>
    %83 = arith.negf %82 : vector<16x32xf32>
    %84 = math.exp %83 : vector<16x32xf32>
    %cst_42 = arith.constant 1.000000e+00 : f32
    %85 = vector.broadcast %cst_42 : f32 to vector<16x32xf32>
    %86 = arith.addf %85, %84 : vector<16x32xf32>
    %87 = arith.divf %85, %86 : vector<16x32xf32>
    %88 = vector.extract_strided_slice %75 {offsets = [0, 64], sizes = [16, 32], strides = [1, 1]} : vector<16x128xf32> to vector<16x32xf32>
    %89 = math.tanh %88 : vector<16x32xf32>
    %90 = vector.extract_strided_slice %75 {offsets = [0, 96], sizes = [16, 32], strides = [1, 1]} : vector<16x128xf32> to vector<16x32xf32>
    %91 = arith.negf %90 : vector<16x32xf32>
    %92 = math.exp %91 : vector<16x32xf32>
    %cst_43 = arith.constant 1.000000e+00 : f32
    %93 = vector.broadcast %cst_43 : f32 to vector<16x32xf32>
    %94 = arith.addf %93, %92 : vector<16x32xf32>
    %95 = arith.divf %93, %94 : vector<16x32xf32>
    %96 = arith.mulf %87, %65 : vector<16x32xf32>
    %97 = arith.mulf %81, %89 : vector<16x32xf32>
    %98 = arith.addf %96, %97 : vector<16x32xf32>
    %99 = math.tanh %98 : vector<16x32xf32>
    %100 = arith.mulf %95, %99 : vector<16x32xf32>
    %101 = arith.select %12, %100, %63 : vector<16x32xf32>
    %102 = arith.select %12, %98, %65 : vector<16x32xf32>
    %c1_44 = arith.constant 1 : index
    %c0_45 = arith.constant 0 : index
    %c0_46 = arith.constant 0 : index
    %103 = vector.load %arg12[%c1_44, %c0_45, %c0_46] : memref<2x16x32xf32, #tpu.memory_space<vmem>>, vector<1x16x32xf32>
    %104 = vector.shape_cast %103 : vector<1x16x32xf32> to vector<16x32xf32>
    %105 = vector.shape_cast %101 : vector<16x32xf32> to vector<1x16x32xf32>
    tpu.vector_store %arg12[%c1_44, %c0_45, %c0_46], %105 {strides = array<i32>} : memref<2x16x32xf32, #tpu.memory_space<vmem>>, vector<1x16x32xf32>,
    %c1_47 = arith.constant 1 : index
    %c0_48 = arith.constant 0 : index
    %c0_49 = arith.constant 0 : index
    %106 = vector.load %arg13[%c1_47, %c0_48, %c0_49] : memref<2x16x32xf32, #tpu.memory_space<vmem>>, vector<1x16x32xf32>
    %107 = vector.shape_cast %106 : vector<1x16x32xf32> to vector<16x32xf32>
    %108 = vector.shape_cast %102 : vector<16x32xf32> to vector<1x16x32xf32>
    tpu.vector_store %arg13[%c1_47, %c0_48, %c0_49], %108 {strides = array<i32>} : memref<2x16x32xf32, #tpu.memory_space<vmem>>, vector<1x16x32xf32>,
    %109 = arith.addf %101, %61 : vector<16x32xf32>
    %110 = arith.truncf %109 : vector<16x32xf32> to vector<16x32xbf16>
    %111 = arith.index_cast %c0_i32_5 : i32 to index
    %c0_50 = arith.constant 0 : index
    %c0_51 = arith.constant 0 : index
    %112 = vector.load %arg11[%111, %c0_50, %c0_51] : memref<3x16x32xbf16, #tpu.memory_space<vmem>>, vector<1x16x32xbf16>
    %113 = vector.shape_cast %112 : vector<1x16x32xbf16> to vector<16x32xbf16>
    %114 = vector.shape_cast %110 : vector<16x32xbf16> to vector<1x16x32xbf16>
    tpu.vector_store %arg11[%111, %c0_50, %c0_51], %114 {strides = array<i32>} : memref<3x16x32xbf16, #tpu.memory_space<vmem>>, vector<1x16x32xbf16>,
    %c1_i32 = arith.constant 1 : i32
    %c3_i32_52 = arith.constant 3 : i32
    %115 = arith.muli %arg1, %c3_i32_52 : i32
    %116 = arith.addi %115, %c1_i32 : i32
    %c8_i32_53 = arith.constant 8 : i32
    %117 = arith.cmpi slt, %116, %c8_i32_53 : i32
    %118 = arith.index_cast %c1_i32 : i32 to index
    %c0_54 = arith.constant 0 : index
    %c0_55 = arith.constant 0 : index
    %119 = vector.load %arg2[%118, %c0_54, %c0_55] : memref<3x16x32xbf16, #tpu.memory_space<vmem>>, vector<1x16x32xbf16>
    %120 = vector.shape_cast %119 : vector<1x16x32xbf16> to vector<16x32xbf16>
    %c0_56 = arith.constant 0 : index
    %c0_57 = arith.constant 0 : index
    %c0_58 = arith.constant 0 : index
    %121 = vector.load %arg12[%c0_56, %c0_57, %c0_58] : memref<2x16x32xf32, #tpu.memory_space<vmem>>, vector<1x16x32xf32>
    %122 = vector.shape_cast %121 : vector<1x16x32xf32> to vector<16x32xf32>
    %c0_59 = arith.constant 0 : index
    %c0_60 = arith.constant 0 : index
    %c0_61 = arith.constant 0 : index
    %123 = vector.load %arg13[%c0_59, %c0_60, %c0_61] : memref<2x16x32xf32, #tpu.memory_space<vmem>>, vector<1x16x32xf32>
    %124 = vector.shape_cast %123 : vector<1x16x32xf32> to vector<16x32xf32>
    %c0_62 = arith.constant 0 : index
    %c0_63 = arith.constant 0 : index
    %125 = vector.load %arg3[%c0_62, %c0_63] : memref<32x128xbf16, #tpu.memory_space<vmem>>, vector<32x128xbf16>
    %cst_64 = arith.constant dense<0.000000e+00> : vector<16x128xf32>
    %126 = tpu.matmul %120, %125, %cst_64 {dimension_numbers = #tpu.dot_dimension_numbers<[1], [0], [0], [1], [0, 0, 1, 1], [], []>} : vector<16x32xbf16>, vector<32x128xbf16>, vector<16x128xf32> -> vector<16x128xf32>
    %127 = arith.truncf %122 : vector<16x32xf32> to vector<16x32xbf16>
    %c0_65 = arith.constant 0 : index
    %c0_66 = arith.constant 0 : index
    %128 = vector.load %arg4[%c0_65, %c0_66] : memref<32x128xbf16, #tpu.memory_space<vmem>>, vector<32x128xbf16>
    %cst_67 = arith.constant dense<0.000000e+00> : vector<16x128xf32>
    %129 = tpu.matmul %127, %128, %cst_67 {dimension_numbers = #tpu.dot_dimension_numbers<[1], [0], [0], [1], [0, 0, 1, 1], [], []>} : vector<16x32xbf16>, vector<32x128xbf16>, vector<16x128xf32> -> vector<16x128xf32>
    %130 = arith.addf %126, %129 : vector<16x128xf32>
    %131 = arith.addf %130, %5 : vector<16x128xf32>
    %132 = vector.extract_strided_slice %131 {offsets = [0, 0], sizes = [16, 32], strides = [1, 1]} : vector<16x128xf32> to vector<16x32xf32>
    %133 = arith.negf %132 : vector<16x32xf32>
    %134 = math.exp %133 : vector<16x32xf32>
    %cst_68 = arith.constant 1.000000e+00 : f32
    %135 = vector.broadcast %cst_68 : f32 to vector<16x32xf32>
    %136 = arith.addf %135, %134 : vector<16x32xf32>
    %137 = arith.divf %135, %136 : vector<16x32xf32>
    %138 = vector.extract_strided_slice %131 {offsets = [0, 32], sizes = [16, 32], strides = [1, 1]} : vector<16x128xf32> to vector<16x32xf32>
    %139 = arith.negf %138 : vector<16x32xf32>
    %140 = math.exp %139 : vector<16x32xf32>
    %cst_69 = arith.constant 1.000000e+00 : f32
    %141 = vector.broadcast %cst_69 : f32 to vector<16x32xf32>
    %142 = arith.addf %141, %140 : vector<16x32xf32>
    %143 = arith.divf %141, %142 : vector<16x32xf32>
    %144 = vector.extract_strided_slice %131 {offsets = [0, 64], sizes = [16, 32], strides = [1, 1]} : vector<16x128xf32> to vector<16x32xf32>
    %145 = math.tanh %144 : vector<16x32xf32>
    %146 = vector.extract_strided_slice %131 {offsets = [0, 96], sizes = [16, 32], strides = [1, 1]} : vector<16x128xf32> to vector<16x32xf32>
    %147 = arith.negf %146 : vector<16x32xf32>
    %148 = math.exp %147 : vector<16x32xf32>
    %cst_70 = arith.constant 1.000000e+00 : f32
    %149 = vector.broadcast %cst_70 : f32 to vector<16x32xf32>
    %150 = arith.addf %149, %148 : vector<16x32xf32>
    %151 = arith.divf %149, %150 : vector<16x32xf32>
    %152 = arith.mulf %143, %124 : vector<16x32xf32>
    %153 = arith.mulf %137, %145 : vector<16x32xf32>
    %154 = arith.addf %152, %153 : vector<16x32xf32>
    %155 = math.tanh %154 : vector<16x32xf32>
    %156 = arith.mulf %151, %155 : vector<16x32xf32>
    %157 = arith.select %117, %156, %122 : vector<16x32xf32>
    %158 = arith.select %117, %154, %124 : vector<16x32xf32>
    %c0_71 = arith.constant 0 : index
    %c0_72 = arith.constant 0 : index
    %c0_73 = arith.constant 0 : index
    %159 = vector.load %arg12[%c0_71, %c0_72, %c0_73] : memref<2x16x32xf32, #tpu.memory_space<vmem>>, vector<1x16x32xf32>
    %160 = vector.shape_cast %159 : vector<1x16x32xf32> to vector<16x32xf32>
    %161 = vector.shape_cast %157 : vector<16x32xf32> to vector<1x16x32xf32>
    tpu.vector_store %arg12[%c0_71, %c0_72, %c0_73], %161 {strides = array<i32>} : memref<2x16x32xf32, #tpu.memory_space<vmem>>, vector<1x16x32xf32>,
    %c0_74 = arith.constant 0 : index
    %c0_75 = arith.constant 0 : index
    %c0_76 = arith.constant 0 : index
    %162 = vector.load %arg13[%c0_74, %c0_75, %c0_76] : memref<2x16x32xf32, #tpu.memory_space<vmem>>, vector<1x16x32xf32>
    %163 = vector.shape_cast %162 : vector<1x16x32xf32> to vector<16x32xf32>
    %164 = vector.shape_cast %158 : vector<16x32xf32> to vector<1x16x32xf32>
    tpu.vector_store %arg13[%c0_74, %c0_75, %c0_76], %164 {strides = array<i32>} : memref<2x16x32xf32, #tpu.memory_space<vmem>>, vector<1x16x32xf32>,
    %165 = arith.extf %120 : vector<16x32xbf16> to vector<16x32xf32>
    %166 = arith.addf %157, %165 : vector<16x32xf32>
    %c1_77 = arith.constant 1 : index
    %c0_78 = arith.constant 0 : index
    %c0_79 = arith.constant 0 : index
    %167 = vector.load %arg12[%c1_77, %c0_78, %c0_79] : memref<2x16x32xf32, #tpu.memory_space<vmem>>, vector<1x16x32xf32>
    %168 = vector.shape_cast %167 : vector<1x16x32xf32> to vector<16x32xf32>
    %c1_80 = arith.constant 1 : index
    %c0_81 = arith.constant 0 : index
    %c0_82 = arith.constant 0 : index
    %169 = vector.load %arg13[%c1_80, %c0_81, %c0_82] : memref<2x16x32xf32, #tpu.memory_space<vmem>>, vector<1x16x32xf32>
    %170 = vector.shape_cast %169 : vector<1x16x32xf32> to vector<16x32xf32>
    %171 = arith.truncf %166 : vector<16x32xf32> to vector<16x32xbf16>
    %c0_83 = arith.constant 0 : index
    %c0_84 = arith.constant 0 : index
    %c0_85 = arith.constant 0 : index
    %172 = vector.load %arg6[%c0_83, %c0_84, %c0_85] : memref<1x32x128xbf16, #tpu.memory_space<vmem>>, vector<1x32x128xbf16>
    %173 = vector.shape_cast %172 : vector<1x32x128xbf16> to vector<32x128xbf16>
    %cst_86 = arith.constant dense<0.000000e+00> : vector<16x128xf32>
    %174 = tpu.matmul %171, %173, %cst_86 {dimension_numbers = #tpu.dot_dimension_numbers<[1], [0], [0], [1], [0, 0, 1, 1], [], []>} : vector<16x32xbf16>, vector<32x128xbf16>, vector<16x128xf32> -> vector<16x128xf32>
    %175 = arith.truncf %168 : vector<16x32xf32> to vector<16x32xbf16>
    %c0_87 = arith.constant 0 : index
    %c0_88 = arith.constant 0 : index
    %c0_89 = arith.constant 0 : index
    %176 = vector.load %arg7[%c0_87, %c0_88, %c0_89] : memref<1x32x128xbf16, #tpu.memory_space<vmem>>, vector<1x32x128xbf16>
    %177 = vector.shape_cast %176 : vector<1x32x128xbf16> to vector<32x128xbf16>
    %cst_90 = arith.constant dense<0.000000e+00> : vector<16x128xf32>
    %178 = tpu.matmul %175, %177, %cst_90 {dimension_numbers = #tpu.dot_dimension_numbers<[1], [0], [0], [1], [0, 0, 1, 1], [], []>} : vector<16x32xbf16>, vector<32x128xbf16>, vector<16x128xf32> -> vector<16x128xf32>
    %179 = arith.addf %174, %178 : vector<16x128xf32>
    %180 = arith.addf %179, %9 : vector<16x128xf32>
    %181 = vector.extract_strided_slice %180 {offsets = [0, 0], sizes = [16, 32], strides = [1, 1]} : vector<16x128xf32> to vector<16x32xf32>
    %182 = arith.negf %181 : vector<16x32xf32>
    %183 = math.exp %182 : vector<16x32xf32>
    %cst_91 = arith.constant 1.000000e+00 : f32
    %184 = vector.broadcast %cst_91 : f32 to vector<16x32xf32>
    %185 = arith.addf %184, %183 : vector<16x32xf32>
    %186 = arith.divf %184, %185 : vector<16x32xf32>
    %187 = vector.extract_strided_slice %180 {offsets = [0, 32], sizes = [16, 32], strides = [1, 1]} : vector<16x128xf32> to vector<16x32xf32>
    %188 = arith.negf %187 : vector<16x32xf32>
    %189 = math.exp %188 : vector<16x32xf32>
    %cst_92 = arith.constant 1.000000e+00 : f32
    %190 = vector.broadcast %cst_92 : f32 to vector<16x32xf32>
    %191 = arith.addf %190, %189 : vector<16x32xf32>
    %192 = arith.divf %190, %191 : vector<16x32xf32>
    %193 = vector.extract_strided_slice %180 {offsets = [0, 64], sizes = [16, 32], strides = [1, 1]} : vector<16x128xf32> to vector<16x32xf32>
    %194 = math.tanh %193 : vector<16x32xf32>
    %195 = vector.extract_strided_slice %180 {offsets = [0, 96], sizes = [16, 32], strides = [1, 1]} : vector<16x128xf32> to vector<16x32xf32>
    %196 = arith.negf %195 : vector<16x32xf32>
    %197 = math.exp %196 : vector<16x32xf32>
    %cst_93 = arith.constant 1.000000e+00 : f32
    %198 = vector.broadcast %cst_93 : f32 to vector<16x32xf32>
    %199 = arith.addf %198, %197 : vector<16x32xf32>
    %200 = arith.divf %198, %199 : vector<16x32xf32>
    %201 = arith.mulf %192, %170 : vector<16x32xf32>
    %202 = arith.mulf %186, %194 : vector<16x32xf32>
    %203 = arith.addf %201, %202 : vector<16x32xf32>
    %204 = math.tanh %203 : vector<16x32xf32>
    %205 = arith.mulf %200, %204 : vector<16x32xf32>
    %206 = arith.select %117, %205, %168 : vector<16x32xf32>
    %207 = arith.select %117, %203, %170 : vector<16x32xf32>
    %c1_94 = arith.constant 1 : index
    %c0_95 = arith.constant 0 : index
    %c0_96 = arith.constant 0 : index
    %208 = vector.load %arg12[%c1_94, %c0_95, %c0_96] : memref<2x16x32xf32, #tpu.memory_space<vmem>>, vector<1x16x32xf32>
    %209 = vector.shape_cast %208 : vector<1x16x32xf32> to vector<16x32xf32>
    %210 = vector.shape_cast %206 : vector<16x32xf32> to vector<1x16x32xf32>
    tpu.vector_store %arg12[%c1_94, %c0_95, %c0_96], %210 {strides = array<i32>} : memref<2x16x32xf32, #tpu.memory_space<vmem>>, vector<1x16x32xf32>,
    %c1_97 = arith.constant 1 : index
    %c0_98 = arith.constant 0 : index
    %c0_99 = arith.constant 0 : index
    %211 = vector.load %arg13[%c1_97, %c0_98, %c0_99] : memref<2x16x32xf32, #tpu.memory_space<vmem>>, vector<1x16x32xf32>
    %212 = vector.shape_cast %211 : vector<1x16x32xf32> to vector<16x32xf32>
    %213 = vector.shape_cast %207 : vector<16x32xf32> to vector<1x16x32xf32>
    tpu.vector_store %arg13[%c1_97, %c0_98, %c0_99], %213 {strides = array<i32>} : memref<2x16x32xf32, #tpu.memory_space<vmem>>, vector<1x16x32xf32>,
    %214 = arith.addf %206, %166 : vector<16x32xf32>
    %215 = arith.truncf %214 : vector<16x32xf32> to vector<16x32xbf16>
    %216 = arith.index_cast %c1_i32 : i32 to index
    %c0_100 = arith.constant 0 : index
    %c0_101 = arith.constant 0 : index
    %217 = vector.load %arg11[%216, %c0_100, %c0_101] : memref<3x16x32xbf16, #tpu.memory_space<vmem>>, vector<1x16x32xbf16>
    %218 = vector.shape_cast %217 : vector<1x16x32xbf16> to vector<16x32xbf16>
    %219 = vector.shape_cast %215 : vector<16x32xbf16> to vector<1x16x32xbf16>
    tpu.vector_store %arg11[%216, %c0_100, %c0_101], %219 {strides = array<i32>} : memref<3x16x32xbf16, #tpu.memory_space<vmem>>, vector<1x16x32xbf16>,
    %c2_i32 = arith.constant 2 : i32
    %c3_i32_102 = arith.constant 3 : i32
    %220 = arith.muli %arg1, %c3_i32_102 : i32
    %221 = arith.addi %220, %c2_i32 : i32
    %c8_i32_103 = arith.constant 8 : i32
    %222 = arith.cmpi slt, %221, %c8_i32_103 : i32
    %223 = arith.index_cast %c2_i32 : i32 to index
    %c0_104 = arith.constant 0 : index
    %c0_105 = arith.constant 0 : index
    %224 = vector.load %arg2[%223, %c0_104, %c0_105] : memref<3x16x32xbf16, #tpu.memory_space<vmem>>, vector<1x16x32xbf16>
    %225 = vector.shape_cast %224 : vector<1x16x32xbf16> to vector<16x32xbf16>
    %c0_106 = arith.constant 0 : index
    %c0_107 = arith.constant 0 : index
    %c0_108 = arith.constant 0 : index
    %226 = vector.load %arg12[%c0_106, %c0_107, %c0_108] : memref<2x16x32xf32, #tpu.memory_space<vmem>>, vector<1x16x32xf32>
    %227 = vector.shape_cast %226 : vector<1x16x32xf32> to vector<16x32xf32>
    %c0_109 = arith.constant 0 : index
    %c0_110 = arith.constant 0 : index
    %c0_111 = arith.constant 0 : index
    %228 = vector.load %arg13[%c0_109, %c0_110, %c0_111] : memref<2x16x32xf32, #tpu.memory_space<vmem>>, vector<1x16x32xf32>
    %229 = vector.shape_cast %228 : vector<1x16x32xf32> to vector<16x32xf32>
    %c0_112 = arith.constant 0 : index
    %c0_113 = arith.constant 0 : index
    %230 = vector.load %arg3[%c0_112, %c0_113] : memref<32x128xbf16, #tpu.memory_space<vmem>>, vector<32x128xbf16>
    %cst_114 = arith.constant dense<0.000000e+00> : vector<16x128xf32>
    %231 = tpu.matmul %225, %230, %cst_114 {dimension_numbers = #tpu.dot_dimension_numbers<[1], [0], [0], [1], [0, 0, 1, 1], [], []>} : vector<16x32xbf16>, vector<32x128xbf16>, vector<16x128xf32> -> vector<16x128xf32>
    %232 = arith.truncf %227 : vector<16x32xf32> to vector<16x32xbf16>
    %c0_115 = arith.constant 0 : index
    %c0_116 = arith.constant 0 : index
    %233 = vector.load %arg4[%c0_115, %c0_116] : memref<32x128xbf16, #tpu.memory_space<vmem>>, vector<32x128xbf16>
    %cst_117 = arith.constant dense<0.000000e+00> : vector<16x128xf32>
    %234 = tpu.matmul %232, %233, %cst_117 {dimension_numbers = #tpu.dot_dimension_numbers<[1], [0], [0], [1], [0, 0, 1, 1], [], []>} : vector<16x32xbf16>, vector<32x128xbf16>, vector<16x128xf32> -> vector<16x128xf32>
    %235 = arith.addf %231, %234 : vector<16x128xf32>
    %236 = arith.addf %235, %5 : vector<16x128xf32>
    %237 = vector.extract_strided_slice %236 {offsets = [0, 0], sizes = [16, 32], strides = [1, 1]} : vector<16x128xf32> to vector<16x32xf32>
    %238 = arith.negf %237 : vector<16x32xf32>
    %239 = math.exp %238 : vector<16x32xf32>
    %cst_118 = arith.constant 1.000000e+00 : f32
    %240 = vector.broadcast %cst_118 : f32 to vector<16x32xf32>
    %241 = arith.addf %240, %239 : vector<16x32xf32>
    %242 = arith.divf %240, %241 : vector<16x32xf32>
    %243 = vector.extract_strided_slice %236 {offsets = [0, 32], sizes = [16, 32], strides = [1, 1]} : vector<16x128xf32> to vector<16x32xf32>
    %244 = arith.negf %243 : vector<16x32xf32>
    %245 = math.exp %244 : vector<16x32xf32>
    %cst_119 = arith.constant 1.000000e+00 : f32
    %246 = vector.broadcast %cst_119 : f32 to vector<16x32xf32>
    %247 = arith.addf %246, %245 : vector<16x32xf32>
    %248 = arith.divf %246, %247 : vector<16x32xf32>
    %249 = vector.extract_strided_slice %236 {offsets = [0, 64], sizes = [16, 32], strides = [1, 1]} : vector<16x128xf32> to vector<16x32xf32>
    %250 = math.tanh %249 : vector<16x32xf32>
    %251 = vector.extract_strided_slice %236 {offsets = [0, 96], sizes = [16, 32], strides = [1, 1]} : vector<16x128xf32> to vector<16x32xf32>
    %252 = arith.negf %251 : vector<16x32xf32>
    %253 = math.exp %252 : vector<16x32xf32>
    %cst_120 = arith.constant 1.000000e+00 : f32
    %254 = vector.broadcast %cst_120 : f32 to vector<16x32xf32>
    %255 = arith.addf %254, %253 : vector<16x32xf32>
    %256 = arith.divf %254, %255 : vector<16x32xf32>
    %257 = arith.mulf %248, %229 : vector<16x32xf32>
    %258 = arith.mulf %242, %250 : vector<16x32xf32>
    %259 = arith.addf %257, %258 : vector<16x32xf32>
    %260 = math.tanh %259 : vector<16x32xf32>
    %261 = arith.mulf %256, %260 : vector<16x32xf32>
    %262 = arith.select %222, %261, %227 : vector<16x32xf32>
    %263 = arith.select %222, %259, %229 : vector<16x32xf32>
    %c0_121 = arith.constant 0 : index
    %c0_122 = arith.constant 0 : index
    %c0_123 = arith.constant 0 : index
    %264 = vector.load %arg12[%c0_121, %c0_122, %c0_123] : memref<2x16x32xf32, #tpu.memory_space<vmem>>, vector<1x16x32xf32>
    %265 = vector.shape_cast %264 : vector<1x16x32xf32> to vector<16x32xf32>
    %266 = vector.shape_cast %262 : vector<16x32xf32> to vector<1x16x32xf32>
    tpu.vector_store %arg12[%c0_121, %c0_122, %c0_123], %266 {strides = array<i32>} : memref<2x16x32xf32, #tpu.memory_space<vmem>>, vector<1x16x32xf32>,
    %c0_124 = arith.constant 0 : index
    %c0_125 = arith.constant 0 : index
    %c0_126 = arith.constant 0 : index
    %267 = vector.load %arg13[%c0_124, %c0_125, %c0_126] : memref<2x16x32xf32, #tpu.memory_space<vmem>>, vector<1x16x32xf32>
    %268 = vector.shape_cast %267 : vector<1x16x32xf32> to vector<16x32xf32>
    %269 = vector.shape_cast %263 : vector<16x32xf32> to vector<1x16x32xf32>
    tpu.vector_store %arg13[%c0_124, %c0_125, %c0_126], %269 {strides = array<i32>} : memref<2x16x32xf32, #tpu.memory_space<vmem>>, vector<1x16x32xf32>,
    %270 = arith.extf %225 : vector<16x32xbf16> to vector<16x32xf32>
    %271 = arith.addf %262, %270 : vector<16x32xf32>
    %c1_127 = arith.constant 1 : index
    %c0_128 = arith.constant 0 : index
    %c0_129 = arith.constant 0 : index
    %272 = vector.load %arg12[%c1_127, %c0_128, %c0_129] : memref<2x16x32xf32, #tpu.memory_space<vmem>>, vector<1x16x32xf32>
    %273 = vector.shape_cast %272 : vector<1x16x32xf32> to vector<16x32xf32>
    %c1_130 = arith.constant 1 : index
    %c0_131 = arith.constant 0 : index
    %c0_132 = arith.constant 0 : index
    %274 = vector.load %arg13[%c1_130, %c0_131, %c0_132] : memref<2x16x32xf32, #tpu.memory_space<vmem>>, vector<1x16x32xf32>
    %275 = vector.shape_cast %274 : vector<1x16x32xf32> to vector<16x32xf32>
    %276 = arith.truncf %271 : vector<16x32xf32> to vector<16x32xbf16>
    %c0_133 = arith.constant 0 : index
    %c0_134 = arith.constant 0 : index
    %c0_135 = arith.constant 0 : index
    %277 = vector.load %arg6[%c0_133, %c0_134, %c0_135] : memref<1x32x128xbf16, #tpu.memory_space<vmem>>, vector<1x32x128xbf16>
    %278 = vector.shape_cast %277 : vector<1x32x128xbf16> to vector<32x128xbf16>
    %cst_136 = arith.constant dense<0.000000e+00> : vector<16x128xf32>
    %279 = tpu.matmul %276, %278, %cst_136 {dimension_numbers = #tpu.dot_dimension_numbers<[1], [0], [0], [1], [0, 0, 1, 1], [], []>} : vector<16x32xbf16>, vector<32x128xbf16>, vector<16x128xf32> -> vector<16x128xf32>
    %280 = arith.truncf %273 : vector<16x32xf32> to vector<16x32xbf16>
    %c0_137 = arith.constant 0 : index
    %c0_138 = arith.constant 0 : index
    %c0_139 = arith.constant 0 : index
    %281 = vector.load %arg7[%c0_137, %c0_138, %c0_139] : memref<1x32x128xbf16, #tpu.memory_space<vmem>>, vector<1x32x128xbf16>
    %282 = vector.shape_cast %281 : vector<1x32x128xbf16> to vector<32x128xbf16>
    %cst_140 = arith.constant dense<0.000000e+00> : vector<16x128xf32>
    %283 = tpu.matmul %280, %282, %cst_140 {dimension_numbers = #tpu.dot_dimension_numbers<[1], [0], [0], [1], [0, 0, 1, 1], [], []>} : vector<16x32xbf16>, vector<32x128xbf16>, vector<16x128xf32> -> vector<16x128xf32>
    %284 = arith.addf %279, %283 : vector<16x128xf32>
    %285 = arith.addf %284, %9 : vector<16x128xf32>
    %286 = vector.extract_strided_slice %285 {offsets = [0, 0], sizes = [16, 32], strides = [1, 1]} : vector<16x128xf32> to vector<16x32xf32>
    %287 = arith.negf %286 : vector<16x32xf32>
    %288 = math.exp %287 : vector<16x32xf32>
    %cst_141 = arith.constant 1.000000e+00 : f32
    %289 = vector.broadcast %cst_141 : f32 to vector<16x32xf32>
    %290 = arith.addf %289, %288 : vector<16x32xf32>
    %291 = arith.divf %289, %290 : vector<16x32xf32>
    %292 = vector.extract_strided_slice %285 {offsets = [0, 32], sizes = [16, 32], strides = [1, 1]} : vector<16x128xf32> to vector<16x32xf32>
    %293 = arith.negf %292 : vector<16x32xf32>
    %294 = math.exp %293 : vector<16x32xf32>
    %cst_142 = arith.constant 1.000000e+00 : f32
    %295 = vector.broadcast %cst_142 : f32 to vector<16x32xf32>
    %296 = arith.addf %295, %294 : vector<16x32xf32>
    %297 = arith.divf %295, %296 : vector<16x32xf32>
    %298 = vector.extract_strided_slice %285 {offsets = [0, 64], sizes = [16, 32], strides = [1, 1]} : vector<16x128xf32> to vector<16x32xf32>
    %299 = math.tanh %298 : vector<16x32xf32>
    %300 = vector.extract_strided_slice %285 {offsets = [0, 96], sizes = [16, 32], strides = [1, 1]} : vector<16x128xf32> to vector<16x32xf32>
    %301 = arith.negf %300 : vector<16x32xf32>
    %302 = math.exp %301 : vector<16x32xf32>
    %cst_143 = arith.constant 1.000000e+00 : f32
    %303 = vector.broadcast %cst_143 : f32 to vector<16x32xf32>
    %304 = arith.addf %303, %302 : vector<16x32xf32>
    %305 = arith.divf %303, %304 : vector<16x32xf32>
    %306 = arith.mulf %297, %275 : vector<16x32xf32>
    %307 = arith.mulf %291, %299 : vector<16x32xf32>
    %308 = arith.addf %306, %307 : vector<16x32xf32>
    %309 = math.tanh %308 : vector<16x32xf32>
    %310 = arith.mulf %305, %309 : vector<16x32xf32>
    %311 = arith.select %222, %310, %273 : vector<16x32xf32>
    %312 = arith.select %222, %308, %275 : vector<16x32xf32>
    %c1_144 = arith.constant 1 : index
    %c0_145 = arith.constant 0 : index
    %c0_146 = arith.constant 0 : index
    %313 = vector.load %arg12[%c1_144, %c0_145, %c0_146] : memref<2x16x32xf32, #tpu.memory_space<vmem>>, vector<1x16x32xf32>
    %314 = vector.shape_cast %313 : vector<1x16x32xf32> to vector<16x32xf32>
    %315 = vector.shape_cast %311 : vector<16x32xf32> to vector<1x16x32xf32>
    tpu.vector_store %arg12[%c1_144, %c0_145, %c0_146], %315 {strides = array<i32>} : memref<2x16x32xf32, #tpu.memory_space<vmem>>, vector<1x16x32xf32>,
    %c1_147 = arith.constant 1 : index
    %c0_148 = arith.constant 0 : index
    %c0_149 = arith.constant 0 : index
    %316 = vector.load %arg13[%c1_147, %c0_148, %c0_149] : memref<2x16x32xf32, #tpu.memory_space<vmem>>, vector<1x16x32xf32>
    %317 = vector.shape_cast %316 : vector<1x16x32xf32> to vector<16x32xf32>
    %318 = vector.shape_cast %312 : vector<16x32xf32> to vector<1x16x32xf32>
    tpu.vector_store %arg13[%c1_147, %c0_148, %c0_149], %318 {strides = array<i32>} : memref<2x16x32xf32, #tpu.memory_space<vmem>>, vector<1x16x32xf32>,
    %319 = arith.addf %311, %271 : vector<16x32xf32>
    %320 = arith.truncf %319 : vector<16x32xf32> to vector<16x32xbf16>
    %321 = arith.index_cast %c2_i32 : i32 to index
    %c0_150 = arith.constant 0 : index
    %c0_151 = arith.constant 0 : index
    %322 = vector.load %arg11[%321, %c0_150, %c0_151] : memref<3x16x32xbf16, #tpu.memory_space<vmem>>, vector<1x16x32xbf16>
    %323 = vector.shape_cast %322 : vector<1x16x32xbf16> to vector<16x32xbf16>
    %324 = vector.shape_cast %320 : vector<16x32xbf16> to vector<1x16x32xbf16>
    tpu.vector_store %arg11[%321, %c0_150, %c0_151], %324 {strides = array<i32>} : memref<3x16x32xbf16, #tpu.memory_space<vmem>>, vector<1x16x32xbf16>,
    %c3_i32_152 = arith.constant 3 : i32
    return
  }
  func.func @transform_0(%arg0: i32, %arg1: i32) -> (i32, i32, i32) {
    %c0_i32 = arith.constant 0 : i32
    %c0_i32_0 = arith.constant 0 : i32
    return %arg1, %arg0, %c0_i32 : i32, i32, i32
  }
  func.func @transform_1(%arg0: i32, %arg1: i32) -> (i32, i32) {
    %c0_i32 = arith.constant 0 : i32
    %c0_i32_0 = arith.constant 0 : i32
    %c0_i32_1 = arith.constant 0 : i32
    return %c0_i32, %c0_i32_0 : i32, i32
  }
  func.func @transform_2(%arg0: i32, %arg1: i32) -> (i32, i32) {
    %c0_i32 = arith.constant 0 : i32
    %c0_i32_0 = arith.constant 0 : i32
    %c0_i32_1 = arith.constant 0 : i32
    return %c0_i32, %c0_i32_0 : i32, i32
  }
  func.func @transform_3(%arg0: i32, %arg1: i32) -> (i32, i32) {
    %c0_i32 = arith.constant 0 : i32
    %c0_i32_0 = arith.constant 0 : i32
    %c0_i32_1 = arith.constant 0 : i32
    return %c0_i32, %c0_i32_0 : i32, i32
  }
  func.func @transform_4(%arg0: i32, %arg1: i32) -> (i32, i32, i32) {
    %c0_i32 = arith.constant 0 : i32
    %c0_i32_0 = arith.constant 0 : i32
    %c0_i32_1 = arith.constant 0 : i32
    %c0_i32_2 = arith.constant 0 : i32
    return %c0_i32, %c0_i32_0, %c0_i32_1 : i32, i32, i32
  }
  func.func @transform_5(%arg0: i32, %arg1: i32) -> (i32, i32, i32) {
    %c0_i32 = arith.constant 0 : i32
    %c0_i32_0 = arith.constant 0 : i32
    %c0_i32_1 = arith.constant 0 : i32
    %c0_i32_2 = arith.constant 0 : i32
    return %c0_i32, %c0_i32_0, %c0_i32_1 : i32, i32, i32
  }
  func.func @transform_6(%arg0: i32, %arg1: i32) -> (i32, i32, i32) {
    %c0_i32 = arith.constant 0 : i32
    %c0_i32_0 = arith.constant 0 : i32
    %c0_i32_1 = arith.constant 0 : i32
    %c0_i32_2 = arith.constant 0 : i32
    return %c0_i32, %c0_i32_0, %c0_i32_1 : i32, i32, i32
  }
  func.func @transform_7(%arg0: i32, %arg1: i32) -> (i32, i32, i32) {
    %c0_i32 = arith.constant 0 : i32
    %c0_i32_0 = arith.constant 0 : i32
    %c0_i32_1 = arith.constant 0 : i32
    return %c0_i32, %arg0, %c0_i32_0 : i32, i32, i32
  }
  func.func @transform_8(%arg0: i32, %arg1: i32) -> (i32, i32, i32) {
    %c0_i32 = arith.constant 0 : i32
    %c0_i32_0 = arith.constant 0 : i32
    %c0_i32_1 = arith.constant 0 : i32
    return %c0_i32, %arg0, %c0_i32_0 : i32, i32, i32
  }
  func.func @transform_9(%arg0: i32, %arg1: i32) -> (i32, i32, i32) {
    %c0_i32 = arith.constant 0 : i32
    %c0_i32_0 = arith.constant 0 : i32
    return %arg1, %arg0, %c0_i32 : i32, i32, i32
  }
  func.func @transform_10(%arg0: i32, %arg1: i32) -> (i32, i32, i32) {
    %c0_i32 = arith.constant 0 : i32
    %c0_i32_0 = arith.constant 0 : i32
    %c0_i32_1 = arith.constant 0 : i32
    return %c0_i32, %arg0, %c0_i32_0 : i32, i32, i32
  }
  func.func @transform_11(%arg0: i32, %arg1: i32) -> (i32, i32, i32) {
    %c0_i32 = arith.constant 0 : i32
    %c0_i32_0 = arith.constant 0 : i32
    %c0_i32_1 = arith.constant 0 : i32
    return %c0_i32, %arg0, %c0_i32_0 : i32, i32, i32
  }
}

module attributes {stable_mosaic.version = 11 : i64} {
  func.func @_lstm_recurrent_kernel(%arg0: i32, %arg1: i32, %arg2: memref<3x16x32xbf16, #tpu.memory_space<vmem>>, %arg3: memref<32x128xbf16, #tpu.memory_space<vmem>>, %arg4: memref<32x128xbf16, #tpu.memory_space<vmem>>, %arg5: memref<1x128xf32, #tpu.memory_space<vmem>>, %arg6: memref<1x32x128xbf16, #tpu.memory_space<vmem>>, %arg7: memref<1x32x128xbf16, #tpu.memory_space<vmem>>, %arg8: memref<1x1x128xf32, #tpu.memory_space<vmem>>, %arg9: memref<2x16x32xf32, #tpu.memory_space<vmem>>, %arg10: memref<2x16x32xf32, #tpu.memory_space<vmem>>, %arg11: memref<3x16x32xbf16, #tpu.memory_space<vmem>>, %arg12: memref<2x16x32xf32, #tpu.memory_space<vmem>>, %arg13: memref<2x16x32xf32, #tpu.memory_space<vmem>>) attributes {dimension_semantics = [#tpu.dimension_semantics<parallel>, #tpu.dimension_semantics<arbitrary>], iteration_bounds = array<i64: 2, 3>, scalar_prefetch = 0 : i64, scratch_operands = 0 : i64, tpu.core_type = #tpu.core_type<tc>, window_params = [{transform_indices = @transform_0, window_bounds = array<i64: 3, 16, 32>}, {pipeline_mode = #tpu.pipeline_mode<synchronous>, transform_indices = @transform_1, window_bounds = array<i64: 32, 128>}, {pipeline_mode = #tpu.pipeline_mode<synchronous>, transform_indices = @transform_2, window_bounds = array<i64: 32, 128>}, {pipeline_mode = #tpu.pipeline_mode<synchronous>, transform_indices = @transform_3, window_bounds = array<i64: 1, 128>}, {pipeline_mode = #tpu.pipeline_mode<synchronous>, transform_indices = @transform_4, window_bounds = array<i64: 1, 32, 128>}, {pipeline_mode = #tpu.pipeline_mode<synchronous>, transform_indices = @transform_5, window_bounds = array<i64: 1, 32, 128>}, {pipeline_mode = #tpu.pipeline_mode<synchronous>, transform_indices = @transform_6, window_bounds = array<i64: 1, 1, 128>}, {transform_indices = @transform_7, window_bounds = array<i64: 2, 16, 32>}, {transform_indices = @transform_8, window_bounds = array<i64: 2, 16, 32>}, {transform_indices = @transform_9, window_bounds = array<i64: 3, 16, 32>}, {transform_indices = @transform_10, window_bounds = array<i64: 2, 16, 32>}, {transform_indices = @transform_11, window_bounds = array<i64: 2, 16, 32>}]} {
    %c0_i32 = arith.constant 0 : i32
    %0 = arith.cmpi eq, %arg1, %c0_i32 : i32
    %1 = arith.extui %0 : i1 to i32
    %c0_i32_0 = arith.constant 0 : i32
    %2 = arith.cmpi ne, %1, %c0_i32_0 : i32
    scf.if %2 {
      %c0_153 = arith.constant 0 : index
      %c0_154 = arith.constant 0 : index
      %c0_155 = arith.constant 0 : index
      %325 = vector.load %arg9[%c0_153, %c0_154, %c0_155] : memref<2x16x32xf32, #tpu.memory_space<vmem>>, vector<2x16x32xf32>
      %c0_156 = arith.constant 0 : index
      %c0_157 = arith.constant 0 : index
      %c0_158 = arith.constant 0 : index
      %326 = vector.load %arg12[%c0_156, %c0_157, %c0_158] : memref<2x16x32xf32, #tpu.memory_space<vmem>>, vector<2x16x32xf32>
      tpu.vector_store %arg12[%c0_156, %c0_157, %c0_158], %325 {strides = array<i32>} : memref<2x16x32xf32, #tpu.memory_space<vmem>>, vector<2x16x32xf32>,
      %c0_159 = arith.constant 0 : index
      %c0_160 = arith.constant 0 : index
      %c0_161 = arith.constant 0 : index
      %327 = vector.load %arg10[%c0_159, %c0_160, %c0_161] : memref<2x16x32xf32, #tpu.memory_space<vmem>>, vector<2x16x32xf32>
      %c0_162 = arith.constant 0 : index
      %c0_163 = arith.constant 0 : index
      %c0_164 = arith.constant 0 : index
      %328 = vector.load %arg13[%c0_162, %c0_163, %c0_164] : memref<2x16x32xf32, #tpu.memory_space<vmem>>, vector<2x16x32xf32>
      tpu.vector_store %arg13[%c0_162, %c0_163, %c0_164], %327 {strides = array<i32>} : memref<2x16x32xf32, #tpu.memory_space<vmem>>, vector<2x16x32xf32>,
    } else {
    }
    %c0 = arith.constant 0 : index
    %c0_1 = arith.constant 0 : index
    %3 = vector.load %arg5[%c0, %c0_1] : memref<1x128xf32, #tpu.memory_space<vmem>>, vector<1x128xf32>
    %4 = vector.shape_cast %3 : vector<1x128xf32> to vector<1x128xf32>
    %5 = vector.broadcast %4 : vector<1x128xf32> to vector<16x128xf32>
    %c0_2 = arith.constant 0 : index
    %c0_3 = arith.constant 0 : index
    %c0_4 = arith.constant 0 : index
    %6 = vector.load %arg8[%c0_2, %c0_3, %c0_4] : memref<1x1x128xf32, #tpu.memory_space<vmem>>, vector<1x1x128xf32>
    %7 = vector.shape_cast %6 : vector<1x1x128xf32> to vector<1x128xf32>
    %8 = vector.shape_cast %7 : vector<1x128xf32> to vector<1x128xf32>
    %9 = vector.broadcast %8 : vector<1x128xf32> to vector<16x128xf32>
    %c0_i32_5 = arith.constant 0 : i32
    %c3_i32 = arith.constant 3 : i32
    %10 = arith.muli %arg1, %c3_i32 : i32
    %11 = arith.addi %10, %c0_i32_5 : i32
    %c8_i32 = arith.constant 8 : i32
    %12 = arith.cmpi slt, %11, %c8_i32 : i32
    %13 = arith.index_cast %c0_i32_5 : i32 to index
    %c0_6 = arith.constant 0 : index
    %c0_7 = arith.constant 0 : index
    %14 = vector.load %arg2[%13, %c0_6, %c0_7] : memref<3x16x32xbf16, #tpu.memory_space<vmem>>, vector<1x16x32xbf16>
    %15 = vector.shape_cast %14 : vector<1x16x32xbf16> to vector<16x32xbf16>
    %c0_8 = arith.constant 0 : index
    %c0_9 = arith.constant 0 : index
    %c0_10 = arith.constant 0 : index
    %16 = vector.load %arg12[%c0_8, %c0_9, %c0_10] : memref<2x16x32xf32, #tpu.memory_space<vmem>>, vector<1x16x32xf32>
    %17 = vector.shape_cast %16 : vector<1x16x32xf32> to vector<16x32xf32>
    %c0_11 = arith.constant 0 : index
    %c0_12 = arith.constant 0 : index
    %c0_13 = arith.constant 0 : index
    %18 = vector.load %arg13[%c0_11, %c0_12, %c0_13] : memref<2x16x32xf32, #tpu.memory_space<vmem>>, vector<1x16x32xf32>
    %19 = vector.shape_cast %18 : vector<1x16x32xf32> to vector<16x32xf32>
    %c0_14 = arith.constant 0 : index
    %c0_15 = arith.constant 0 : index
    %20 = vector.load %arg3[%c0_14, %c0_15] : memref<32x128xbf16, #tpu.memory_space<vmem>>, vector<32x128xbf16>
    %cst = arith.constant dense<0.000000e+00> : vector<16x128xf32>
    %21 = tpu.matmul %15, %20, %cst {dimension_numbers = #tpu.dot_dimension_numbers<[1], [0], [0], [1], [0, 0, 1, 1], [], []>} : vector<16x32xbf16>, vector<32x128xbf16>, vector<16x128xf32> -> vector<16x128xf32>
    %22 = arith.truncf %17 : vector<16x32xf32> to vector<16x32xbf16>
    %c0_16 = arith.constant 0 : index
    %c0_17 = arith.constant 0 : index
    %23 = vector.load %arg4[%c0_16, %c0_17] : memref<32x128xbf16, #tpu.memory_space<vmem>>, vector<32x128xbf16>
    %cst_18 = arith.constant dense<0.000000e+00> : vector<16x128xf32>
    %24 = tpu.matmul %22, %23, %cst_18 {dimension_numbers = #tpu.dot_dimension_numbers<[1], [0], [0], [1], [0, 0, 1, 1], [], []>} : vector<16x32xbf16>, vector<32x128xbf16>, vector<16x128xf32> -> vector<16x128xf32>
    %25 = arith.addf %21, %24 : vector<16x128xf32>
    %26 = arith.addf %25, %5 : vector<16x128xf32>
    %27 = vector.extract_strided_slice %26 {offsets = [0, 0], sizes = [16, 32], strides = [1, 1]} : vector<16x128xf32> to vector<16x32xf32>
    %28 = arith.negf %27 : vector<16x32xf32>
    %29 = math.exp %28 : vector<16x32xf32>
    %cst_19 = arith.constant 1.000000e+00 : f32
    %30 = vector.broadcast %cst_19 : f32 to vector<16x32xf32>
    %31 = arith.addf %30, %29 : vector<16x32xf32>
    %32 = arith.divf %30, %31 : vector<16x32xf32>
    %33 = vector.extract_strided_slice %26 {offsets = [0, 32], sizes = [16, 32], strides = [1, 1]} : vector<16x128xf32> to vector<16x32xf32>
    %34 = arith.negf %33 : vector<16x32xf32>
    %35 = math.exp %34 : vector<16x32xf32>
    %cst_20 = arith.constant 1.000000e+00 : f32
    %36 = vector.broadcast %cst_20 : f32 to vector<16x32xf32>
    %37 = arith.addf %36, %35 : vector<16x32xf32>
    %38 = arith.divf %36, %37 : vector<16x32xf32>
    %39 = vector.extract_strided_slice %26 {offsets = [0, 64], sizes = [16, 32], strides = [1, 1]} : vector<16x128xf32> to vector<16x32xf32>
    %40 = math.tanh %39 : vector<16x32xf32>
    %41 = vector.extract_strided_slice %26 {offsets = [0, 96], sizes = [16, 32], strides = [1, 1]} : vector<16x128xf32> to vector<16x32xf32>
    %42 = arith.negf %41 : vector<16x32xf32>
    %43 = math.exp %42 : vector<16x32xf32>
    %cst_21 = arith.constant 1.000000e+00 : f32
    %44 = vector.broadcast %cst_21 : f32 to vector<16x32xf32>
    %45 = arith.addf %44, %43 : vector<16x32xf32>
    %46 = arith.divf %44, %45 : vector<16x32xf32>
    %47 = arith.mulf %38, %19 : vector<16x32xf32>
    %48 = arith.mulf %32, %40 : vector<16x32xf32>
    %49 = arith.addf %47, %48 : vector<16x32xf32>
    %50 = math.tanh %49 : vector<16x32xf32>
    %51 = arith.mulf %46, %50 : vector<16x32xf32>
    %52 = arith.select %12, %51, %17 : vector<16x32xf32>
    %53 = arith.select %12, %49, %19 : vector<16x32xf32>
    %c0_22 = arith.constant 0 : index
    %c0_23 = arith.constant 0 : index
    %c0_24 = arith.constant 0 : index
    %54 = vector.load %arg12[%c0_22, %c0_23, %c0_24] : memref<2x16x32xf32, #tpu.memory_space<vmem>>, vector<1x16x32xf32>
    %55 = vector.shape_cast %54 : vector<1x16x32xf32> to vector<16x32xf32>
    %56 = vector.shape_cast %52 : vector<16x32xf32> to vector<1x16x32xf32>
    tpu.vector_store %arg12[%c0_22, %c0_23, %c0_24], %56 {strides = array<i32>} : memref<2x16x32xf32, #tpu.memory_space<vmem>>, vector<1x16x32xf32>,
    %c0_25 = arith.constant 0 : index
    %c0_26 = arith.constant 0 : index
    %c0_27 = arith.constant 0 : index
    %57 = vector.load %arg13[%c0_25, %c0_26, %c0_27] : memref<2x16x32xf32, #tpu.memory_space<vmem>>, vector<1x16x32xf32>
    %58 = vector.shape_cast %57 : vector<1x16x32xf32> to vector<16x32xf32>
    %59 = vector.shape_cast %53 : vector<16x32xf32> to vector<1x16x32xf32>
    tpu.vector_store %arg13[%c0_25, %c0_26, %c0_27], %59 {strides = array<i32>} : memref<2x16x32xf32, #tpu.memory_space<vmem>>, vector<1x16x32xf32>,
    %60 = arith.extf %15 : vector<16x32xbf16> to vector<16x32xf32>
    %61 = arith.addf %52, %60 : vector<16x32xf32>
    %c1 = arith.constant 1 : index
    %c0_28 = arith.constant 0 : index
    %c0_29 = arith.constant 0 : index
    %62 = vector.load %arg12[%c1, %c0_28, %c0_29] : memref<2x16x32xf32, #tpu.memory_space<vmem>>, vector<1x16x32xf32>
    %63 = vector.shape_cast %62 : vector<1x16x32xf32> to vector<16x32xf32>
    %c1_30 = arith.constant 1 : index
    %c0_31 = arith.constant 0 : index
    %c0_32 = arith.constant 0 : index
    %64 = vector.load %arg13[%c1_30, %c0_31, %c0_32] : memref<2x16x32xf32, #tpu.memory_space<vmem>>, vector<1x16x32xf32>
    %65 = vector.shape_cast %64 : vector<1x16x32xf32> to vector<16x32xf32>
    %66 = arith.truncf %61 : vector<16x32xf32> to vector<16x32xbf16>
    %c0_33 = arith.constant 0 : index
    %c0_34 = arith.constant 0 : index
    %c0_35 = arith.constant 0 : index
    %67 = vector.load %arg6[%c0_33, %c0_34, %c0_35] : memref<1x32x128xbf16, #tpu.memory_space<vmem>>, vector<1x32x128xbf16>
    %68 = vector.shape_cast %67 : vector<1x32x128xbf16> to vector<32x128xbf16>
    %cst_36 = arith.constant dense<0.000000e+00> : vector<16x128xf32>
    %69 = tpu.matmul %66, %68, %cst_36 {dimension_numbers = #tpu.dot_dimension_numbers<[1], [0], [0], [1], [0, 0, 1, 1], [], []>} : vector<16x32xbf16>, vector<32x128xbf16>, vector<16x128xf32> -> vector<16x128xf32>
    %70 = arith.truncf %63 : vector<16x32xf32> to vector<16x32xbf16>
    %c0_37 = arith.constant 0 : index
    %c0_38 = arith.constant 0 : index
    %c0_39 = arith.constant 0 : index
    %71 = vector.load %arg7[%c0_37, %c0_38, %c0_39] : memref<1x32x128xbf16, #tpu.memory_space<vmem>>, vector<1x32x128xbf16>
    %72 = vector.shape_cast %71 : vector<1x32x128xbf16> to vector<32x128xbf16>
    %cst_40 = arith.constant dense<0.000000e+00> : vector<16x128xf32>
    %73 = tpu.matmul %70, %72, %cst_40 {dimension_numbers = #tpu.dot_dimension_numbers<[1], [0], [0], [1], [0, 0, 1, 1], [], []>} : vector<16x32xbf16>, vector<32x128xbf16>, vector<16x128xf32> -> vector<16x128xf32>
    %74 = arith.addf %69, %73 : vector<16x128xf32>
    %75 = arith.addf %74, %9 : vector<16x128xf32>
    %76 = vector.extract_strided_slice %75 {offsets = [0, 0], sizes = [16, 32], strides = [1, 1]} : vector<16x128xf32> to vector<16x32xf32>
    %77 = arith.negf %76 : vector<16x32xf32>
    %78 = math.exp %77 : vector<16x32xf32>
    %cst_41 = arith.constant 1.000000e+00 : f32
    %79 = vector.broadcast %cst_41 : f32 to vector<16x32xf32>
    %80 = arith.addf %79, %78 : vector<16x32xf32>
    %81 = arith.divf %79, %80 : vector<16x32xf32>
    %82 = vector.extract_strided_slice %75 {offsets = [0, 32], sizes = [16, 32], strides = [1, 1]} : vector<16x128xf32> to vector<16x32xf32>
    %83 = arith.negf %82 : vector<16x32xf32>
    %84 = math.exp %83 : vector<16x32xf32>
    %cst_42 = arith.constant 1.000000e+00 : f32
    %85 = vector.broadcast %cst_42 : f32 to vector<16x32xf32>
    %86 = arith.addf %85, %84 : vector<16x32xf32>
    %87 = arith.divf %85, %86 : vector<16x32xf32>
    %88 = vector.extract_strided_slice %75 {offsets = [0, 64], sizes = [16, 32], strides = [1, 1]} : vector<16x128xf32> to vector<16x32xf32>
    %89 = math.tanh %88 : vector<16x32xf32>
    %90 = vector.extract_strided_slice %75 {offsets = [0, 96], sizes = [16, 32], strides = [1, 1]} : vector<16x128xf32> to vector<16x32xf32>
    %91 = arith.negf %90 : vector<16x32xf32>
    %92 = math.exp %91 : vector<16x32xf32>
    %cst_43 = arith.constant 1.000000e+00 : f32
    %93 = vector.broadcast %cst_43 : f32 to vector<16x32xf32>
    %94 = arith.addf %93, %92 : vector<16x32xf32>
    %95 = arith.divf %93, %94 : vector<16x32xf32>
    %96 = arith.mulf %87, %65 : vector<16x32xf32>
    %97 = arith.mulf %81, %89 : vector<16x32xf32>
    %98 = arith.addf %96, %97 : vector<16x32xf32>
    %99 = math.tanh %98 : vector<16x32xf32>
    %100 = arith.mulf %95, %99 : vector<16x32xf32>
    %101 = arith.select %12, %100, %63 : vector<16x32xf32>
    %102 = arith.select %12, %98, %65 : vector<16x32xf32>
    %c1_44 = arith.constant 1 : index
    %c0_45 = arith.constant 0 : index
    %c0_46 = arith.constant 0 : index
    %103 = vector.load %arg12[%c1_44, %c0_45, %c0_46] : memref<2x16x32xf32, #tpu.memory_space<vmem>>, vector<1x16x32xf32>
    %104 = vector.shape_cast %103 : vector<1x16x32xf32> to vector<16x32xf32>
    %105 = vector.shape_cast %101 : vector<16x32xf32> to vector<1x16x32xf32>
    tpu.vector_store %arg12[%c1_44, %c0_45, %c0_46], %105 {strides = array<i32>} : memref<2x16x32xf32, #tpu.memory_space<vmem>>, vector<1x16x32xf32>,
    %c1_47 = arith.constant 1 : index
    %c0_48 = arith.constant 0 : index
    %c0_49 = arith.constant 0 : index
    %106 = vector.load %arg13[%c1_47, %c0_48, %c0_49] : memref<2x16x32xf32, #tpu.memory_space<vmem>>, vector<1x16x32xf32>
    %107 = vector.shape_cast %106 : vector<1x16x32xf32> to vector<16x32xf32>
    %108 = vector.shape_cast %102 : vector<16x32xf32> to vector<1x16x32xf32>
    tpu.vector_store %arg13[%c1_47, %c0_48, %c0_49], %108 {strides = array<i32>} : memref<2x16x32xf32, #tpu.memory_space<vmem>>, vector<1x16x32xf32>,
    %109 = arith.addf %101, %61 : vector<16x32xf32>
    %110 = arith.truncf %109 : vector<16x32xf32> to vector<16x32xbf16>
    %111 = arith.index_cast %c0_i32_5 : i32 to index
    %c0_50 = arith.constant 0 : index
    %c0_51 = arith.constant 0 : index
    %112 = vector.load %arg11[%111, %c0_50, %c0_51] : memref<3x16x32xbf16, #tpu.memory_space<vmem>>, vector<1x16x32xbf16>
    %113 = vector.shape_cast %112 : vector<1x16x32xbf16> to vector<16x32xbf16>
    %114 = vector.shape_cast %110 : vector<16x32xbf16> to vector<1x16x32xbf16>
    tpu.vector_store %arg11[%111, %c0_50, %c0_51], %114 {strides = array<i32>} : memref<3x16x32xbf16, #tpu.memory_space<vmem>>, vector<1x16x32xbf16>,
    %c1_i32 = arith.constant 1 : i32
    %c3_i32_52 = arith.constant 3 : i32
    %115 = arith.muli %arg1, %c3_i32_52 : i32
    %116 = arith.addi %115, %c1_i32 : i32
    %c8_i32_53 = arith.constant 8 : i32
    %117 = arith.cmpi slt, %116, %c8_i32_53 : i32
    %118 = arith.index_cast %c1_i32 : i32 to index
    %c0_54 = arith.constant 0 : index
    %c0_55 = arith.constant 0 : index
    %119 = vector.load %arg2[%118, %c0_54, %c0_55] : memref<3x16x32xbf16, #tpu.memory_space<vmem>>, vector<1x16x32xbf16>
    %120 = vector.shape_cast %119 : vector<1x16x32xbf16> to vector<16x32xbf16>
    %c0_56 = arith.constant 0 : index
    %c0_57 = arith.constant 0 : index
    %c0_58 = arith.constant 0 : index
    %121 = vector.load %arg12[%c0_56, %c0_57, %c0_58] : memref<2x16x32xf32, #tpu.memory_space<vmem>>, vector<1x16x32xf32>
    %122 = vector.shape_cast %121 : vector<1x16x32xf32> to vector<16x32xf32>
    %c0_59 = arith.constant 0 : index
    %c0_60 = arith.constant 0 : index
    %c0_61 = arith.constant 0 : index
    %123 = vector.load %arg13[%c0_59, %c0_60, %c0_61] : memref<2x16x32xf32, #tpu.memory_space<vmem>>, vector<1x16x32xf32>
    %124 = vector.shape_cast %123 : vector<1x16x32xf32> to vector<16x32xf32>
    %c0_62 = arith.constant 0 : index
    %c0_63 = arith.constant 0 : index
    %125 = vector.load %arg3[%c0_62, %c0_63] : memref<32x128xbf16, #tpu.memory_space<vmem>>, vector<32x128xbf16>
    %cst_64 = arith.constant dense<0.000000e+00> : vector<16x128xf32>
    %126 = tpu.matmul %120, %125, %cst_64 {dimension_numbers = #tpu.dot_dimension_numbers<[1], [0], [0], [1], [0, 0, 1, 1], [], []>} : vector<16x32xbf16>, vector<32x128xbf16>, vector<16x128xf32> -> vector<16x128xf32>
    %127 = arith.truncf %122 : vector<16x32xf32> to vector<16x32xbf16>
    %c0_65 = arith.constant 0 : index
    %c0_66 = arith.constant 0 : index
    %128 = vector.load %arg4[%c0_65, %c0_66] : memref<32x128xbf16, #tpu.memory_space<vmem>>, vector<32x128xbf16>
    %cst_67 = arith.constant dense<0.000000e+00> : vector<16x128xf32>
    %129 = tpu.matmul %127, %128, %cst_67 {dimension_numbers = #tpu.dot_dimension_numbers<[1], [0], [0], [1], [0, 0, 1, 1], [], []>} : vector<16x32xbf16>, vector<32x128xbf16>, vector<16x128xf32> -> vector<16x128xf32>
    %130 = arith.addf %126, %129 : vector<16x128xf32>
    %131 = arith.addf %130, %5 : vector<16x128xf32>
    %132 = vector.extract_strided_slice %131 {offsets = [0, 0], sizes = [16, 32], strides = [1, 1]} : vector<16x128xf32> to vector<16x32xf32>
    %133 = arith.negf %132 : vector<16x32xf32>
    %134 = math.exp %133 : vector<16x32xf32>
    %cst_68 = arith.constant 1.000000e+00 : f32
    %135 = vector.broadcast %cst_68 : f32 to vector<16x32xf32>
    %136 = arith.addf %135, %134 : vector<16x32xf32>
    %137 = arith.divf %135, %136 : vector<16x32xf32>
    %138 = vector.extract_strided_slice %131 {offsets = [0, 32], sizes = [16, 32], strides = [1, 1]} : vector<16x128xf32> to vector<16x32xf32>
    %139 = arith.negf %138 : vector<16x32xf32>
    %140 = math.exp %139 : vector<16x32xf32>
    %cst_69 = arith.constant 1.000000e+00 : f32
    %141 = vector.broadcast %cst_69 : f32 to vector<16x32xf32>
    %142 = arith.addf %141, %140 : vector<16x32xf32>
    %143 = arith.divf %141, %142 : vector<16x32xf32>
    %144 = vector.extract_strided_slice %131 {offsets = [0, 64], sizes = [16, 32], strides = [1, 1]} : vector<16x128xf32> to vector<16x32xf32>
    %145 = math.tanh %144 : vector<16x32xf32>
    %146 = vector.extract_strided_slice %131 {offsets = [0, 96], sizes = [16, 32], strides = [1, 1]} : vector<16x128xf32> to vector<16x32xf32>
    %147 = arith.negf %146 : vector<16x32xf32>
    %148 = math.exp %147 : vector<16x32xf32>
    %cst_70 = arith.constant 1.000000e+00 : f32
    %149 = vector.broadcast %cst_70 : f32 to vector<16x32xf32>
    %150 = arith.addf %149, %148 : vector<16x32xf32>
    %151 = arith.divf %149, %150 : vector<16x32xf32>
    %152 = arith.mulf %143, %124 : vector<16x32xf32>
    %153 = arith.mulf %137, %145 : vector<16x32xf32>
    %154 = arith.addf %152, %153 : vector<16x32xf32>
    %155 = math.tanh %154 : vector<16x32xf32>
    %156 = arith.mulf %151, %155 : vector<16x32xf32>
    %157 = arith.select %117, %156, %122 : vector<16x32xf32>
    %158 = arith.select %117, %154, %124 : vector<16x32xf32>
    %c0_71 = arith.constant 0 : index
    %c0_72 = arith.constant 0 : index
    %c0_73 = arith.constant 0 : index
    %159 = vector.load %arg12[%c0_71, %c0_72, %c0_73] : memref<2x16x32xf32, #tpu.memory_space<vmem>>, vector<1x16x32xf32>
    %160 = vector.shape_cast %159 : vector<1x16x32xf32> to vector<16x32xf32>
    %161 = vector.shape_cast %157 : vector<16x32xf32> to vector<1x16x32xf32>
    tpu.vector_store %arg12[%c0_71, %c0_72, %c0_73], %161 {strides = array<i32>} : memref<2x16x32xf32, #tpu.memory_space<vmem>>, vector<1x16x32xf32>,
    %c0_74 = arith.constant 0 : index
    %c0_75 = arith.constant 0 : index
    %c0_76 = arith.constant 0 : index
    %162 = vector.load %arg13[%c0_74, %c0_75, %c0_76] : memref<2x16x32xf32, #tpu.memory_space<vmem>>, vector<1x16x32xf32>
    %163 = vector.shape_cast %162 : vector<1x16x32xf32> to vector<16x32xf32>
    %164 = vector.shape_cast %158 : vector<16x32xf32> to vector<1x16x32xf32>
    tpu.vector_store %arg13[%c0_74, %c0_75, %c0_76], %164 {strides = array<i32>} : memref<2x16x32xf32, #tpu.memory_space<vmem>>, vector<1x16x32xf32>,
    %165 = arith.extf %120 : vector<16x32xbf16> to vector<16x32xf32>
    %166 = arith.addf %157, %165 : vector<16x32xf32>
    %c1_77 = arith.constant 1 : index
    %c0_78 = arith.constant 0 : index
    %c0_79 = arith.constant 0 : index
    %167 = vector.load %arg12[%c1_77, %c0_78, %c0_79] : memref<2x16x32xf32, #tpu.memory_space<vmem>>, vector<1x16x32xf32>
    %168 = vector.shape_cast %167 : vector<1x16x32xf32> to vector<16x32xf32>
    %c1_80 = arith.constant 1 : index
    %c0_81 = arith.constant 0 : index
    %c0_82 = arith.constant 0 : index
    %169 = vector.load %arg13[%c1_80, %c0_81, %c0_82] : memref<2x16x32xf32, #tpu.memory_space<vmem>>, vector<1x16x32xf32>
    %170 = vector.shape_cast %169 : vector<1x16x32xf32> to vector<16x32xf32>
    %171 = arith.truncf %166 : vector<16x32xf32> to vector<16x32xbf16>
    %c0_83 = arith.constant 0 : index
    %c0_84 = arith.constant 0 : index
    %c0_85 = arith.constant 0 : index
    %172 = vector.load %arg6[%c0_83, %c0_84, %c0_85] : memref<1x32x128xbf16, #tpu.memory_space<vmem>>, vector<1x32x128xbf16>
    %173 = vector.shape_cast %172 : vector<1x32x128xbf16> to vector<32x128xbf16>
    %cst_86 = arith.constant dense<0.000000e+00> : vector<16x128xf32>
    %174 = tpu.matmul %171, %173, %cst_86 {dimension_numbers = #tpu.dot_dimension_numbers<[1], [0], [0], [1], [0, 0, 1, 1], [], []>} : vector<16x32xbf16>, vector<32x128xbf16>, vector<16x128xf32> -> vector<16x128xf32>
    %175 = arith.truncf %168 : vector<16x32xf32> to vector<16x32xbf16>
    %c0_87 = arith.constant 0 : index
    %c0_88 = arith.constant 0 : index
    %c0_89 = arith.constant 0 : index
    %176 = vector.load %arg7[%c0_87, %c0_88, %c0_89] : memref<1x32x128xbf16, #tpu.memory_space<vmem>>, vector<1x32x128xbf16>
    %177 = vector.shape_cast %176 : vector<1x32x128xbf16> to vector<32x128xbf16>
    %cst_90 = arith.constant dense<0.000000e+00> : vector<16x128xf32>
    %178 = tpu.matmul %175, %177, %cst_90 {dimension_numbers = #tpu.dot_dimension_numbers<[1], [0], [0], [1], [0, 0, 1, 1], [], []>} : vector<16x32xbf16>, vector<32x128xbf16>, vector<16x128xf32> -> vector<16x128xf32>
    %179 = arith.addf %174, %178 : vector<16x128xf32>
    %180 = arith.addf %179, %9 : vector<16x128xf32>
    %181 = vector.extract_strided_slice %180 {offsets = [0, 0], sizes = [16, 32], strides = [1, 1]} : vector<16x128xf32> to vector<16x32xf32>
    %182 = arith.negf %181 : vector<16x32xf32>
    %183 = math.exp %182 : vector<16x32xf32>
    %cst_91 = arith.constant 1.000000e+00 : f32
    %184 = vector.broadcast %cst_91 : f32 to vector<16x32xf32>
    %185 = arith.addf %184, %183 : vector<16x32xf32>
    %186 = arith.divf %184, %185 : vector<16x32xf32>
    %187 = vector.extract_strided_slice %180 {offsets = [0, 32], sizes = [16, 32], strides = [1, 1]} : vector<16x128xf32> to vector<16x32xf32>
    %188 = arith.negf %187 : vector<16x32xf32>
    %189 = math.exp %188 : vector<16x32xf32>
    %cst_92 = arith.constant 1.000000e+00 : f32
    %190 = vector.broadcast %cst_92 : f32 to vector<16x32xf32>
    %191 = arith.addf %190, %189 : vector<16x32xf32>
    %192 = arith.divf %190, %191 : vector<16x32xf32>
    %193 = vector.extract_strided_slice %180 {offsets = [0, 64], sizes = [16, 32], strides = [1, 1]} : vector<16x128xf32> to vector<16x32xf32>
    %194 = math.tanh %193 : vector<16x32xf32>
    %195 = vector.extract_strided_slice %180 {offsets = [0, 96], sizes = [16, 32], strides = [1, 1]} : vector<16x128xf32> to vector<16x32xf32>
    %196 = arith.negf %195 : vector<16x32xf32>
    %197 = math.exp %196 : vector<16x32xf32>
    %cst_93 = arith.constant 1.000000e+00 : f32
    %198 = vector.broadcast %cst_93 : f32 to vector<16x32xf32>
    %199 = arith.addf %198, %197 : vector<16x32xf32>
    %200 = arith.divf %198, %199 : vector<16x32xf32>
    %201 = arith.mulf %192, %170 : vector<16x32xf32>
    %202 = arith.mulf %186, %194 : vector<16x32xf32>
    %203 = arith.addf %201, %202 : vector<16x32xf32>
    %204 = math.tanh %203 : vector<16x32xf32>
    %205 = arith.mulf %200, %204 : vector<16x32xf32>
    %206 = arith.select %117, %205, %168 : vector<16x32xf32>
    %207 = arith.select %117, %203, %170 : vector<16x32xf32>
    %c1_94 = arith.constant 1 : index
    %c0_95 = arith.constant 0 : index
    %c0_96 = arith.constant 0 : index
    %208 = vector.load %arg12[%c1_94, %c0_95, %c0_96] : memref<2x16x32xf32, #tpu.memory_space<vmem>>, vector<1x16x32xf32>
    %209 = vector.shape_cast %208 : vector<1x16x32xf32> to vector<16x32xf32>
    %210 = vector.shape_cast %206 : vector<16x32xf32> to vector<1x16x32xf32>
    tpu.vector_store %arg12[%c1_94, %c0_95, %c0_96], %210 {strides = array<i32>} : memref<2x16x32xf32, #tpu.memory_space<vmem>>, vector<1x16x32xf32>,
    %c1_97 = arith.constant 1 : index
    %c0_98 = arith.constant 0 : index
    %c0_99 = arith.constant 0 : index
    %211 = vector.load %arg13[%c1_97, %c0_98, %c0_99] : memref<2x16x32xf32, #tpu.memory_space<vmem>>, vector<1x16x32xf32>
    %212 = vector.shape_cast %211 : vector<1x16x32xf32> to vector<16x32xf32>
    %213 = vector.shape_cast %207 : vector<16x32xf32> to vector<1x16x32xf32>
    tpu.vector_store %arg13[%c1_97, %c0_98, %c0_99], %213 {strides = array<i32>} : memref<2x16x32xf32, #tpu.memory_space<vmem>>, vector<1x16x32xf32>,
    %214 = arith.addf %206, %166 : vector<16x32xf32>
    %215 = arith.truncf %214 : vector<16x32xf32> to vector<16x32xbf16>
    %216 = arith.index_cast %c1_i32 : i32 to index
    %c0_100 = arith.constant 0 : index
    %c0_101 = arith.constant 0 : index
    %217 = vector.load %arg11[%216, %c0_100, %c0_101] : memref<3x16x32xbf16, #tpu.memory_space<vmem>>, vector<1x16x32xbf16>
    %218 = vector.shape_cast %217 : vector<1x16x32xbf16> to vector<16x32xbf16>
    %219 = vector.shape_cast %215 : vector<16x32xbf16> to vector<1x16x32xbf16>
    tpu.vector_store %arg11[%216, %c0_100, %c0_101], %219 {strides = array<i32>} : memref<3x16x32xbf16, #tpu.memory_space<vmem>>, vector<1x16x32xbf16>,
    %c2_i32 = arith.constant 2 : i32
    %c3_i32_102 = arith.constant 3 : i32
    %220 = arith.muli %arg1, %c3_i32_102 : i32
    %221 = arith.addi %220, %c2_i32 : i32
    %c8_i32_103 = arith.constant 8 : i32
    %222 = arith.cmpi slt, %221, %c8_i32_103 : i32
    %223 = arith.index_cast %c2_i32 : i32 to index
    %c0_104 = arith.constant 0 : index
    %c0_105 = arith.constant 0 : index
    %224 = vector.load %arg2[%223, %c0_104, %c0_105] : memref<3x16x32xbf16, #tpu.memory_space<vmem>>, vector<1x16x32xbf16>
    %225 = vector.shape_cast %224 : vector<1x16x32xbf16> to vector<16x32xbf16>
    %c0_106 = arith.constant 0 : index
    %c0_107 = arith.constant 0 : index
    %c0_108 = arith.constant 0 : index
    %226 = vector.load %arg12[%c0_106, %c0_107, %c0_108] : memref<2x16x32xf32, #tpu.memory_space<vmem>>, vector<1x16x32xf32>
    %227 = vector.shape_cast %226 : vector<1x16x32xf32> to vector<16x32xf32>
    %c0_109 = arith.constant 0 : index
    %c0_110 = arith.constant 0 : index
    %c0_111 = arith.constant 0 : index
    %228 = vector.load %arg13[%c0_109, %c0_110, %c0_111] : memref<2x16x32xf32, #tpu.memory_space<vmem>>, vector<1x16x32xf32>
    %229 = vector.shape_cast %228 : vector<1x16x32xf32> to vector<16x32xf32>
    %c0_112 = arith.constant 0 : index
    %c0_113 = arith.constant 0 : index
    %230 = vector.load %arg3[%c0_112, %c0_113] : memref<32x128xbf16, #tpu.memory_space<vmem>>, vector<32x128xbf16>
    %cst_114 = arith.constant dense<0.000000e+00> : vector<16x128xf32>
    %231 = tpu.matmul %225, %230, %cst_114 {dimension_numbers = #tpu.dot_dimension_numbers<[1], [0], [0], [1], [0, 0, 1, 1], [], []>} : vector<16x32xbf16>, vector<32x128xbf16>, vector<16x128xf32> -> vector<16x128xf32>
    %232 = arith.truncf %227 : vector<16x32xf32> to vector<16x32xbf16>
    %c0_115 = arith.constant 0 : index
    %c0_116 = arith.constant 0 : index
    %233 = vector.load %arg4[%c0_115, %c0_116] : memref<32x128xbf16, #tpu.memory_space<vmem>>, vector<32x128xbf16>
    %cst_117 = arith.constant dense<0.000000e+00> : vector<16x128xf32>
    %234 = tpu.matmul %232, %233, %cst_117 {dimension_numbers = #tpu.dot_dimension_numbers<[1], [0], [0], [1], [0, 0, 1, 1], [], []>} : vector<16x32xbf16>, vector<32x128xbf16>, vector<16x128xf32> -> vector<16x128xf32>
    %235 = arith.addf %231, %234 : vector<16x128xf32>
    %236 = arith.addf %235, %5 : vector<16x128xf32>
    %237 = vector.extract_strided_slice %236 {offsets = [0, 0], sizes = [16, 32], strides = [1, 1]} : vector<16x128xf32> to vector<16x32xf32>
    %238 = arith.negf %237 : vector<16x32xf32>
    %239 = math.exp %238 : vector<16x32xf32>
    %cst_118 = arith.constant 1.000000e+00 : f32
    %240 = vector.broadcast %cst_118 : f32 to vector<16x32xf32>
    %241 = arith.addf %240, %239 : vector<16x32xf32>
    %242 = arith.divf %240, %241 : vector<16x32xf32>
    %243 = vector.extract_strided_slice %236 {offsets = [0, 32], sizes = [16, 32], strides = [1, 1]} : vector<16x128xf32> to vector<16x32xf32>
    %244 = arith.negf %243 : vector<16x32xf32>
    %245 = math.exp %244 : vector<16x32xf32>
    %cst_119 = arith.constant 1.000000e+00 : f32
    %246 = vector.broadcast %cst_119 : f32 to vector<16x32xf32>
    %247 = arith.addf %246, %245 : vector<16x32xf32>
    %248 = arith.divf %246, %247 : vector<16x32xf32>
    %249 = vector.extract_strided_slice %236 {offsets = [0, 64], sizes = [16, 32], strides = [1, 1]} : vector<16x128xf32> to vector<16x32xf32>
    %250 = math.tanh %249 : vector<16x32xf32>
    %251 = vector.extract_strided_slice %236 {offsets = [0, 96], sizes = [16, 32], strides = [1, 1]} : vector<16x128xf32> to vector<16x32xf32>
    %252 = arith.negf %251 : vector<16x32xf32>
    %253 = math.exp %252 : vector<16x32xf32>
    %cst_120 = arith.constant 1.000000e+00 : f32
    %254 = vector.broadcast %cst_120 : f32 to vector<16x32xf32>
    %255 = arith.addf %254, %253 : vector<16x32xf32>
    %256 = arith.divf %254, %255 : vector<16x32xf32>
    %257 = arith.mulf %248, %229 : vector<16x32xf32>
    %258 = arith.mulf %242, %250 : vector<16x32xf32>
    %259 = arith.addf %257, %258 : vector<16x32xf32>
    %260 = math.tanh %259 : vector<16x32xf32>
    %261 = arith.mulf %256, %260 : vector<16x32xf32>
    %262 = arith.select %222, %261, %227 : vector<16x32xf32>
    %263 = arith.select %222, %259, %229 : vector<16x32xf32>
    %c0_121 = arith.constant 0 : index
    %c0_122 = arith.constant 0 : index
    %c0_123 = arith.constant 0 : index
    %264 = vector.load %arg12[%c0_121, %c0_122, %c0_123] : memref<2x16x32xf32, #tpu.memory_space<vmem>>, vector<1x16x32xf32>
    %265 = vector.shape_cast %264 : vector<1x16x32xf32> to vector<16x32xf32>
    %266 = vector.shape_cast %262 : vector<16x32xf32> to vector<1x16x32xf32>
    tpu.vector_store %arg12[%c0_121, %c0_122, %c0_123], %266 {strides = array<i32>} : memref<2x16x32xf32, #tpu.memory_space<vmem>>, vector<1x16x32xf32>,
    %c0_124 = arith.constant 0 : index
    %c0_125 = arith.constant 0 : index
    %c0_126 = arith.constant 0 : index
    %267 = vector.load %arg13[%c0_124, %c0_125, %c0_126] : memref<2x16x32xf32, #tpu.memory_space<vmem>>, vector<1x16x32xf32>
    %268 = vector.shape_cast %267 : vector<1x16x32xf32> to vector<16x32xf32>
    %269 = vector.shape_cast %263 : vector<16x32xf32> to vector<1x16x32xf32>
    tpu.vector_store %arg13[%c0_124, %c0_125, %c0_126], %269 {strides = array<i32>} : memref<2x16x32xf32, #tpu.memory_space<vmem>>, vector<1x16x32xf32>,
    %270 = arith.extf %225 : vector<16x32xbf16> to vector<16x32xf32>
    %271 = arith.addf %262, %270 : vector<16x32xf32>
    %c1_127 = arith.constant 1 : index
    %c0_128 = arith.constant 0 : index
    %c0_129 = arith.constant 0 : index
    %272 = vector.load %arg12[%c1_127, %c0_128, %c0_129] : memref<2x16x32xf32, #tpu.memory_space<vmem>>, vector<1x16x32xf32>
    %273 = vector.shape_cast %272 : vector<1x16x32xf32> to vector<16x32xf32>
    %c1_130 = arith.constant 1 : index
    %c0_131 = arith.constant 0 : index
    %c0_132 = arith.constant 0 : index
    %274 = vector.load %arg13[%c1_130, %c0_131, %c0_132] : memref<2x16x32xf32, #tpu.memory_space<vmem>>, vector<1x16x32xf32>
    %275 = vector.shape_cast %274 : vector<1x16x32xf32> to vector<16x32xf32>
    %276 = arith.truncf %271 : vector<16x32xf32> to vector<16x32xbf16>
    %c0_133 = arith.constant 0 : index
    %c0_134 = arith.constant 0 : index
    %c0_135 = arith.constant 0 : index
    %277 = vector.load %arg6[%c0_133, %c0_134, %c0_135] : memref<1x32x128xbf16, #tpu.memory_space<vmem>>, vector<1x32x128xbf16>
    %278 = vector.shape_cast %277 : vector<1x32x128xbf16> to vector<32x128xbf16>
    %cst_136 = arith.constant dense<0.000000e+00> : vector<16x128xf32>
    %279 = tpu.matmul %276, %278, %cst_136 {dimension_numbers = #tpu.dot_dimension_numbers<[1], [0], [0], [1], [0, 0, 1, 1], [], []>} : vector<16x32xbf16>, vector<32x128xbf16>, vector<16x128xf32> -> vector<16x128xf32>
    %280 = arith.truncf %273 : vector<16x32xf32> to vector<16x32xbf16>
    %c0_137 = arith.constant 0 : index
    %c0_138 = arith.constant 0 : index
    %c0_139 = arith.constant 0 : index
    %281 = vector.load %arg7[%c0_137, %c0_138, %c0_139] : memref<1x32x128xbf16, #tpu.memory_space<vmem>>, vector<1x32x128xbf16>
    %282 = vector.shape_cast %281 : vector<1x32x128xbf16> to vector<32x128xbf16>
    %cst_140 = arith.constant dense<0.000000e+00> : vector<16x128xf32>
    %283 = tpu.matmul %280, %282, %cst_140 {dimension_numbers = #tpu.dot_dimension_numbers<[1], [0], [0], [1], [0, 0, 1, 1], [], []>} : vector<16x32xbf16>, vector<32x128xbf16>, vector<16x128xf32> -> vector<16x128xf32>
    %284 = arith.addf %279, %283 : vector<16x128xf32>
    %285 = arith.addf %284, %9 : vector<16x128xf32>
    %286 = vector.extract_strided_slice %285 {offsets = [0, 0], sizes = [16, 32], strides = [1, 1]} : vector<16x128xf32> to vector<16x32xf32>
    %287 = arith.negf %286 : vector<16x32xf32>
    %288 = math.exp %287 : vector<16x32xf32>
    %cst_141 = arith.constant 1.000000e+00 : f32
    %289 = vector.broadcast %cst_141 : f32 to vector<16x32xf32>
    %290 = arith.addf %289, %288 : vector<16x32xf32>
    %291 = arith.divf %289, %290 : vector<16x32xf32>
    %292 = vector.extract_strided_slice %285 {offsets = [0, 32], sizes = [16, 32], strides = [1, 1]} : vector<16x128xf32> to vector<16x32xf32>
    %293 = arith.negf %292 : vector<16x32xf32>
    %294 = math.exp %293 : vector<16x32xf32>
    %cst_142 = arith.constant 1.000000e+00 : f32
    %295 = vector.broadcast %cst_142 : f32 to vector<16x32xf32>
    %296 = arith.addf %295, %294 : vector<16x32xf32>
    %297 = arith.divf %295, %296 : vector<16x32xf32>
    %298 = vector.extract_strided_slice %285 {offsets = [0, 64], sizes = [16, 32], strides = [1, 1]} : vector<16x128xf32> to vector<16x32xf32>
    %299 = math.tanh %298 : vector<16x32xf32>
    %300 = vector.extract_strided_slice %285 {offsets = [0, 96], sizes = [16, 32], strides = [1, 1]} : vector<16x128xf32> to vector<16x32xf32>
    %301 = arith.negf %300 : vector<16x32xf32>
    %302 = math.exp %301 : vector<16x32xf32>
    %cst_143 = arith.constant 1.000000e+00 : f32
    %303 = vector.broadcast %cst_143 : f32 to vector<16x32xf32>
    %304 = arith.addf %303, %302 : vector<16x32xf32>
    %305 = arith.divf %303, %304 : vector<16x32xf32>
    %306 = arith.mulf %297, %275 : vector<16x32xf32>
    %307 = arith.mulf %291, %299 : vector<16x32xf32>
    %308 = arith.addf %306, %307 : vector<16x32xf32>
    %309 = math.tanh %308 : vector<16x32xf32>
    %310 = arith.mulf %305, %309 : vector<16x32xf32>
    %311 = arith.select %222, %310, %273 : vector<16x32xf32>
    %312 = arith.select %222, %308, %275 : vector<16x32xf32>
    %c1_144 = arith.constant 1 : index
    %c0_145 = arith.constant 0 : index
    %c0_146 = arith.constant 0 : index
    %313 = vector.load %arg12[%c1_144, %c0_145, %c0_146] : memref<2x16x32xf32, #tpu.memory_space<vmem>>, vector<1x16x32xf32>
    %314 = vector.shape_cast %313 : vector<1x16x32xf32> to vector<16x32xf32>
    %315 = vector.shape_cast %311 : vector<16x32xf32> to vector<1x16x32xf32>
    tpu.vector_store %arg12[%c1_144, %c0_145, %c0_146], %315 {strides = array<i32>} : memref<2x16x32xf32, #tpu.memory_space<vmem>>, vector<1x16x32xf32>,
    %c1_147 = arith.constant 1 : index
    %c0_148 = arith.constant 0 : index
    %c0_149 = arith.constant 0 : index
    %316 = vector.load %arg13[%c1_147, %c0_148, %c0_149] : memref<2x16x32xf32, #tpu.memory_space<vmem>>, vector<1x16x32xf32>
    %317 = vector.shape_cast %316 : vector<1x16x32xf32> to vector<16x32xf32>
    %318 = vector.shape_cast %312 : vector<16x32xf32> to vector<1x16x32xf32>
    tpu.vector_store %arg13[%c1_147, %c0_148, %c0_149], %318 {strides = array<i32>} : memref<2x16x32xf32, #tpu.memory_space<vmem>>, vector<1x16x32xf32>,
    %319 = arith.addf %311, %271 : vector<16x32xf32>
    %320 = arith.truncf %319 : vector<16x32xf32> to vector<16x32xbf16>
    %321 = arith.index_cast %c2_i32 : i32 to index
    %c0_150 = arith.constant 0 : index
    %c0_151 = arith.constant 0 : index
    %322 = vector.load %arg11[%321, %c0_150, %c0_151] : memref<3x16x32xbf16, #tpu.memory_space<vmem>>, vector<1x16x32xbf16>
    %323 = vector.shape_cast %322 : vector<1x16x32xbf16> to vector<16x32xbf16>
    %324 = vector.shape_cast %320 : vector<16x32xbf16> to vector<1x16x32xbf16>
    tpu.vector_store %arg11[%321, %c0_150, %c0_151], %324 {strides = array<i32>} : memref<3x16x32xbf16, #tpu.memory_space<vmem>>, vector<1x16x32xbf16>,
    %c3_i32_152 = arith.constant 3 : i32
    return
  }
  func.func @transform_0(%arg0: i32, %arg1: i32) -> (i32, i32, i32) {
    %c0_i32 = arith.constant 0 : i32
    %c0_i32_0 = arith.constant 0 : i32
    return %arg1, %arg0, %c0_i32 : i32, i32, i32
  }
  func.func @transform_1(%arg0: i32, %arg1: i32) -> (i32, i32) {
    %c0_i32 = arith.constant 0 : i32
    %c0_i32_0 = arith.constant 0 : i32
    %c0_i32_1 = arith.constant 0 : i32
    return %c0_i32, %c0_i32_0 : i32, i32
  }
  func.func @transform_2(%arg0: i32, %arg1: i32) -> (i32, i32) {
    %c0_i32 = arith.constant 0 : i32
    %c0_i32_0 = arith.constant 0 : i32
    %c0_i32_1 = arith.constant 0 : i32
    return %c0_i32, %c0_i32_0 : i32, i32
  }
  func.func @transform_3(%arg0: i32, %arg1: i32) -> (i32, i32) {
    %c0_i32 = arith.constant 0 : i32
    %c0_i32_0 = arith.constant 0 : i32
    %c0_i32_1 = arith.constant 0 : i32
    return %c0_i32, %c0_i32_0 : i32, i32
  }
  func.func @transform_4(%arg0: i32, %arg1: i32) -> (i32, i32, i32) {
    %c0_i32 = arith.constant 0 : i32
    %c0_i32_0 = arith.constant 0 : i32
    %c0_i32_1 = arith.constant 0 : i32
    %c0_i32_2 = arith.constant 0 : i32
    return %c0_i32, %c0_i32_0, %c0_i32_1 : i32, i32, i32
  }
  func.func @transform_5(%arg0: i32, %arg1: i32) -> (i32, i32, i32) {
    %c0_i32 = arith.constant 0 : i32
    %c0_i32_0 = arith.constant 0 : i32
    %c0_i32_1 = arith.constant 0 : i32
    %c0_i32_2 = arith.constant 0 : i32
    return %c0_i32, %c0_i32_0, %c0_i32_1 : i32, i32, i32
  }
  func.func @transform_6(%arg0: i32, %arg1: i32) -> (i32, i32, i32) {
    %c0_i32 = arith.constant 0 : i32
    %c0_i32_0 = arith.constant 0 : i32
    %c0_i32_1 = arith.constant 0 : i32
    %c0_i32_2 = arith.constant 0 : i32
    return %c0_i32, %c0_i32_0, %c0_i32_1 : i32, i32, i32
  }
  func.func @transform_7(%arg0: i32, %arg1: i32) -> (i32, i32, i32) {
    %c0_i32 = arith.constant 0 : i32
    %c0_i32_0 = arith.constant 0 : i32
    %c0_i32_1 = arith.constant 0 : i32
    return %c0_i32, %arg0, %c0_i32_0 : i32, i32, i32
  }
  func.func @transform_8(%arg0: i32, %arg1: i32) -> (i32, i32, i32) {
    %c0_i32 = arith.constant 0 : i32
    %c0_i32_0 = arith.constant 0 : i32
    %c0_i32_1 = arith.constant 0 : i32
    return %c0_i32, %arg0, %c0_i32_0 : i32, i32, i32
  }
  func.func @transform_9(%arg0: i32, %arg1: i32) -> (i32, i32, i32) {
    %c0_i32 = arith.constant 0 : i32
    %c0_i32_0 = arith.constant 0 : i32
    return %arg1, %arg0, %c0_i32 : i32, i32, i32
  }
  func.func @transform_10(%arg0: i32, %arg1: i32) -> (i32, i32, i32) {
    %c0_i32 = arith.constant 0 : i32
    %c0_i32_0 = arith.constant 0 : i32
    %c0_i32_1 = arith.constant 0 : i32
    return %c0_i32, %arg0, %c0_i32_0 : i32, i32, i32
  }
  func.func @transform_11(%arg0: i32, %arg1: i32) -> (i32, i32, i32) {
    %c0_i32 = arith.constant 0 : i32
    %c0_i32_0 = arith.constant 0 : i32
    %c0_i32_1 = arith.constant 0 : i32
    return %c0_i32, %arg0, %c0_i32_0 : i32, i32, i32
  }
}

</mosaic_0001>

<bundles_post_ra>
// kernel: tpu_custom_call.1
= control target key start
LH: loop header
LB: loop body
LE: loop exit
PB: predicated region body
PF: predicated region fallthrough
CT: control target
= control target key end

     0   :  { %s4343_s0 = inlined_call_operand.hbm [shape: bf16[9,32,32], index: 0, kind: input, shape index: {}]   ;;  %s4344_s1 = inlined_call_operand.hbm [shape: bf16[32,128], index: 1, kind: input, shape index: {}]   ;;  %s4345_s2 = inlined_call_operand.hbm [shape: bf16[32,128], index: 2, kind: input, shape index: {}]   ;;  %s4346_s3 = inlined_call_operand.vmem [shape: f32[1,128], index: 3, kind: input, shape index: {}]   ;;  %s4347_s4 = inlined_call_operand.hbm [shape: bf16[1,32,128], index: 4, kind: input, shape index: {}]   ;;  %s4348_s5 = inlined_call_operand.vmem [shape: bf16[1,32,128], index: 5, kind: input, shape index: {}]   ;;  %s4349_s6 = inlined_call_operand.vmem [shape: f32[1,1,128], index: 6, kind: input, shape index: {}]   ;;  %s4350_s7 = inlined_call_operand.hbm [shape: f32[2,32,32], index: 7, kind: input, shape index: {}]   ;;  %s4351_s8 = inlined_call_operand.hbm [shape: f32[2,32,32], index: 8, kind: input, shape index: {}]   ;;  %s4352_s9 = inlined_call_operand.hbm [shape: bf16[9,32,32], index: 9, kind: output, shape index: {0}]   ;;  %s4353_s10 = inlined_call_operand.hbm [shape: f32[2,32,32], index: 10, kind: output, shape index: {1}]   ;;  %s4354_s11 = inlined_call_operand.hbm [shape: f32[2,32,32], index: 11, kind: output, shape index: {2}]  }
   0x1   :  { %4376 = sst [smem:[#allocation51_spill]] %s4344_s1 }
   0x2   :  { %4377 = sst [smem:[#allocation52_spill]] %s4346_s3 }
   0x3   :  { %4378 = sst [smem:[#allocation53_spill]] %s4348_s5 }
   0x4   :  { %4379 = sst [smem:[#allocation54_spill]] %s4349_s6 }
   0x5   :  { %4380 = sst [smem:[#allocation55_spill]] %s4352_s9 }
   0x6   :  { %4381 = sst [smem:[#allocation56_spill]] %s4353_s10 }
   0x7   :  { %4382 = sst [smem:[#allocation57_spill]] %s4354_s11 }
   0x8   :  { %17 = vsyncpa [#allocation3], 0 }
   0x9   :  { %19 = vsyncpa [#allocation3 + $0x1], 0 }
   0xa   :  { %20 = vsyncpa [#allocation6], 0 }
   0xb   :  { %21 = vsyncpa [#allocation9], 0 }
   0xc   :  { %22 = vsyncpa [#allocation12], 0 }
   0xd   :  { %23 = vsyncpa [#allocation4], 0 }
   0xe   :  { %25 = vsyncpa [#allocation4 + $0x1], 0 }
   0xf   :  { %26 = vsyncpa [#allocation15], 0 }
  0x10   :  { %28 = vsyncpa [#allocation15 + $0x1], 0  ;;  %s3379_s17 = smov 0   ;;  %s3381_s18 = smov 0  }
  0x11   :  { %s3383_s19 = smov 0   ;;  %s3385_s20 = smov 0  }
  0x12   :  { %s3387_s21 = smov 0   ;;  %s3389_s22 = smov 0  }
  0x13   :  { %s3391_s23 = smov 0   ;;  %s3393_s24 = smov 0  }
  0x14   :  { %s3395_s25 = smov 0   ;;  %s3397_s26 = smov 0  }
  0x15   :  { %s3399_s27 = smov 0  }
  0x16 LB: > { %4383 = sst [smem:[#allocation39_spill]] %s3228_s18  ;;  %s3435_s28 = sadd.s32 4294967295, %s3264_s27   ;;  %s3264_s27 = sphi %s3399_s27, %s34_s27   ;;  %s3260_s26 = sphi %s3397_s26, %s4456_s26   ;;  %s3256_s25 = sphi %s3395_s25, %s4455_s25   ;;  %s3252_s24 = sphi %s3393_s24, %s4454_s24   ;;  %s3248_s23 = sphi %s3391_s23, %s4453_s23   ;;  %s3244_s22 = sphi %s3389_s22, %s4452_s22   ;;  %s3240_s21 = sphi %s3387_s21, %s4451_s21   ;;  %s3236_s20 = sphi %s3385_s20, %s4450_s20   ;;  %s3232_s19 = sphi %s3383_s19, %s4446_s19   ;;  %s3228_s18 = sphi %s3381_s18, %s4445_s18   ;;  %s3224_s17 = sphi %s3379_s17, %s4444_s17  }
  0x17   : > { %4384 = sst [smem:[#allocation40_spill]] %s3232_s19  ;;  %s43_s30 = sadd.s32 1, %s3256_s25 }
  0x18   : > { %4385 = sst [smem:[#allocation41_spill]] %s3236_s20  ;;  %s46_s12 = sadd.s32 1, %s3260_s26 }
  0x19   : > { %4386 = sst [smem:[#allocation42_spill]] %s3248_s23  ;;  %p44_p0 = scmp.ge.s32.totalorder %s43_s30, 3 }
  0x1a   : > { %s55_s13 = sadd.s32 1, %s3244_s22  ;;  %p62_p1 = scmp.ne.s32.totalorder %s3244_s22, %s3240_s21 }
  0x1b   : > { %p63_p2 = scmp.eq.s32.totalorder %s3264_s27, 0  ;;  %s4458_s30 = smov (%p44_p0, %s43_s30), 0 }
  0x1c   : > { %4387 = sst [smem:[#allocation43_spill]] %s4458_s30  ;;  %s4460_s12 = smov (!%p44_p0, %s46_s12), %s3260_s26 }
  0x1d   : > { %s50_s14 = ssub.s32 %s3256_s25, %s4458_s30  ;;  %p3452_p3 = por %p63_p2, %p62_p1 }
  0x1e   : > { %p48_p4 = scmp.ge.s32.totalorder %s4460_s12, 2  ;;  %p68_p5 = scmp.ne.s32.totalorder %s3240_s21, %s3236_s20 }
  0x1f   : > { %s4388_s15 = scalar_select %p3452_p3, 1, 0 }
  0x20   : > { %p4359_p6 = scmp.eq.s32.totalorder %s3435_s28, 0  ;;  %s207_s16 = sadd.s32 1, %s3232_s19 }
  0x21   : > { %s4462_s12 = smov (%p48_p4, %s4460_s12), 0  ;;  %p220_p8 = scmp.ne.s32.totalorder %s3228_s18, %s3224_s17 }
  0x22   : > { %4389 = sst [smem:[#allocation44_spill]] %s4462_s12  ;;  %p3467_p7 = por %p4359_p6, %p68_p5 }
  0x23   : > { %s51_s30 = ssub.s32 %s3260_s26, %s4462_s12  ;;  %p272_p9 = scmp.eq.s32.totalorder %s3435_s28, 5 }
  0x24   : > { %s4390_s29 = scalar_select %p3467_p7, 1, 0 }
  0x25   : > { %s52_s11 = sor.u32 %s51_s30, %s50_s14  ;;  %p205_p10 = scmp.eq.s32.totalorder %s51_s30, 0 }
  0x26   : > { %p53_p11 = scmp.eq.s32.totalorder %s52_s11, 0  ;;  %p3481_p12 = por %p220_p8, %p4359_p6 }
  0x27   : > { %s3486_s9 = scalar_select %p205_p10, %s3232_s19, %s207_s16  }
  0x28   : > { %s4391_s10 = scalar_select %p3481_p12, 1, 0 }
  0x29   : > { %4392 = sst [smem:[#allocation45_spill]] %s3486_s9  ;;  %p3496_p13 = por %p272_p9, %p62_p1 }
  0x2a   : > { %s3489_s6 = scalar_select %p53_p11, %s3244_s22, %s55_s13  }
  0x2b   : > { %s4394_s5 = scalar_select %p3496_p13, 1, 0 }
  0x2c   : > { %4393 = sst [smem:[#allocation46_spill]] %s3489_s6  ;;  %s4396_s12 = sadd.s32 4294967294, %s3264_s27  }
  0x2d   : > { %4395 = sst [smem:[#allocation47_spill]] %s4394_s5  ;;  %p278_p0 = scmp.eq.s32.totalorder %s4396_s12, 5 }
  0x2e   : > { %p297_p2 = scmp.ne.s32.totalorder %s3232_s19, %s3228_s18  ;;  %p2431_p4 = scmp.ge.s32.totalorder %s3264_s27, 1 }
  0x2f   : > { %p3508_p7 = por %p278_p0, %p68_p5  ;;  %p3515_p10 = por %p278_p0, %p220_p8 }
  0x30   : > { %p3521_p11 = por %p297_p2, %p272_p9  ;;  %p337_p1 = scmp.lt.s32.totalorder %s3264_s27, 7 }
  0x31   : > { %s4397_s11 = scalar_select %p3508_p7, 1, 0 }
  0x32   : > { %s4399_s30 = scalar_select %p3515_p10, 1, 0 }
  0x33   : > { %4398 = sst [smem:[#allocation48_spill]] %s4397_s11  ;;  %p3526_p6 = pnand %p2431_p4, %p337_p1 }
  0x34   : > { %4400 = sst [smem:[#allocation49_spill]] %s4399_s30  ;;  %s3266_s14 = smov (!%p3526_p6), [#allocation5]  }
  0x35   : > { %s4401_s13 = scalar_select %p3521_p11, 1, 0 }
  0x36   : > { %s4403_s12 = scalar_select %p3526_p6, 1, 0 }
  0x37   : > { %4402 = sst [smem:[#allocation50_spill]] %s4401_s13  ;;  %341 = sbr.rel (%p3526_p6) target bundleno = 158 (0x9e), region = 12 }
  0x38   : > { %s349_s17 = sshll.u32 (!%p3526_p6), %s3266_s14, 4  ;;  %s4404_s1 = sld [smem:[#allocation51_spill]] (!%p3526_p6)  ;;  %s350_s17 = int_to_ptr.vmem [resolvable:$true] %s349_s17 }
  0x39   : > { %p4405_p8 = scmp.eq.s32.totalorder (!%p3526_p6), %s3435_s28, 0 }
  0x3e   : > { %s3072_s9 = scalar_lea.hbm %s4404_s1, 256 }
  0x3f   : > { %p3073_p5 = scmp.ne.s32.totalorder %s4404_s1, %s3072_s9  ;;  %p3078_p2 = scmp.lt.u32.totalorder %s3072_s9, %s4404_s1 }
  0x41   : > { %p3074_p9 = pnand %p3073_p5, %p4405_p8 }
  0x43   : > { %p3075_p0 = pneg %p3074_p9 }
  0x45   : > { %p3080_p4 = pnand %p3078_p2, %p3075_p0 }
  0x47   : > { %3083 = shalt.err (!%p3080_p4)
}
  0x48   : > { %s3084_s13 = scalar_lea.vmem %s350_s17, 256  ;;  %p4406_p10 = pmov %p4405_p8 }
  0x49   : > { %p3085_p1 = scmp.ne.s32.totalorder %s350_s17, %s3084_s13  ;;  %p3091_p13 = scmp.lt.s32.totalorder %s350_s17, %s350_s17 }
  0x4a   : > { %p3092_p6 = scmp.lt.s32.totalorder %s3084_s13, %s3084_s13 }
  0x4b   : > { %p3086_p7 = pnand %p3085_p1, %p4406_p10 }
  0x4c   : > { %p3093_p3 = por %p3092_p6, %p3091_p13 }
  0x4d   : > { %p3087_p11 = pneg %p3086_p7 }
  0x4f   : > { %p3094_p12 = pnand %p3093_p3, %p3087_p11 }
  0x51   : > { %3097 = shalt.err (!%p3094_p12)
}
  0x52   : > { %s3267_s6 = smov 64   ;;  %s3268_s19 = smov 4  }
  0x53   : > { %p4407_p5 = pmov %p4405_p8  ;;  %s3269_s11 = smov [#allocation7]  }
  0x54   : > { %s362_s30 = sshll.u32 %s3269_s11, 4  ;;  %s3270_s14 = smov [#allocation8]   ;;  %s363_s30 = int_to_ptr.vmem [resolvable:$true] %s362_s30 }
  0x55   : > { %2705 = dma.hbm_to_vmem [thread:$0]  (%p4407_p5), %s4404_s1, 256, %s350_s17, [#allocation6], %s3267_s6, %s3267_s6, %s3268_s19  }
  0x56   : > { %s378_s16 = sshll.u32 %s3270_s14, 4  ;;  %s3098_s3 = scalar_lea.hbm %s4345_s2, 256  ;;  %s3553_s16 = int_to_ptr.vmem [resolvable:$true] %s378_s16 }
  0x57   : > { %p3099_p3 = scmp.ne.s32.totalorder %s4345_s2, %s3098_s3  ;;  %p4408_p6 = pmov %p4407_p5 }
  0x58   : > { %p3104_p13 = scmp.lt.u32.totalorder %s3098_s3, %s4345_s2 }
  0x59   : > { %p3100_p7 = pnand %p3099_p3, %p4408_p6 }
  0x5b   : > { %p3101_p12 = pneg %p3100_p7 }
  0x5d   : > { %p3106_p10 = pnand %p3104_p13, %p3101_p12 }
  0x5f   : > { %3109 = shalt.err (!%p3106_p10)
}
  0x60   : > { %s3110_s20 = scalar_lea.vmem %s363_s30, 256  ;;  %p4409_p8 = pmov %p4407_p5 }
  0x61   : > { %p3111_p11 = scmp.ne.s32.totalorder %s363_s30, %s3110_s20  ;;  %p3117_p2 = scmp.lt.s32.totalorder %s363_s30, %s363_s30 }
  0x62   : > { %p3118_p4 = scmp.lt.s32.totalorder %s3110_s20, %s3110_s20 }
  0x63   : > { %p3112_p9 = pnand %p3111_p11, %p4409_p8 }
  0x64   : > { %p3119_p1 = por %p3118_p4, %p3117_p2 }
  0x65   : > { %p3113_p0 = pneg %p3112_p9 }
  0x67   : > { %p3120_p5 = pnand %p3119_p1, %p3113_p0 }
  0x69   : > { %3123 = shalt.err (!%p3120_p5)
}
  0x6a   : > { %p4410_p3 = pmov %p4408_p6  ;;  %s3124_s11 = scalar_lea.hbm %s4347_s4, 256 }
  0x6b   : > { %p3125_p6 = scmp.ne.s32.totalorder %s4347_s4, %s3124_s11  ;;  %p3130_p10 = scmp.lt.u32.totalorder %s3124_s11, %s4347_s4 }
  0x6c   : > { %2707 = dma.hbm_to_vmem [thread:$0]  (%p4410_p3), %s4345_s2, 256, %s363_s30, [#allocation6], %s3267_s6, %s3267_s6, %s3268_s19  }
  0x6d   : > { %p4411_p7 = pmov %p4410_p3 }
  0x6f   : > { %p3126_p12 = pnand %p3125_p6, %p4411_p7 }
  0x71   : > { %p3127_p13 = pneg %p3126_p12 }
  0x73   : > { %p3132_p11 = pnand %p3130_p10, %p3127_p13 }
  0x75   : > { %3135 = shalt.err (!%p3132_p11)
}
  0x76   : > { %s3136_s30 = scalar_lea.vmem %s3553_s16, 256  ;;  %p4412_p9 = pmov %p4410_p3 }
  0x77   : > { %p3137_p8 = scmp.ne.s32.totalorder %s3553_s16, %s3136_s30  ;;  %p3143_p4 = scmp.lt.s32.totalorder %s3553_s16, %s3553_s16 }
  0x78   : > { %p3144_p1 = scmp.lt.s32.totalorder %s3136_s30, %s3136_s30 }
  0x79   : > { %p3138_p0 = pnand %p3137_p8, %p4412_p9 }
  0x7a   : > { %p3145_p5 = por %p3144_p1, %p3143_p4 }
  0x7b   : > { %p3139_p2 = pneg %p3138_p0 }
  0x7d   : > { %p3146_p3 = pnand %p3145_p5, %p3139_p2 }
  0x7f   : > { %3149 = shalt.err (!%p3146_p3)
}
  0x80   : > { %p4413_p6 = pmov %p4411_p7 }
  0x82   : > { %2709 = dma.hbm_to_vmem [thread:$0]  (%p4413_p6), %s4347_s4, 256, %s3553_s16, [#allocation9], %s3267_s6, %s3267_s6, %s3268_s19  }
  0x83   : > { %s2558_s3 = sshll.u32 %s3252_s24, 8  ;;  %s3271_s14 = smov [#allocation10]  }
  0x84   : > { %s399_s11 = scalar_lea.hbm %s4350_s7, %s2558_s3  ;;  %s412_s13 = sshll.u32 %s3271_s14, 4  ;;  %s413_s13 = int_to_ptr.vmem [resolvable:$true] %s412_s13 }
  0x85   : > { %p4414_p7 = scmp.ne.s32.totalorder %s4391_s10, 0  ;;  %s3272_s6 = smov 512  }
  0x86   : > { %s3273_s19 = smov 256   ;;  %s3274_s16 = smov 2  }
  0x87   : > { %s2710_s9 = scalar_select %p4414_p7, [#allocation0], [#allocation29] }
  0x88   : > { %2711 = sst [smem:[#allocation18]] (%p4414_p7), %s3272_s6  ;;  %s3275_s30 = smov 128  }
  0x89   : > { %s404_s17 = sld [smem:[%s2710_s9]]   ;;  %s3276_s5 = smov 8  }
  0x8a   : > { %2712 = sst [smem:[#allocation18 + $0x1]] (%p4414_p7), %s3273_s19  ;;  %s3277_s23 = smov [#allocation9]  }
  0x8b   : > { %2713 = sst [smem:[#allocation18 + $0x2]] (%p4414_p7), %s3274_s16  ;;  %s3278_s14 = smov [#allocation17]  }
  0x8c   : > { %2714 = sst [smem:[#allocation18 + $0x3]] (%p4414_p7), %s3275_s30 }
  0x8d   : > { %2715 = sst [smem:[#allocation18 + $0x4]] (%p4414_p7), %s3275_s30 }
  0x8e   : > { %2716 = sst [smem:[#allocation18 + $0x5]] (%p4414_p7), %s3276_s5 }
  0x8f   : > { %s2437_s20 = sshll.u32 %s404_s17, 26 }
  0x90   : > { %s2438_s18 = sadd.s32 134217728, %s2437_s20 }
  0x91   : > { %2717 = dma.general (%p4414_p7), %s399_s11, 512, %s413_s13, %s3277_s23, %s3278_s14, [#allocation18], %s2438_s18, 0  }
  0x92   : > { %s440_s19 = scalar_lea.hbm %s4351_s8, %s2558_s3  ;;  %s3279_s16 = smov [#allocation11]  }
  0x93   : > { %s2718_s17 = scalar_select %p4414_p7, [#allocation0], [#allocation30] }
  0x94   : > { %s453_s30 = sshll.u32 %s3279_s16, 4  ;;  %s3280_s5 = smov 512   ;;  %s454_s30 = int_to_ptr.vmem [resolvable:$true] %s453_s30 }
  0x95   : > { %s445_s20 = sld [smem:[%s2718_s17]]   ;;  %s3281_s11 = smov 256  }
  0x96   : > { %2719 = sst [smem:[#allocation20]] (%p4414_p7), %s3280_s5  ;;  %s3282_s13 = smov 2  }
  0x97   : > { %2720 = sst [smem:[#allocation20 + $0x1]] (%p4414_p7), %s3281_s11  ;;  %s3283_s18 = smov 128  }
  0x98   : > { %2721 = sst [smem:[#allocation20 + $0x2]] (%p4414_p7), %s3282_s13  ;;  %s3284_s23 = smov 8  }
  0x99   : > { %2722 = sst [smem:[#allocation20 + $0x3]] (%p4414_p7), %s3283_s18  ;;  %s3285_s9 = smov [#allocation12]  }
  0x9a   : > { %2723 = sst [smem:[#allocation20 + $0x4]] (%p4414_p7), %s3283_s18  ;;  %s3286_s6 = smov [#allocation19]  }
  0x9b   : > { %s2441_s3 = sshll.u32 %s445_s20, 26  ;;  %2724 = sst [smem:[#allocation20 + $0x5]] (%p4414_p7), %s3284_s23 }
  0x9c   : > { %s2442_s14 = sadd.s32 134217728, %s2441_s3 }
  0x9d   : > { %2725 = dma.general (%p4414_p7), %s440_s19, 512, %s454_s30, %s3285_s9, %s3286_s6, [#allocation20], %s2442_s14, 0  }
  0x9e PF: > { %p2443_p12 = scmp.ge.s32.totalorder %s3264_s27, 6 }
  0xa0   : > { %476 = sbr.rel (%p2443_p12) target bundleno = 184 (0xb8), region = 48 }
  0xa7   : > { %s480_s17 = sand.u32 1, %s3244_s22   ;;  %s2444_s20 = sshll.u32 %s3260_s26, 1 }
  0xa8   : > { %s2702_s16 = smul.u32 24, %s480_s17  ;;  %s3287_s11 = smov 256  }
  0xa9   : > { %s2560_s5 = smul.u32 12, %s3256_s25  ;;  %p4415_p13 = scmp.ne.s32.totalorder %s4388_s15, 0 }
  0xaa   : > { %s484_s30 = scalar_lea.vmem [#allocation2], %s2702_s16  ;;  %s3288_s3 = smov 128  }
  0xab   : > { %2727 = sst [smem:[#allocation22]] (%p4415_p13), %s3287_s11  ;;  %s491_s19 = sadd.s32 %s2560_s5, %s2444_s20 }
  0xac   : > { %s506_s13 = sshll.u32 %s484_s30, 4  ;;  %2728 = sst [smem:[#allocation22 + $0x1]] (%p4415_p13), %s3288_s3  ;;  %s507_s13 = int_to_ptr.vmem [resolvable:$true] %s506_s13 }
  0xad   : > { %s2726_s18 = scalar_select %p4415_p13, [#allocation0], [#allocation31] }
  0xae   : > { %s3289_s14 = smov 2   ;;  %s2446_s9 = sshll.u32 %s491_s19, 6 }
  0xaf   : > { %s498_s23 = sld [smem:[%s2726_s18]]   ;;  %s3290_s6 = smov 64  }
  0xb0   : > { %2729 = sst [smem:[#allocation22 + $0x2]] (%p4415_p13), %s3289_s14  ;;  %s3291_s20 = smov 4  }
  0xb1   : > { %2730 = sst [smem:[#allocation22 + $0x3]] (%p4415_p13), %s3290_s6  ;;  %s493_s11 = scalar_lea.hbm %s4343_s0, %s2446_s9 }
  0xb2   : > { %2731 = sst [smem:[#allocation22 + $0x4]] (%p4415_p13), %s3290_s6  ;;  %s481_s18 = scalar_lea.sflag [#allocation3], %s480_s17 }
  0xb3   : > { %2732 = sst [smem:[#allocation22 + $0x5]] (%p4415_p13), %s3291_s20  ;;  %s3292_s1 = smov [#allocation21]  }
  0xb5   : > { %s2447_s30 = sshll.u32 %s498_s23, 26 }
  0xb6   : > { %s2448_s3 = sadd.s32 134217728, %s2447_s30 }
  0xb7   : > { %2733 = dma.general (%p4415_p13), %s493_s11, 384, %s507_s13, %s481_s18, %s3292_s1, [#allocation22], %s2448_s3, 0  }
  0xb8 PF: > { %p4416_p10 = scmp.ne.s32.totalorder %s4403_s12, 0 }
  0xb9   : > { %s3667_s19 = sand.u32 (!%p4416_p10), 1, %s3240_s21   ;;  %p4417_p11 = scmp.ne.s32.totalorder (!%p4416_p10), %s4390_s29, 0 }
  0xba   : > { %531 = sbr.rel (%p4416_p10) target bundleno = 3141 (0xc45), region = 56  ;;  %s534_s6 = scalar_lea.sflag (!%p4416_p10), [#allocation3], %s3667_s19 }
  0xbb   : > { %s2703_s14 = smul.u32 (!%p4416_p10), 24, %s3667_s19 }
  0xbd   : > { %s3671_s20 = scalar_lea.vmem (!%p4416_p10), [#allocation2], %s2703_s14 }
  0xc1   : > { %3195 = dma.done.wait (%p4417_p11), %s534_s6, 384  }
  0xc2   : > { %3197 = vsyncadd (%p4417_p11), %s534_s6, 4294966912  ;;  %p4418_p8 = scmp.eq.s32.totalorder %s3435_s28, 0 }
  0xc4   : > { %3199 = dma.done.wait (%p4418_p8), [#allocation6], 512   ;;  %p4419_p9 = pmov %p4418_p8 }
  0xc5   : > { %p4420_p0 = pmov %p4418_p8 }
  0xc6   : > { %3201 = vsyncadd (%p4419_p9), [#allocation6], 4294966784 }
  0xc7   : > { %3203 = dma.done.wait (%p4420_p0), [#allocation9], 256   ;;  %p4421_p2 = pmov %p4420_p0 }
  0xc8   : > { %p4422_p4 = scmp.ne.s32.totalorder %s4391_s10, 0 }
  0xc9   : > { %3205 = vsyncadd (%p4421_p2), [#allocation9], 4294967040 }
  0xca   : > { %3207 = dma.done.wait (%p4422_p4), [#allocation9], 512  }
  0xcb   : > { %3209 = vsyncadd (%p4422_p4), [#allocation9], 4294966784 }
  0xcc   : > { %3211 = dma.done.wait (%p4422_p4), [#allocation12], 512  }
  0xcd   : > { %3213 = vsyncadd (%p4422_p4), [#allocation12], 4294966784  ;;  %s4423_s1 = sld [smem:[#allocation39_spill]]  ;;  %s3694_s12 = scalar_lea.vmem [#allocation13], %s2703_s14 }
  0xce   : > { %s4424_s23 = sld [smem:[#allocation42_spill]] }
  0xd3   : > { %s596_s29 = sand.u32 1, %s4423_s1  }
  0xd4   : > { %s2453_s15 = sshll.u32 %s596_s29, 5  ;;  %p2455_p1 = scmp.ne.s32.totalorder %s4424_s23, 0 }
  0xd5   : > { %s3696_s17 = scalar_lea.vmem [#allocation14], %s2453_s15  ;;  %s3698_s13 = scalar_lea.vmem [#allocation16], %s2453_s15  ;;  %v619_v0 = vld [vmem:[#allocation10] sm:$0xff] (!%p2455_p1)  ;;  %vm623_vm0 = vcmask (!%p2455_p1), 261120   ;;  %v620_v1 = vld [vmem:[#allocation10 + $0x8] sm:$0xff] (!%p2455_p1)  ;;  %v621_v2 = vld [vmem:[#allocation10 + $0x10] sm:$0xff] (!%p2455_p1) }
  0xd6   : > { %618 = sbr.rel (%p2455_p1) target bundleno = 221 (0xdd), region = 84  ;;  %624 = vst.msk [vmem:[%s3696_s17] sm:$0xff] (!%p2455_p1), %vm623_vm0, %v619_v0  ;;  %625 = vst.msk [vmem:[%s3696_s17 + $0x8] sm:$0xff] (!%p2455_p1), %vm623_vm0, %v620_v1  ;;  %v622_v3 = vld [vmem:[#allocation10 + $0x18] sm:$0xff] (!%p2455_p1)  ;;  %v628_v4 = vld [vmem:[#allocation11] sm:$0xff] (!%p2455_p1) }
  0xd7   : > { %626 = vst.msk [vmem:[%s3696_s17 + $0x10] sm:$0xff] (!%p2455_p1), %vm623_vm0, %v621_v2  ;;  %v629_v5 = vld [vmem:[#allocation11 + $0x8] sm:$0xff] (!%p2455_p1)  ;;  %627 = vst.msk [vmem:[%s3696_s17 + $0x18] sm:$0xff] (!%p2455_p1), %vm623_vm0, %v622_v3  ;;  %v630_v6 = vld [vmem:[#allocation11 + $0x10] sm:$0xff] (!%p2455_p1) }
  0xd8   : > { %632 = vst.msk [vmem:[%s3698_s13] sm:$0xff] (!%p2455_p1), %vm623_vm0, %v628_v4  ;;  %633 = vst.msk [vmem:[%s3698_s13 + $0x8] sm:$0xff] (!%p2455_p1), %vm623_vm0, %v629_v5  ;;  %v631_v7 = vld [vmem:[#allocation11 + $0x18] sm:$0xff] (!%p2455_p1) }
  0xd9   : > { %634 = vst.msk [vmem:[%s3698_s13 + $0x10] sm:$0xff] (!%p2455_p1), %vm623_vm0, %v630_v6  ;;  %635 = vst.msk [vmem:[%s3698_s13 + $0x18] sm:$0xff] (!%p2455_p1), %vm623_vm0, %v631_v7 }
  0xdd PF: > { %v2940_v8 = vld [vmem:[#allocation7] sm:$0xff]   ;;  %v3293_v9 = vmov 0.0   ;;  %v2941_v10 = vld [vmem:[#allocation5] sm:$0xff]   ;;  %v2942_v11 = vld [vmem:[#allocation7 + $0x8] sm:$0xff]   ;;  %vm3294_vm1 = vmmov 0   ;;  %vm679_vm2 = vcmask 261120  }
  0xde   : > { %2606 = vmatprep.subr.bf16.mxu0 %v3293_v9  ;;  %2614 = vmatprep.subr.bf16.mxu1 %v3293_v9  ;;  %v2943_v12 = vld [vmem:[#allocation5 + $0x8] sm:$0xff]   ;;  %v654_v13 = vld [vmem:[%s3696_s17] sm:$0xff]  ;;  %s3295_s10 = smov 32   ;;  %s4425_s5 = sld [smem:[#allocation52_spill]]  ;;  %v3773_v63 = vld [vmem:[%s3696_s17 + $0x10] sm:$0xff]  ;;  %vm1125_vm6 = vcmask 257024  }
  0xdf   : > { %2607 = vmatpush3.bf16.msra.mxu0 %v2940_v8  ;;  %2610 = vmatprep.mubr.msk.bf16.mxu0 %vm3294_vm1, %v3293_v9  ;;  %v3719_v14 = vld [vmem:[%s3696_s17 + $0x8] sm:$0xff]  ;;  %v656_v17 = vld [vmem:[%s3698_s13] sm:$0xff]  ;;  %s3296_s11 = smov 64   ;;  %s3297_s30 = smov 96   ;;  %v3776_v0 = vld [vmem:[%s3696_s17 + $0x18] sm:$0xff] }
  0xe0   : > { %2615 = vmatpush3.bf16.msra.mxu1 %v2941_v10  ;;  %2608 = vmatprep.subr.bf16.mxu0 %v3293_v9  ;;  %v3722_v15 = vld [vmem:[%s3671_s20] sm:$0xff]   ;;  %v662_v16 = vpack.c.bf16 %v3719_v14, %v654_v13  ;;  %s4426_s3 = sld [smem:[#allocation42_spill]]  ;;  %s4427_s1 = sld [smem:[#allocation53_spill]]  ;;  %v2946_v60 = vld [vmem:[#allocation8] sm:$0xff]   ;;  %v901_v2 = vpack.c.bf16 %v3776_v0, %v3773_v63  ;;  %v2951_v8 = vld [vmem:[#allocation7 + $0x8] sm:$0xff]  }
  0xe1   : > { %2616 = vmatprep.subr.bf16.mxu1 %v3293_v9  ;;  %2618 = vmatprep.mubr.msk.bf16.mxu1 %vm3294_vm1, %v3293_v9  ;;  %v657_v18 = vld [vmem:[%s3698_s13 + $0x8] sm:$0xff]  ;;  %v878_v54 = vunpack.c.l.bf16 %v3722_v15  ;;  %v879_v55 = vunpack.c.h.bf16 %v3722_v15  ;;  %v2949_v3 = vld [vmem:[#allocation7] sm:$0xff]  }
  0xe2   : > { %803 = vrot.lane.b32.xlu1 %v656_v17, %s3295_s10  ;;  %v2948_v1 = vld [vmem:[#allocation8 + $0x8] sm:$0xff]  }
  0xe3   : > { %2609 = vmatpush3.bf16.msra.mxu0 %v2942_v11  ;;  %v2925_v57 = vpack.i.bf16 %v879_v55, %v878_v54 }
  0xe4   : > { %2617 = vmatpush3.bf16.msra.mxu1 %v2943_v12  ;;  %2622 = vmatprep.subr.bf16.mxu0 %v3293_v9  ;;  %v3741_v20 = vld [vmem:[%s4425_s5] ss:$0 sm:$0xff]  ;;  %s4430_s5 = sld [smem:[#allocation54_spill]] }
  0xe5   : > { %2630 = vmatprep.subr.bf16.mxu1 %v3293_v9 }
  0xe6   : > { %2611 = vmatmul.mubr.msk.bf16.vlgmr.msra.gmra.mrb[0].mxu0 %vm679_vm2, %v662_v16  ;;  %805 = vrot.lane.b32.xlu1 %v657_v18, %s3295_s10  ;;  %s3761_s18 = smul.u32 3, %s4426_s3  ;;  %v2945_v59 = vld [vmem:[%s4427_s1] sm:$0xff]   ;;  %v2947_v61 = vld [vmem:[%s4427_s1 + $0x8] sm:$0xff]  }
  0xe7   : > { %2619 = vmatmul.mubr.msk.bf16.vlgmr.msra.gmra.mrb[0].mxu1 %vm679_vm2, %v3722_v15  ;;  %2626 = vmatprep.mubr.msk.bf16.mxu0 %vm3294_vm1, %v3293_v9 }
  0xe8   : > { %2634 = vmatprep.mubr.msk.bf16.mxu1 %vm3294_vm1, %v3293_v9  ;;  %p651_p5 = scmp.lt.s32.totalorder %s3761_s18, 8  ;;  %2623 = vmatpush3.bf16.msra.mxu0 %v2945_v59  ;;  %s1128_s14 = sadd.s32 1, %s3761_s18 }
  0xe9   : > { %2631 = vmatpush3.bf16.msra.mxu1 %v2946_v60  ;;  %2624 = vmatprep.subr.bf16.mxu0 %v3293_v9  ;;  %p1129_p3 = scmp.lt.s32.totalorder %s1128_s14, 8 }
  0xea   : > { %2632 = vmatprep.subr.bf16.mxu1 %v3293_v9  ;;  %s843_s23 = scalar_select %p651_p5, 1, 0 }
  0xeb   : > { %s1321_s6 = scalar_select %p1129_p3, 1, 0 }
  0xec   : > { %2625 = vmatpush3.bf16.msra.mxu0 %v2947_v61  ;;  %v844_v4 = vstv %s843_s23  ;;  %v2469_v61 = vld [vmem:[%s3698_s13 + $0x10] sm:$0xff] }
  0xed   : > { %2638 = vmatprep.subr.bf16.mxu0 %v3293_v9  ;;  %2633 = vmatpush3.bf16.msra.mxu1 %v2948_v1  ;;  %vm3786_vm3 = vcmp.eq.s32.totalorder %v844_v4, 1  ;;  %v2470_v1 = vld [vmem:[%s3698_s13 + $0x18] sm:$0xff] }
  0xee   : > { %2646 = vmatprep.subr.bf16.mxu1 %v3293_v9 }
  0xef   : > { %2627 = vmatmul.mubr.msk.bf16.vlgmr.msra.gmra.mrb[4].mxu0 %vm679_vm2, %v901_v2 }
  0xf0   : > { %2639 = vmatpush3.bf16.msra.mxu0 %v2949_v3  ;;  %2642 = vmatprep.mubr.msk.bf16.mxu0 %vm3294_vm1, %v3293_v9 }
  0xf1   : > { %2640 = vmatprep.subr.bf16.mxu0 %v3293_v9 }
  0xf4   : > { %2641 = vmatpush3.bf16.msra.mxu0 %v2951_v8 }
  0xf5   : > { %2654 = vmatprep.subr.bf16.mxu0 %v3293_v9 }
 0x154   : > { %v804_v46 = vpop.permute.xlu1 %803 }
 0x158   : > { %v3750_v48 = vpop.permute.xlu1 %805 }
 0x1b9   : > { %v717_v19 = vpop.f32.mrb[0].mxu0 }
 0x1ba   : > { %v778_v21 = vpop.f32.mrb[0].mxu1  ;;  %v2612_v22 = vpop.f32.mrb[1].mxu0 }
 0x1bb   : > { %v779_v23 = vadd.f32 %v778_v21, %v717_v19  ;;  %v2620_v24 = vpop.f32.mrb[1].mxu1  ;;  %v720_v25 = vpop.f32.mrb[2].mxu0 }
 0x1bc   : > { %v781_v26 = vpop.f32.mrb[2].mxu1  ;;  %v2613_v27 = vpop.f32.mrb[3].mxu0  ;;  %v2950_v24 = vld [vmem:[#allocation5] sm:$0xff]  }
 0x1bd   : > { %v785_v28 = vadd.f32 %v3741_v20, %v779_v23  ;;  %v782_v29 = vadd.f32 %v781_v26, %v720_v25  ;;  %v2621_v30 = vpop.f32.mrb[3].mxu1  ;;  %v2952_v27 = vld [vmem:[#allocation5 + $0x8] sm:$0xff]  }
 0x1bf   : > { %2970 = vtanh.f32 %v785_v28  ;;  %v786_v31 = vadd.f32 %v3741_v20, %v782_v29  ;;  %v2465_v34 = vmul.f32 -1.442695, %v785_v28  ;;  %v3821_v28 = vld [vmem:[%s3671_s20 + $0x8] sm:$0xff]  }
 0x1c1   : > { %2972 = vtanh.f32 %v786_v31  ;;  %v2466_v35 = vmul.f32 -1.442695, %v786_v31 }
 0x1c2   : > { %2974 = vpow2.f32 %v2465_v34 }
 0x1c3   : > { %2976 = vpow2.f32 %v2466_v35 }
 0x1c9   : > { %v2971_v32 = vpop.eup %2970 }
 0x1ca   : > { %813 = vrot.lane.b32.xlu0 %v2971_v32, %s3296_s11 }
 0x1cb   : > { %v2973_v33 = vpop.eup %2972 }
 0x1cc   : > { %v2975_v36 = vpop.eup %2974 }
 0x1cd   : > { %v793_v37 = vadd.f32 1.0, %v2975_v36  ;;  %v2977_v38 = vpop.eup %2976 }
 0x1ce   : > { %815 = vrot.lane.b32.xlu0 %v2973_v33, %s3296_s11  ;;  %v794_v39 = vadd.f32 1.0, %v2977_v38  ;;  %v955_v33 = vpop.f32.mrb[4].mxu0 }
 0x1cf   : > { %2978 = vrcp.f32 %v793_v37  ;;  %v2628_v34 = vpop.f32.mrb[5].mxu0  ;;  %v3845_v37 = vld [vmem:[%s4430_s5] ss:$0 sm:$0xff] }
 0x1d0   : > { %2980 = vrcp.f32 %v794_v39  ;;  %v958_v35 = vpop.f32.mrb[6].mxu0 }
 0x1d1   : > { %v2629_v36 = vpop.f32.mrb[7].mxu0 }
 0x1d9   : > { %v2979_v40 = vpop.eup %2978 }
 0x1da   : > { %v2981_v43 = vpop.eup %2980  ;;  %v809_v47 = vmul.f32 %v2979_v40, %v804_v46 }
 0x1db   : > { %v810_v51 = vmul.f32 %v2981_v43, %v3750_v48 }
 0x23c   : > { %v814_v41 = vpop.permute.xlu0 %813 }
 0x23d   : > { %v819_v42 = vmul.f32 %v2979_v40, %v814_v41 }
 0x23f   : > { %823 = vrot.lane.b32.xlu0 %v819_v42, %s3295_s10 }
 0x240   : > { %v816_v44 = vpop.permute.xlu0 %815 }
 0x241   : > { %v820_v45 = vmul.f32 %v2981_v43, %v816_v44 }
 0x243   : > { %825 = vrot.lane.b32.xlu1 %v820_v45, %s3295_s10  ;;  %848 = vrot.lane.b32.xlu0 %v654_v13, %s3297_s30 }
 0x2b1   : > { %v824_v49 = vpop.permute.xlu0 %823 }
 0x2b2   : > { %v829_v50 = vadd.f32 %v824_v49, %v809_v47 }
 0x2b4   : > { %2982 = vtanh.f32 %v829_v50  ;;  %v856_v19 = vsel %vm3786_vm3, %v829_v50, %v804_v46 }
 0x2b5   : > { %v826_v52 = vpop.permute.xlu1 %825  ;;  %v849_v62 = vpop.permute.xlu0 %848 }
 0x2b6   : > { %v830_v53 = vadd.f32 %v826_v52, %v810_v51 }
 0x2b8   : > { %2984 = vtanh.f32 %v830_v53  ;;  %v857_v21 = vsel %vm3786_vm3, %v830_v53, %v3750_v48 }
 0x2be   : > { %v2983_v56 = vpop.eup %2982 }
 0x2bf   : > { %835 = vrot.lane.b32.xlu0 %v2983_v56, %s3296_s11 }
 0x2c2   : > { %v2985_v58 = vpop.eup %2984 }
 0x2c3   : > { %837 = vrot.lane.b32.xlu1 %v2985_v58, %s3296_s11  ;;  %2926 = vrot.lane.b32.xlu0 %v2925_v57, %s3297_s30 }
 0x2c7   : > { %850 = vrot.lane.b32.xlu1 %v3719_v14, %s3297_s30 }
 0x331   : > { %v836_v5 = vpop.permute.xlu0 %835 }
 0x332   : > { %v841_v6 = vmul.f32 %v2979_v40, %v836_v5 }
 0x334   : > { %v854_v10 = vsel %vm3786_vm3, %v841_v6, %v849_v62 }
 0x335   : > { %v838_v11 = vpop.permute.xlu1 %837  ;;  %860 = vrot.lane.b32.xlu1 %v854_v10, %s3295_s10  ;;  %v2927_v12 = vpop.permute.xlu0 %2926 }
 0x336   : > { %v842_v13 = vmul.f32 %v2981_v43, %v838_v11  ;;  %v3796_v16 = vadd.low.f32.bf16 %v854_v10, %v2927_v12 }
 0x339   : > { %v851_v14 = vpop.permute.xlu1 %850 }
 0x33a   : > { %v855_v15 = vsel %vm3786_vm3, %v842_v13, %v851_v14 }
 0x33b   : > { %862 = vrot.lane.b32.xlu0 %v855_v15, %s3295_s10  ;;  %v3799_v17 = vadd.high.f32.bf16 %v855_v15, %v2927_v12 }
 0x33d   : > { %v896_v18 = vpack.c.bf16 %v3799_v17, %v3796_v16 }
 0x33f   : > { %870 = vrot.lane.b32.xlu0 %v856_v19, %s3297_s30  ;;  %963 = vrot.lane.b32.xlu1 %v896_v18, %s3295_s10 }
 0x343   : > { %872 = vrot.lane.b32.xlu1 %v857_v21, %s3297_s30 }
 0x3a7   : > { %v861_v22 = vpop.permute.xlu1 %860 }
 0x3a8   : > { %866 = vst.msk [vmem:[%s3696_s17] sm:$0xff] %vm679_vm2, %v861_v22 }
 0x3ad   : > { %v863_v23 = vpop.permute.xlu0 %862 }
 0x3ae   : > { %867 = vst.msk [vmem:[%s3696_s17 + $0x8] sm:$0xff] %vm679_vm2, %v863_v23 }
 0x3af   : > { %v3825_v30 = vld [vmem:[%s3696_s17] sm:$0xff] }
 0x3b1   : > { %v871_v25 = vpop.permute.xlu0 %870  ;;  %v964_v26 = vpop.permute.xlu1 %963 }
 0x3b2   : > { %876 = vst.msk [vmem:[%s3698_s13] sm:$0xff] %vm679_vm2, %v871_v25  ;;  %2635 = vmatmul.mubr.msk.bf16.vlgmr.msra.gmra.mrb[4].mxu1 %vm679_vm2, %v964_v26 }
 0x3b3   : > { %2647 = vmatpush3.bf16.msra.mxu1 %v2950_v24  ;;  %2650 = vmatprep.mubr.msk.bf16.mxu1 %vm3294_vm1, %v3293_v9 }
 0x3b4   : > { %2648 = vmatprep.subr.bf16.mxu1 %v3293_v9 }
 0x3b5   : > { %v873_v29 = vpop.permute.xlu1 %872  ;;  %v3828_v31 = vld [vmem:[%s3696_s17 + $0x8] sm:$0xff] }
 0x3b6   : > { %877 = vst.msk [vmem:[%s3698_s13 + $0x8] sm:$0xff] %vm679_vm2, %v873_v29  ;;  %v1141_v32 = vpack.c.bf16 %v3828_v31, %v3825_v30 }
 0x3b7   : > { %2649 = vmatpush3.bf16.msra.mxu1 %v2952_v27 }
 0x3b8   : > { %2643 = vmatmul.mubr.msk.bf16.vlgmr.msra.gmra.mrb[8].mxu0 %vm679_vm2, %v1141_v32  ;;  %2662 = vmatprep.subr.bf16.mxu1 %v3293_v9 }
 0x3b9   : > { %2658 = vmatprep.mubr.msk.bf16.mxu0 %vm3294_vm1, %v3293_v9  ;;  %v1135_v25 = vld [vmem:[%s3698_s13] sm:$0xff] }
 0x3ba   : > { %2651 = vmatmul.mubr.msk.bf16.vlgmr.msra.gmra.mrb[8].mxu1 %vm679_vm2, %v3821_v28 }
 0x3bb   : > { %2666 = vmatprep.mubr.msk.bf16.mxu1 %vm3294_vm1, %v3293_v9 }
 0x3bd   : > { %v1136_v32 = vld [vmem:[%s3698_s13 + $0x8] sm:$0xff] }
 0x485   : > { %v1014_v38 = vpop.f32.mrb[4].mxu1 }
 0x486   : > { %v1015_v39 = vadd.f32 %v1014_v38, %v955_v33  ;;  %v2636_v40 = vpop.f32.mrb[5].mxu1 }
 0x487   : > { %v1017_v41 = vpop.f32.mrb[6].mxu1 }
 0x488   : > { %v1021_v42 = vadd.f32 %v3845_v37, %v1015_v39  ;;  %v1018_v43 = vadd.f32 %v1017_v41, %v958_v35  ;;  %v2637_v44 = vpop.f32.mrb[7].mxu1 }
 0x489   : > { %v3897_v44 = vstv %s1321_s6 }
 0x48a   : > { %2986 = vtanh.f32 %v1021_v42  ;;  %v1022_v45 = vadd.f32 %v3845_v37, %v1018_v43  ;;  %v2477_v2 = vmul.f32 -1.442695, %v1021_v42  ;;  %vm1323_vm4 = vcmp.eq.s32.totalorder %v3897_v44, 1 }
 0x48b   : > { %v1195_v46 = vpop.f32.mrb[8].mxu0 }
 0x48c   : > { %v2644_v47 = vpop.f32.mrb[9].mxu0  ;;  %2988 = vtanh.f32 %v1022_v45  ;;  %v2478_v3 = vmul.f32 -1.442695, %v1022_v45 }
 0x48d   : > { %v1198_v48 = vpop.f32.mrb[10].mxu0  ;;  %v1256_v49 = vpop.f32.mrb[8].mxu1 }
 0x48e   : > { %v1257_v50 = vadd.f32 %v1256_v49, %v1195_v46  ;;  %v2645_v51 = vpop.f32.mrb[11].mxu0  ;;  %v2652_v52 = vpop.f32.mrb[9].mxu1 }
 0x48f   : > { %v1259_v53 = vpop.f32.mrb[10].mxu1 }
 0x490   : > { %v1263_v54 = vadd.f32 %v3741_v20, %v1257_v50  ;;  %v1260_v55 = vadd.f32 %v1259_v53, %v1198_v48  ;;  %v2653_v56 = vpop.f32.mrb[11].mxu1 }
 0x491   : > { %v1356_v56 = vunpack.c.l.bf16 %v3821_v28 }
 0x492   : > { %2990 = vtanh.f32 %v1263_v54  ;;  %v1264_v57 = vadd.f32 %v3741_v20, %v1260_v55  ;;  %v2494_v4 = vmul.f32 -1.442695, %v1263_v54 }
 0x494   : > { %v2987_v58 = vpop.eup %2986  ;;  %2992 = vtanh.f32 %v1264_v57  ;;  %v2495_v5 = vmul.f32 -1.442695, %v1264_v57  ;;  %v1357_v57 = vunpack.c.h.bf16 %v3821_v28  ;;  %v2955_v28 = vld [vmem:[#allocation8] sm:$0xff]  }
 0x495   : > { %1049 = vrot.lane.b32.xlu0 %v2987_v58, %s3296_s11  ;;  %2994 = vpow2.f32 %v2477_v2  ;;  %2663 = vmatpush3.bf16.msra.mxu1 %v2955_v28 }
 0x496   : > { %v2989_v59 = vpop.eup %2988  ;;  %2996 = vpow2.f32 %v2478_v3  ;;  %2664 = vmatprep.subr.bf16.mxu1 %v3293_v9 }
 0x497   : > { %1051 = vrot.lane.b32.xlu1 %v2989_v59, %s3296_s11  ;;  %2998 = vpow2.f32 %v2494_v4  ;;  %v2930_v59 = vpack.i.bf16 %v1357_v57, %v1356_v56 }
 0x498   : > { %3000 = vpow2.f32 %v2495_v5  ;;  %v2957_v5 = vld [vmem:[#allocation8 + $0x8] sm:$0xff]  }
 0x499   : > { %2665 = vmatpush3.bf16.msra.mxu1 %v2957_v5 }
 0x49a   : > { %2678 = vmatprep.subr.bf16.mxu1 %v3293_v9 }
 0x49c   : > { %v2991_v60 = vpop.eup %2990 }
 0x49d   : > { %1291 = vrot.lane.b32.xlu0 %v2991_v60, %s3296_s11 }
 0x49e   : > { %v2993_v62 = vpop.eup %2992 }
 0x49f   : > { %1293 = vrot.lane.b32.xlu1 %v2993_v62, %s3296_s11  ;;  %v2995_v6 = vpop.eup %2994 }
 0x4a0   : > { %v2997_v8 = vpop.eup %2996  ;;  %v1029_v10 = vadd.f32 1.0, %v2995_v6 }
 0x4a1   : > { %1039 = vrot.lane.b32.xlu0 %v2469_v61, %s3295_s10  ;;  %v1030_v11 = vadd.f32 1.0, %v2997_v8  ;;  %v2999_v12 = vpop.eup %2998 }
 0x4a2   : > { %3002 = vrcp.f32 %v1029_v10  ;;  %v3001_v13 = vpop.eup %3000  ;;  %v1271_v14 = vadd.f32 1.0, %v2999_v12 }
 0x4a3   : > { %1041 = vrot.lane.b32.xlu1 %v2470_v1, %s3295_s10  ;;  %3004 = vrcp.f32 %v1030_v11  ;;  %v1272_v15 = vadd.f32 1.0, %v3001_v13  ;;  %v2956_v1 = vld [vmem:[%s4427_s1 + $0x8] sm:$0xff]  }
 0x4a4   : > { %3006 = vrcp.f32 %v1271_v14 }
 0x4a5   : > { %3008 = vrcp.f32 %v1272_v15 }
 0x4ac   : > { %v3859_v18 = vpop.eup %3002 }
 0x4ad   : > { %v3862_v22 = vpop.eup %3004 }
 0x4ae   : > { %v3869_v26 = vpop.eup %3006 }
 0x4af   : > { %v3874_v33 = vpop.eup %3008 }
 0x507   : > { %v1050_v19 = vpop.permute.xlu0 %1049 }
 0x508   : > { %v1055_v21 = vmul.f32 %v3859_v18, %v1050_v19 }
 0x509   : > { %v1052_v23 = vpop.permute.xlu1 %1051 }
 0x50a   : > { %1059 = vrot.lane.b32.xlu0 %v1055_v21, %s3295_s10  ;;  %v1056_v24 = vmul.f32 %v3862_v22, %v1052_v23 }
 0x50c   : > { %1061 = vrot.lane.b32.xlu1 %v1056_v24, %s3295_s10 }
 0x50e   : > { %1281 = vrot.lane.b32.xlu0 %v1135_v25, %s3295_s10 }
 0x50f   : > { %v1292_v27 = vpop.permute.xlu0 %1291 }
 0x510   : > { %v1297_v29 = vmul.f32 %v3869_v26, %v1292_v27  ;;  %1283 = vrot.lane.b32.xlu1 %v1136_v32, %s3295_s10 }
 0x511   : > { %v1294_v34 = vpop.permute.xlu1 %1293 }
 0x512   : > { %1301 = vrot.lane.b32.xlu0 %v1297_v29, %s3295_s10  ;;  %v1298_v35 = vmul.f32 %v3874_v33, %v1294_v34  ;;  %v2958_v34 = vld [vmem:[#allocation7] sm:$0xff]  }
 0x513   : > { %v3884_v36 = vpop.permute.xlu0 %1039 }
 0x514   : > { %1303 = vrot.lane.b32.xlu1 %v1298_v35, %s3295_s10  ;;  %v1045_v38 = vmul.f32 %v3859_v18, %v3884_v36 }
 0x515   : > { %v3888_v39 = vpop.permute.xlu1 %1041 }
 0x516   : > { %1081 = vrot.lane.b32.xlu0 %v3773_v63, %s3297_s30  ;;  %v1046_v42 = vmul.f32 %v3862_v22, %v3888_v39 }
 0x518   : > { %1083 = vrot.lane.b32.xlu1 %v3776_v0, %s3297_s30 }
 0x57c   : > { %v1060_v40 = vpop.permute.xlu0 %1059 }
 0x57d   : > { %v3890_v41 = vadd.f32 %v1060_v40, %v1045_v38  ;;  %v2959_v38 = vld [vmem:[#allocation5] sm:$0xff]  }
 0x57e   : > { %v1062_v63 = vpop.permute.xlu1 %1061 }
 0x57f   : > { %3010 = vtanh.f32 %v3890_v41  ;;  %v3895_v0 = vadd.f32 %v1062_v63, %v1046_v42  ;;  %v1089_v25 = vsel %vm3786_vm3, %v3890_v41, %v3884_v36  ;;  %v2961_v42 = vld [vmem:[#allocation5 + $0x8] sm:$0xff]   ;;  %v3993_v63 = vld [vmem:[%s3671_s20 + $0x10] sm:$0xff]   ;;  %s1604_s20 = sadd.s32 2, %s3761_s18 }
 0x580   : > { %v1282_v43 = vpop.permute.xlu0 %1281  ;;  %p1605_p6 = scmp.lt.s32.totalorder %s1604_s20, 8 }
 0x581   : > { %3012 = vtanh.f32 %v3895_v0  ;;  %v1287_v45 = vmul.f32 %v3869_v26, %v1282_v43 }
 0x582   : > { %v1284_v46 = vpop.permute.xlu1 %1283  ;;  %s1797_s16 = scalar_select %p1605_p6, 1, 0 }
 0x583   : > { %v1288_v49 = vmul.f32 %v3874_v33, %v1284_v46 }
 0x584   : > { %v1302_v47 = vpop.permute.xlu0 %1301 }
 0x585   : > { %v1307_v48 = vadd.f32 %v1302_v47, %v1287_v45 }
 0x586   : > { %v1304_v50 = vpop.permute.xlu1 %1303 }
 0x587   : > { %3014 = vtanh.f32 %v1307_v48  ;;  %v1334_v51 = vsel %vm1323_vm4, %v1307_v48, %v1282_v43  ;;  %v1308_v52 = vadd.f32 %v1304_v50, %v1288_v49 }
 0x588   : > { %v1082_v61 = vpop.permute.xlu0 %1081 }
 0x589   : > { %v3011_v53 = vpop.eup %3010  ;;  %3016 = vtanh.f32 %v1308_v52  ;;  %v1335_v54 = vsel %vm1323_vm4, %v1308_v52, %v1284_v46 }
 0x58a   : > { %1071 = vrot.lane.b32.xlu0 %v3011_v53, %s3296_s11  ;;  %v1084_v62 = vpop.permute.xlu1 %1083 }
 0x58b   : > { %v3013_v55 = vpop.eup %3012 }
 0x58c   : > { %1073 = vrot.lane.b32.xlu1 %v3013_v55, %s3296_s11 }
 0x58e   : > { %1326 = vrot.lane.b32.xlu0 %v3825_v30, %s3297_s30  ;;  %v2954_v30 = vld [vmem:[%s4427_s1] sm:$0xff]  }
 0x58f   : > { %2655 = vmatpush3.bf16.msra.mxu0 %v2954_v30 }
 0x590   : > { %2656 = vmatprep.subr.bf16.mxu0 %v3293_v9 }
 0x591   : > { %v3015_v58 = vpop.eup %3014 }
 0x592   : > { %1313 = vrot.lane.b32.xlu0 %v3015_v58, %s3296_s11 }
 0x593   : > { %v3017_v60 = vpop.eup %3016  ;;  %2657 = vmatpush3.bf16.msra.mxu0 %v2956_v1 }
 0x594   : > { %1315 = vrot.lane.b32.xlu1 %v3017_v60, %s3296_s11  ;;  %2670 = vmatprep.subr.bf16.mxu0 %v3293_v9 }
 0x596   : > { %2931 = vrot.lane.b32.xlu0 %v2930_v59, %s3297_s30 }
 0x598   : > { %1328 = vrot.lane.b32.xlu1 %v3828_v31, %s3297_s30 }
 0x5fc   : > { %v1072_v2 = vpop.permute.xlu0 %1071 }
 0x5fd   : > { %v1077_v3 = vmul.f32 %v3859_v18, %v1072_v2 }
 0x5fe   : > { %v1074_v31 = vpop.permute.xlu1 %1073 }
 0x5ff   : > { %v3930_v4 = vsel %vm3786_vm3, %v1077_v3, %v1082_v61  ;;  %v1078_v6 = vmul.f32 %v3862_v22, %v1074_v31 }
 0x600   : > { %v1327_v8 = vpop.permute.xlu0 %1326  ;;  %1093 = vrot.lane.b32.xlu1 %v3930_v4, %s3295_s10 }
 0x601   : > { %v3937_v10 = vsel %vm3786_vm3, %v1078_v6, %v1084_v62 }
 0x602   : > { %1095 = vrot.lane.b32.xlu0 %v3937_v10, %s3295_s10 }
 0x604   : > { %v1314_v11 = vpop.permute.xlu0 %1313 }
 0x605   : > { %v1319_v12 = vmul.f32 %v3869_v26, %v1314_v11  ;;  %v1090_v26 = vsel %vm3786_vm3, %v3895_v0, %v3888_v39  ;;  %v2960_v39 = vld [vmem:[#allocation7 + $0x8] sm:$0xff]  }
 0x606   : > { %v1316_v13 = vpop.permute.xlu1 %1315 }
 0x607   : > { %v1332_v14 = vsel %vm1323_vm4, %v1319_v12, %v1327_v8  ;;  %v1320_v18 = vmul.f32 %v3874_v33, %v1316_v13 }
 0x608   : > { %v2932_v15 = vpop.permute.xlu0 %2931  ;;  %1338 = vrot.lane.b32.xlu1 %v1332_v14, %s3295_s10 }
 0x609   : > { %v3947_v19 = vadd.low.f32.bf16 %v1332_v14, %v2932_v15 }
 0x60a   : > { %v1329_v21 = vpop.permute.xlu1 %1328 }
 0x60b   : > { %v1333_v22 = vsel %vm1323_vm4, %v1320_v18, %v1329_v21 }
 0x60c   : > { %1340 = vrot.lane.b32.xlu0 %v1333_v22, %s3295_s10  ;;  %v3952_v23 = vadd.high.f32.bf16 %v1333_v22, %v2932_v15 }
 0x60e   : > { %v1372_v24 = vpack.c.bf16 %v3952_v23, %v3947_v19 }
 0x610   : > { %1103 = vrot.lane.b32.xlu0 %v1089_v25, %s3297_s30  ;;  %1439 = vrot.lane.b32.xlu1 %v1372_v24, %s3295_s10 }
 0x614   : > { %1348 = vrot.lane.b32.xlu0 %v1334_v51, %s3297_s30  ;;  %1105 = vrot.lane.b32.xlu1 %v1090_v26, %s3297_s30 }
 0x618   : > { %1350 = vrot.lane.b32.xlu1 %v1335_v54, %s3297_s30 }
 0x672   : > { %v1094_v27 = vpop.permute.xlu1 %1093 }
 0x673   : > { %2479 = vst.msk [vmem:[%s3696_s17 + $0x10] sm:$0xff] %vm679_vm2, %v1094_v27 }
 0x674   : > { %v1096_v29 = vpop.permute.xlu0 %1095 }
 0x675   : > { %2480 = vst.msk [vmem:[%s3696_s17 + $0x18] sm:$0xff] %vm679_vm2, %v1096_v29 }
 0x67a   : > { %v1339_v32 = vpop.permute.xlu1 %1338  ;;  %v3976_v33 = vld [vmem:[%s3696_s17 + $0x10] sm:$0xff] }
 0x67b   : > { %1344 = vst.msk [vmem:[%s3696_s17] sm:$0xff] %vm679_vm2, %v1339_v32 }
 0x67c   : > { %v3979_v7 = vld [vmem:[%s3696_s17 + $0x18] sm:$0xff] }
 0x67d   : > { %v1377_v35 = vpack.c.bf16 %v3979_v7, %v3976_v33 }
 0x67e   : > { %v1341_v36 = vpop.permute.xlu0 %1340 }
 0x67f   : > { %1345 = vst.msk [vmem:[%s3696_s17 + $0x8] sm:$0xff] %vm679_vm2, %v1341_v36  ;;  %2659 = vmatmul.mubr.msk.bf16.vlgmr.msra.gmra.mrb[12].mxu0 %vm679_vm2, %v1377_v35 }
 0x680   : > { %2671 = vmatpush3.bf16.msra.mxu0 %v2958_v34  ;;  %2674 = vmatprep.mubr.msk.bf16.mxu0 %vm3294_vm1, %v3293_v9 }
 0x681   : > { %2672 = vmatprep.subr.bf16.mxu0 %v3293_v9 }
 0x682   : > { %v1104_v40 = vpop.permute.xlu0 %1103  ;;  %v1440_v41 = vpop.permute.xlu1 %1439  ;;  %v3999_v45 = vld [vmem:[%s3696_s17] sm:$0xff] }
 0x683   : > { %2481 = vst.msk [vmem:[%s3698_s13 + $0x10] sm:$0xff] %vm679_vm2, %v1104_v40  ;;  %2667 = vmatmul.mubr.msk.bf16.vlgmr.msra.gmra.mrb[12].mxu1 %vm679_vm2, %v1440_v41 }
 0x684   : > { %2679 = vmatpush3.bf16.msra.mxu1 %v2959_v38  ;;  %2673 = vmatpush3.bf16.msra.mxu0 %v2960_v39 }
 0x685   : > { %2680 = vmatprep.subr.bf16.mxu1 %v3293_v9  ;;  %2682 = vmatprep.mubr.msk.bf16.mxu1 %vm3294_vm1, %v3293_v9 }
 0x686   : > { %v1349_v0 = vpop.permute.xlu0 %1348  ;;  %v1106_v43 = vpop.permute.xlu1 %1105  ;;  %v4002_v46 = vld [vmem:[%s3696_s17 + $0x8] sm:$0xff]  ;;  %2686 = vmatprep.subr.bf16.mxu0 %v3293_v9 }
 0x687   : > { %1354 = vst.msk [vmem:[%s3698_s13] sm:$0xff] %vm679_vm2, %v1349_v0  ;;  %2482 = vst.msk [vmem:[%s3698_s13 + $0x18] sm:$0xff] %vm679_vm2, %v1106_v43  ;;  %v1617_v47 = vpack.c.bf16 %v4002_v46, %v3999_v45 }
 0x688   : > { %2681 = vmatpush3.bf16.msra.mxu1 %v2961_v42 }
 0x689   : > { %2675 = vmatmul.mubr.msk.bf16.vlgmr.msra.gmra.mrb[16].mxu0 %vm679_vm2, %v1617_v47  ;;  %2694 = vmatprep.subr.bf16.mxu1 %v3293_v9 }
 0x68a   : > { %v1351_v48 = vpop.permute.xlu1 %1350  ;;  %2690 = vmatprep.mubr.msk.bf16.mxu0 %vm3294_vm1, %v3293_v9  ;;  %v2498_v18 = vld [vmem:[%s3698_s13 + $0x10] sm:$0xff] }
 0x68b   : > { %1355 = vst.msk [vmem:[%s3698_s13 + $0x8] sm:$0xff] %vm679_vm2, %v1351_v48  ;;  %2683 = vmatmul.mubr.msk.bf16.vlgmr.msra.gmra.mrb[16].mxu1 %vm679_vm2, %v3993_v63 }
 0x68c   : > { %2698 = vmatprep.mubr.msk.bf16.mxu1 %vm3294_vm1, %v3293_v9 }
 0x68e   : > { %v2499_v21 = vld [vmem:[%s3698_s13 + $0x18] sm:$0xff]  ;;  %v1611_v47 = vld [vmem:[%s3698_s13] sm:$0xff] }
 0x752   : > { %v1431_v49 = vpop.f32.mrb[12].mxu0 }
 0x753   : > { %v2660_v50 = vpop.f32.mrb[13].mxu0 }
 0x754   : > { %v1434_v51 = vpop.f32.mrb[14].mxu0 }
 0x755   : > { %v2661_v52 = vpop.f32.mrb[15].mxu0 }
 0x756   : > { %v1490_v53 = vpop.f32.mrb[12].mxu1 }
 0x757   : > { %v1491_v54 = vadd.f32 %v1490_v53, %v1431_v49  ;;  %v2668_v55 = vpop.f32.mrb[13].mxu1 }
 0x758   : > { %v1493_v56 = vpop.f32.mrb[14].mxu1 }
 0x759   : > { %v1497_v57 = vadd.f32 %v3845_v37, %v1491_v54  ;;  %v1494_v58 = vadd.f32 %v1493_v56, %v1434_v51  ;;  %v2669_v59 = vpop.f32.mrb[15].mxu1  ;;  %v1612_v51 = vld [vmem:[%s3698_s13 + $0x8] sm:$0xff] }
 0x75b   : > { %3018 = vtanh.f32 %v1497_v57  ;;  %v1498_v60 = vadd.f32 %v3845_v37, %v1494_v58 }
 0x75c   : > { %v1671_v61 = vpop.f32.mrb[16].mxu0 }
 0x75d   : > { %v2676_v30 = vpop.f32.mrb[17].mxu0  ;;  %3020 = vtanh.f32 %v1498_v60  ;;  %v2507_v22 = vmul.f32 -1.442695, %v1498_v60 }
 0x75e   : > { %v1674_v62 = vpop.f32.mrb[18].mxu0  ;;  %v1732_v28 = vpop.f32.mrb[16].mxu1  ;;  %v4068_v30 = vstv %s1797_s16 }
 0x75f   : > { %v1733_v1 = vadd.f32 %v1732_v28, %v1671_v61  ;;  %v2677_v2 = vpop.f32.mrb[19].mxu0  ;;  %v2684_v3 = vpop.f32.mrb[17].mxu1  ;;  %vm1799_vm5 = vcmp.eq.s32.totalorder %v4068_v30, 1 }
 0x760   : > { %v1735_v31 = vpop.f32.mrb[18].mxu1 }
 0x761   : > { %v1739_v5 = vadd.f32 %v3741_v20, %v1733_v1  ;;  %v1736_v6 = vadd.f32 %v1735_v31, %v1674_v62  ;;  %v2685_v8 = vpop.f32.mrb[19].mxu1 }
 0x763   : > { %3022 = vtanh.f32 %v1739_v5  ;;  %v1740_v11 = vadd.f32 %v3741_v20, %v1736_v6  ;;  %v2506_v20 = vmul.f32 -1.442695, %v1497_v57  ;;  %v2525_v24 = vmul.f32 -1.442695, %v1739_v5 }
 0x765   : > { %v3019_v12 = vpop.eup %3018  ;;  %3024 = vtanh.f32 %v1740_v11  ;;  %v2526_v25 = vmul.f32 -1.442695, %v1740_v11 }
 0x766   : > { %1525 = vrot.lane.b32.xlu0 %v3019_v12, %s3296_s11  ;;  %3026 = vpow2.f32 %v2506_v20 }
 0x767   : > { %v3021_v13 = vpop.eup %3020  ;;  %3028 = vpow2.f32 %v2507_v22  ;;  %v2965_v22 = vld [vmem:[%s4427_s1 + $0x8] sm:$0xff]  }
 0x768   : > { %1527 = vrot.lane.b32.xlu1 %v3021_v13, %s3296_s11  ;;  %3030 = vpow2.f32 %v2525_v24  ;;  %v1832_v13 = vunpack.c.l.bf16 %v3993_v63 }
 0x769   : > { %3032 = vpow2.f32 %v2526_v25 }
 0x76d   : > { %v3023_v14 = vpop.eup %3022 }
 0x76e   : > { %1767 = vrot.lane.b32.xlu0 %v3023_v14, %s3296_s11  ;;  %v1833_v14 = vunpack.c.h.bf16 %v3993_v63  ;;  %v2964_v63 = vld [vmem:[#allocation8] sm:$0xff]  }
 0x76f   : > { %v3025_v15 = vpop.eup %3024  ;;  %2695 = vmatpush3.bf16.msra.mxu1 %v2964_v63 }
 0x770   : > { %1769 = vrot.lane.b32.xlu1 %v3025_v15, %s3296_s11  ;;  %v3027_v26 = vpop.eup %3026  ;;  %2696 = vmatprep.subr.bf16.mxu1 %v3293_v9 }
 0x771   : > { %v3029_v27 = vpop.eup %3028  ;;  %v1505_v29 = vadd.f32 1.0, %v3027_v26 }
 0x772   : > { %1515 = vrot.lane.b32.xlu0 %v2498_v18, %s3295_s10  ;;  %v1506_v32 = vadd.f32 1.0, %v3029_v27  ;;  %v3031_v34 = vpop.eup %3030  ;;  %v2935_v18 = vpack.i.bf16 %v1833_v14, %v1832_v13 }
 0x773   : > { %3034 = vrcp.f32 %v1505_v29  ;;  %v3033_v35 = vpop.eup %3032  ;;  %v1747_v36 = vadd.f32 1.0, %v3031_v34  ;;  %v2966_v29 = vld [vmem:[#allocation8 + $0x8] sm:$0xff]  }
 0x774   : > { %1517 = vrot.lane.b32.xlu1 %v2499_v21, %s3295_s10  ;;  %3036 = vrcp.f32 %v1506_v32  ;;  %v1748_v38 = vadd.f32 1.0, %v3033_v35  ;;  %2697 = vmatpush3.bf16.msra.mxu1 %v2966_v29 }
 0x775   : > { %3038 = vrcp.f32 %v1747_v36 }
 0x776   : > { %3040 = vrcp.f32 %v1748_v38 }
 0x77d   : > { %v4033_v39 = vpop.eup %3034 }
 0x77e   : > { %v4036_v42 = vpop.eup %3036 }
 0x77f   : > { %v4043_v48 = vpop.eup %3038 }
 0x780   : > { %v4048_v52 = vpop.eup %3040 }
 0x7d8   : > { %v1526_v40 = vpop.permute.xlu0 %1525 }
 0x7d9   : > { %v1531_v41 = vmul.f32 %v4033_v39, %v1526_v40 }
 0x7da   : > { %v1528_v0 = vpop.permute.xlu1 %1527 }
 0x7db   : > { %1535 = vrot.lane.b32.xlu0 %v1531_v41, %s3295_s10  ;;  %v1532_v43 = vmul.f32 %v4036_v42, %v1528_v0 }
 0x7dd   : > { %1537 = vrot.lane.b32.xlu1 %v1532_v43, %s3295_s10 }
 0x7df   : > { %1757 = vrot.lane.b32.xlu0 %v1611_v47, %s3295_s10 }
 0x7e0   : > { %v1768_v49 = vpop.permute.xlu0 %1767 }
 0x7e1   : > { %v1773_v50 = vmul.f32 %v4043_v48, %v1768_v49  ;;  %1759 = vrot.lane.b32.xlu1 %v1612_v51, %s3295_s10 }
 0x7e2   : > { %v1770_v53 = vpop.permute.xlu1 %1769 }
 0x7e3   : > { %1777 = vrot.lane.b32.xlu0 %v1773_v50, %s3295_s10  ;;  %v1774_v54 = vmul.f32 %v4048_v52, %v1770_v53 }
 0x7e4   : > { %v4058_v55 = vpop.permute.xlu0 %1515 }
 0x7e5   : > { %1779 = vrot.lane.b32.xlu1 %v1774_v54, %s3295_s10  ;;  %v1521_v56 = vmul.f32 %v4033_v39, %v4058_v55 }
 0x7e6   : > { %v4062_v57 = vpop.permute.xlu1 %1517 }
 0x7e7   : > { %1557 = vrot.lane.b32.xlu0 %v3976_v33, %s3297_s30  ;;  %v1522_v60 = vmul.f32 %v4036_v42, %v4062_v57 }
 0x7e9   : > { %1559 = vrot.lane.b32.xlu1 %v3979_v7, %s3297_s30 }
 0x84d   : > { %v1536_v58 = vpop.permute.xlu0 %1535 }
 0x84e   : > { %v1541_v59 = vadd.f32 %v1536_v58, %v1521_v56 }
 0x84f   : > { %v1538_v33 = vpop.permute.xlu1 %1537 }
 0x850   : > { %3042 = vtanh.f32 %v1541_v59  ;;  %v4066_v61 = vadd.f32 %v1538_v33, %v1522_v60  ;;  %v1565_v38 = vsel %vm1323_vm4, %v1541_v59, %v4058_v55 }
 0x851   : > { %v1758_v7 = vpop.permute.xlu0 %1757 }
 0x852   : > { %3044 = vtanh.f32 %v4066_v61  ;;  %v1763_v62 = vmul.f32 %v4043_v48, %v1758_v7  ;;  %v1566_v50 = vsel %vm1323_vm4, %v4066_v61, %v4062_v57 }
 0x853   : > { %v1760_v28 = vpop.permute.xlu1 %1759 }
 0x854   : > { %v1764_v3 = vmul.f32 %v4048_v52, %v1760_v28 }
 0x855   : > { %v1778_v1 = vpop.permute.xlu0 %1777 }
 0x856   : > { %v1783_v2 = vadd.f32 %v1778_v1, %v1763_v62 }
 0x857   : > { %v1780_v31 = vpop.permute.xlu1 %1779 }
 0x858   : > { %3046 = vtanh.f32 %v1783_v2  ;;  %v4076_v5 = vsel %vm1799_vm5, %v1783_v2, %v1758_v7  ;;  %v1784_v6 = vadd.f32 %v1780_v31, %v1764_v3 }
 0x859   : > { %v1558_v20 = vpop.permute.xlu0 %1557 }
 0x85a   : > { %v3043_v8 = vpop.eup %3042  ;;  %3048 = vtanh.f32 %v1784_v6  ;;  %v4081_v11 = vsel %vm1799_vm5, %v1784_v6, %v1760_v28 }
 0x85b   : > { %1547 = vrot.lane.b32.xlu0 %v3043_v8, %s3296_s11  ;;  %v1560_v24 = vpop.permute.xlu1 %1559 }
 0x85c   : > { %v3045_v12 = vpop.eup %3044 }
 0x85d   : > { %1549 = vrot.lane.b32.xlu1 %v3045_v12, %s3296_s11 }
 0x85f   : > { %1802 = vrot.lane.b32.xlu0 %v3999_v45, %s3297_s30  ;;  %v2963_v45 = vld [vmem:[%s4427_s1] sm:$0xff]  }
 0x860   : > { %2687 = vmatpush3.bf16.msra.mxu0 %v2963_v45 }
 0x861   : > { %2688 = vmatprep.subr.bf16.mxu0 %v3293_v9 }
 0x862   : > { %v3047_v15 = vpop.eup %3046 }
 0x863   : > { %1789 = vrot.lane.b32.xlu0 %v3047_v15, %s3296_s11 }
 0x864   : > { %v3049_v21 = vpop.eup %3048  ;;  %2689 = vmatpush3.bf16.msra.mxu0 %v2965_v22 }
 0x865   : > { %1791 = vrot.lane.b32.xlu1 %v3049_v21, %s3296_s11 }
 0x867   : > { %2936 = vrot.lane.b32.xlu0 %v2935_v18, %s3297_s30 }
 0x869   : > { %1804 = vrot.lane.b32.xlu1 %v4002_v46, %s3297_s30 }
 0x8cd   : > { %v1548_v25 = vpop.permute.xlu0 %1547 }
 0x8ce   : > { %v1553_v26 = vmul.f32 %v4033_v39, %v1548_v25 }
 0x8cf   : > { %v1550_v46 = vpop.permute.xlu1 %1549 }
 0x8d0   : > { %v4104_v27 = vsel %vm1323_vm4, %v1553_v26, %v1558_v20  ;;  %v1554_v32 = vmul.f32 %v4036_v42, %v1550_v46 }
 0x8d1   : > { %v1803_v34 = vpop.permute.xlu0 %1802  ;;  %1569 = vrot.lane.b32.xlu1 %v4104_v27, %s3295_s10 }
 0x8d2   : > { %v4111_v35 = vsel %vm1323_vm4, %v1554_v32, %v1560_v24 }
 0x8d3   : > { %1571 = vrot.lane.b32.xlu0 %v4111_v35, %s3295_s10 }
 0x8d5   : > { %v1790_v9 = vpop.permute.xlu0 %1789 }
 0x8d6   : > { %v1795_v36 = vmul.f32 %v4043_v48, %v1790_v9 }
 0x8d7   : > { %1579 = vrot.lane.b32.xlu0 %v1565_v38, %s3297_s30  ;;  %v1792_v39 = vpop.permute.xlu1 %1791 }
 0x8d8   : > { %v1796_v41 = vmul.f32 %v4048_v52, %v1792_v39  ;;  %v4123_v42 = vsel %vm1799_vm5, %v1795_v36, %v1803_v34 }
 0x8d9   : > { %v2937_v40 = vpop.permute.xlu0 %2936 }
 0x8da   : > { %v4126_v0 = vadd.low.f32.bf16 %v4123_v42, %v2937_v40 }
 0x8db   : > { %v1805_v43 = vpop.permute.xlu1 %1804 }
 0x8dc   : > { %v4130_v47 = vsel %vm1799_vm5, %v1796_v41, %v1805_v43  ;;  %v1111_v43 = vadd.f32 %v3796_v16, %v3930_v4  ;;  %v1588_v16 = vadd.f32 %v3952_v23, %v4111_v35 }
 0x8dd   : > { %v4133_v48 = vadd.high.f32.bf16 %v4130_v47, %v2937_v40 }
 0x8df   : > { %v1848_v49 = vpack.c.bf16 %v4133_v48, %v4126_v0 }
 0x8e1   : > { %1915 = vrot.lane.b32.xlu1 %v1848_v49, %s3295_s10  ;;  %v1112_v49 = vadd.f32 %v3799_v17, %v3937_v10  ;;  %v2564_v17 = vpack.c.bf16 %v1588_v16, %v1588_v16 }
 0x8e5   : > { %1581 = vrot.lane.b32.xlu1 %v1566_v50, %s3297_s30  ;;  %v2561_v50 = vpack.c.bf16 %v1111_v43, %v1111_v43 }
 0x943   : > { %v1570_v51 = vpop.permute.xlu1 %1569 }
 0x944   : > { %2508 = vst.msk [vmem:[%s3696_s17 + $0x10] sm:$0xff] %vm679_vm2, %v1570_v51  ;;  %v1587_v51 = vadd.f32 %v3947_v19, %v4104_v27 }
 0x945   : > { %v1572_v52 = vpop.permute.xlu0 %1571 }
 0x946   : > { %2509 = vst.msk [vmem:[%s3696_s17 + $0x18] sm:$0xff] %vm679_vm2, %v1572_v52  ;;  %v2562_v52 = vpack.c.bf16 %v1112_v49, %v1112_v49  ;;  %v2563_v4 = vpack.c.bf16 %v1587_v51, %v1587_v51 }
 0x949   : > { %v1580_v53 = vpop.permute.xlu0 %1579 }
 0x94a   : > { %2510 = vst.msk [vmem:[%s3698_s13 + $0x10] sm:$0xff] %vm679_vm2, %v1580_v53 }
 0x94b   : > { %v2527_v54 = vld [vmem:[%s3696_s17 + $0x10] sm:$0xff] }
 0x94d   : > { %v4151_v55 = vld [vmem:[%s3696_s17 + $0x18] sm:$0xff] }
 0x94e   : > { %v1853_v56 = vpack.c.bf16 %v4151_v55, %v2527_v54 }
 0x950   : > { %2691 = vmatmul.mubr.msk.bf16.vlgmr.msra.gmra.mrb[20].mxu0 %vm679_vm2, %v1853_v56 }
 0x951   : > { %v2529_v12 = vld [vmem:[%s3698_s13 + $0x10] sm:$0xff] }
 0x953   : > { %v1916_v44 = vpop.permute.xlu1 %1915 }
 0x954   : > { %2699 = vmatmul.mubr.msk.bf16.vlgmr.msra.gmra.mrb[20].mxu1 %vm679_vm2, %v1916_v44 }
 0x957   : > { %v1582_v57 = vpop.permute.xlu1 %1581 }
 0x958   : > { %2511 = vst.msk [vmem:[%s3698_s13 + $0x18] sm:$0xff] %vm679_vm2, %v1582_v57 }
 0x95f   : > { %v2530_v13 = vld [vmem:[%s3698_s13 + $0x18] sm:$0xff] }
 0xa23   : > { %v1907_v58 = vpop.f32.mrb[20].mxu0 }
 0xa24   : > { %v2692_v59 = vpop.f32.mrb[21].mxu0 }
 0xa25   : > { %v1910_v60 = vpop.f32.mrb[22].mxu0 }
 0xa26   : > { %v2693_v33 = vpop.f32.mrb[23].mxu0 }
 0xa27   : > { %v1966_v61 = vpop.f32.mrb[20].mxu1 }
 0xa28   : > { %v1967_v7 = vadd.f32 %v1966_v61, %v1907_v58  ;;  %v2700_v62 = vpop.f32.mrb[21].mxu1 }
 0xa29   : > { %v1969_v28 = vpop.f32.mrb[22].mxu1 }
 0xa2a   : > { %v1973_v1 = vadd.f32 %v3845_v37, %v1967_v7  ;;  %v1970_v2 = vadd.f32 %v1969_v28, %v1910_v60  ;;  %v2701_v3 = vpop.f32.mrb[23].mxu1 }
 0xa2c   : > { %3050 = vtanh.f32 %v1973_v1  ;;  %v1974_v31 = vadd.f32 %v3845_v37, %v1970_v2  ;;  %v2537_v14 = vmul.f32 -1.442695, %v1973_v1 }
 0xa2e   : > { %3052 = vtanh.f32 %v1974_v31  ;;  %v2538_v15 = vmul.f32 -1.442695, %v1974_v31 }
 0xa2f   : > { %3054 = vpow2.f32 %v2537_v14 }
 0xa30   : > { %3056 = vpow2.f32 %v2538_v15 }
 0xa36   : > { %v3051_v6 = vpop.eup %3050 }
 0xa37   : > { %2001 = vrot.lane.b32.xlu0 %v3051_v6, %s3296_s11 }
 0xa38   : > { %v3053_v8 = vpop.eup %3052 }
 0xa39   : > { %2003 = vrot.lane.b32.xlu1 %v3053_v8, %s3296_s11  ;;  %v3055_v18 = vpop.eup %3054 }
 0xa3a   : > { %v3057_v21 = vpop.eup %3056  ;;  %v1981_v37 = vadd.f32 1.0, %v3055_v18 }
 0xa3b   : > { %1991 = vrot.lane.b32.xlu0 %v2529_v12, %s3295_s10  ;;  %v1982_v45 = vadd.f32 1.0, %v3057_v21 }
 0xa3c   : > { %3058 = vrcp.f32 %v1981_v37 }
 0xa3d   : > { %1993 = vrot.lane.b32.xlu1 %v2530_v13, %s3295_s10  ;;  %3060 = vrcp.f32 %v1982_v45 }
 0xa46   : > { %v3059_v20 = vpop.eup %3058 }
 0xa47   : > { %v3061_v24 = vpop.eup %3060 }
 0xaa9   : > { %v2002_v63 = vpop.permute.xlu0 %2001 }
 0xaaa   : > { %v2007_v22 = vmul.f32 %v3059_v20, %v2002_v63 }
 0xaab   : > { %v2004_v25 = vpop.permute.xlu1 %2003 }
 0xaac   : > { %2011 = vrot.lane.b32.xlu0 %v2007_v22, %s3295_s10  ;;  %v2008_v26 = vmul.f32 %v3061_v24, %v2004_v25 }
 0xaad   : > { %v1992_v46 = vpop.permute.xlu0 %1991 }
 0xaae   : > { %2013 = vrot.lane.b32.xlu1 %v2008_v26, %s3295_s10  ;;  %v1997_v29 = vmul.f32 %v3059_v20, %v1992_v46 }
 0xaaf   : > { %v1994_v32 = vpop.permute.xlu1 %1993 }
 0xab0   : > { %v1998_v36 = vmul.f32 %v3061_v24, %v1994_v32 }
 0xb1e   : > { %v2012_v34 = vpop.permute.xlu0 %2011 }
 0xb1f   : > { %v2017_v9 = vadd.f32 %v2012_v34, %v1997_v29 }
 0xb20   : > { %v2014_v38 = vpop.permute.xlu1 %2013 }
 0xb21   : > { %3062 = vtanh.f32 %v2017_v9  ;;  %v2018_v39 = vadd.f32 %v2014_v38, %v1998_v36  ;;  %v2041_v10 = vsel %vm1799_vm5, %v2017_v9, %v1992_v46 }
 0xb23   : > { %3064 = vtanh.f32 %v2018_v39  ;;  %v2042_v19 = vsel %vm1799_vm5, %v2018_v39, %v1994_v32 }
 0xb2b   : > { %v3063_v40 = vpop.eup %3062 }
 0xb2c   : > { %2023 = vrot.lane.b32.xlu0 %v3063_v40, %s3296_s11 }
 0xb2d   : > { %v3065_v41 = vpop.eup %3064 }
 0xb2e   : > { %2025 = vrot.lane.b32.xlu1 %v3065_v41, %s3296_s11  ;;  %s2085_s11 = sand.u32 1, %s3435_s28  }
 0xb30   : > { %2033 = vrot.lane.b32.xlu0 %v2527_v54, %s3297_s30 }
 0xb32   : > { %2035 = vrot.lane.b32.xlu1 %v4151_v55, %s3297_s30 }
 0xb34   : > { %1119 = vrot.lane.b32.xlu0 %v2561_v50, %s3295_s10 }
 0xb36   : > { %1121 = vrot.lane.b32.xlu1 %v2562_v52, %s3295_s10 }
 0xb38   : > { %1595 = vrot.lane.b32.xlu0 %v2563_v4, %s3295_s10 }
 0xb3a   : > { %1597 = vrot.lane.b32.xlu1 %v2564_v17, %s3295_s10 }
 0xb3c   : > { %1814 = vrot.lane.b32.xlu0 %v4123_v42, %s3295_s10 }
 0xb3e   : > { %1816 = vrot.lane.b32.xlu1 %v4130_v47, %s3295_s10 }
 0xb40   : > { %1824 = vrot.lane.b32.xlu0 %v4076_v5, %s3297_s30 }
 0xb42   : > { %1826 = vrot.lane.b32.xlu1 %v4081_v11, %s3297_s30 }
 0xb44   : > { %2055 = vrot.lane.b32.xlu0 %v2041_v10, %s3297_s30 }
 0xb46   : > { %2057 = vrot.lane.b32.xlu1 %v2042_v19, %s3297_s30  ;;  %s4241_s30 = scalar_lea.sflag [#allocation15], %s2085_s11 }
 0xb9e   : > { %v2024_v23 = vpop.permute.xlu0 %2023 }
 0xb9f   : > { %v2029_v27 = vmul.f32 %v3059_v20, %v2024_v23 }
 0xba0   : > { %v2026_v35 = vpop.permute.xlu1 %2025 }
 0xba1   : > { %v2030_v11 = vmul.f32 %v3061_v24, %v2026_v35 }
 0xba2   : > { %v2034_v42 = vpop.permute.xlu0 %2033 }
 0xba3   : > { %v2039_v5 = vsel %vm1799_vm5, %v2029_v27, %v2034_v42 }
 0xba4   : > { %2045 = vrot.lane.b32.xlu0 %v2039_v5, %s3295_s10  ;;  %v2063_v47 = vadd.f32 %v4126_v0, %v2039_v5  ;;  %v2036_v53 = vpop.permute.xlu1 %2035 }
 0xba5   : > { %v2040_v56 = vsel %vm1799_vm5, %v2030_v11, %v2036_v53 }
 0xba6   : > { %v2565_v54 = vpack.c.bf16 %v2063_v47, %v2063_v47  ;;  %v1120_v55 = vpop.permute.xlu0 %1119  ;;  %2047 = vrot.lane.b32.xlu1 %v2040_v56, %s3295_s10  ;;  %v2064_v44 = vadd.f32 %v4133_v48, %v2040_v56 }
 0xba7   : > { %1126 = vst.msk [vmem:[%s3694_s12] sm:$0xf] %vm1125_vm6, %v1120_v55 }
 0xba8   : > { %2071 = vrot.lane.b32.xlu0 %v2565_v54, %s3295_s10  ;;  %v2566_v0 = vpack.c.bf16 %v2064_v44, %v2064_v44  ;;  %v1122_v57 = vpop.permute.xlu1 %1121 }
 0xba9   : > { %1127 = vst.msk [vmem:[%s3694_s12 + $0x4] sm:$0xf] %vm1125_vm6, %v1122_v57 }
 0xbaa   : > { %v1596_v58 = vpop.permute.xlu0 %1595  ;;  %2073 = vrot.lane.b32.xlu1 %v2566_v0, %s3295_s10  ;;  %s2081_s10 = scalar_lea.sflag [#allocation4], %s3667_s19 }
 0xbab   : > { %2514 = vst.msk [vmem:[%s3694_s12 + $0x8] sm:$0xf] %vm1125_vm6, %v1596_v58 }
 0xbac   : > { %v1598_v30 = vpop.permute.xlu1 %1597 }
 0xbad   : > { %2515 = vst.msk [vmem:[%s3694_s12 + $0xc] sm:$0xf] %vm1125_vm6, %v1598_v30 }
 0xbae   : > { %v1815_v48 = vpop.permute.xlu0 %1814 }
 0xbaf   : > { %1820 = vst.msk [vmem:[%s3696_s17] sm:$0xff] %vm679_vm2, %v1815_v48 }
 0xbb0   : > { %v1817_v59 = vpop.permute.xlu1 %1816 }
 0xbb1   : > { %1821 = vst.msk [vmem:[%s3696_s17 + $0x8] sm:$0xff] %vm679_vm2, %v1817_v59 }
 0xbb2   : > { %v1825_v60 = vpop.permute.xlu0 %1824 }
 0xbb3   : > { %1830 = vst.msk [vmem:[%s3698_s13] sm:$0xff] %vm679_vm2, %v1825_v60 }
 0xbb4   : > { %v1827_v33 = vpop.permute.xlu1 %1826 }
 0xbb5   : > { %1831 = vst.msk [vmem:[%s3698_s13 + $0x8] sm:$0xff] %vm679_vm2, %v1827_v33 }
 0xbb6   : > { %v2056_v61 = vpop.permute.xlu0 %2055 }
 0xbb7   : > { %2541 = vst.msk [vmem:[%s3698_s13 + $0x10] sm:$0xff] %vm679_vm2, %v2056_v61 }
 0xbb8   : > { %v2058_v7 = vpop.permute.xlu1 %2057 }
 0xbb9   : > { %2542 = vst.msk [vmem:[%s3698_s13 + $0x18] sm:$0xff] %vm679_vm2, %v2058_v7 }
 0xc16   : > { %v2046_v62 = vpop.permute.xlu0 %2045 }
 0xc17   : > { %2539 = vst.msk [vmem:[%s3696_s17 + $0x10] sm:$0xff] %vm679_vm2, %v2046_v62 }
 0xc18   : > { %v2048_v28 = vpop.permute.xlu1 %2047 }
 0xc19   : > { %2540 = vst.msk [vmem:[%s3696_s17 + $0x18] sm:$0xff] %vm679_vm2, %v2048_v28 }
 0xc1a   : > { %v2072_v1 = vpop.permute.xlu0 %2071 }
 0xc1b   : > { %2545 = vst.msk [vmem:[%s3694_s12 + $0x10] sm:$0xf] %vm1125_vm6, %v2072_v1 }
 0xc1c   : > { %v2074_v2 = vpop.permute.xlu1 %2073 }
 0xc1d   : > { %2546 = vst.msk [vmem:[%s3694_s12 + $0x14] sm:$0xf] %vm1125_vm6, %v2074_v2 }
 0xc1e   : > { %s4431_s29 = sld [smem:[#allocation47_spill]]  ;;  %s2549_s15 = sshll.u32 %s3252_s24, 1 }
 0xc1f   : > { %s2567_s23 = smul.u32 12, %s4426_s3  ;;  %s2123_s9 = sshll.u32 %s3694_s12, 4  ;;  %s2124_s9 = int_to_ptr.vmem [resolvable:$true] %s2123_s9 }
 0xc20   : > { %s3298_s19 = smov 128   ;;  %s4433_s5 = sld [smem:[#allocation55_spill]] }
 0xc21   : > { %s2104_s20 = sadd.s32 %s2567_s23, %s2549_s15  ;;  %s3299_s6 = smov 256  }
 0xc22   : > { %s2551_s16 = sshll.u32 %s2104_s20, 6  ;;  %s3300_s11 = smov 2  }
 0xc23   : > { %s3301_s3 = smov 64   ;;  %s3302_s12 = smov 4  }
 0xc24   : > { %p4432_p7 = scmp.ne.s32.totalorder %s4431_s29, 0  ;;  %s3303_s15 = smov [#allocation23]  }
 0xc25   : > { %s3304_s23 = smov 0  }
 0xc26   : > { %2743 = sst [smem:[#allocation24]] (%p4432_p7), %s3298_s19  ;;  %s2106_s14 = scalar_lea.hbm %s4433_s5, %s2551_s16 }
 0xc27   : > { %2744 = sst [smem:[#allocation24 + $0x1]] (%p4432_p7), %s3299_s6 }
 0xc28   : > { %2745 = sst [smem:[#allocation24 + $0x2]] (%p4432_p7), %s3300_s11 }
 0xc29   : > { %2746 = sst [smem:[#allocation24 + $0x3]] (%p4432_p7), %s3301_s3 }
 0xc2a   : > { %2747 = sst [smem:[#allocation24 + $0x4]] (%p4432_p7), %s3301_s3 }
 0xc2b   : > { %2748 = sst [smem:[#allocation24 + $0x5]] (%p4432_p7), %s3302_s12 }
 0xc2c   : > { %2749 = dma.general (%p4432_p7), %s2124_s9, 384, %s2106_s14, %s2081_s10, %s3303_s15, [#allocation24], %s3304_s23, 0  }
 0xc2d   : > { %s4434_s20 = sld [smem:[#allocation50_spill]]  ;;  %s2568_s16 = sshll.u32 %s3252_s24, 8 }
 0xc2e   : > { %s2168_s19 = sshll.u32 %s3696_s17, 4  ;;  %s4435_s5 = sld [smem:[#allocation56_spill]]  ;;  %s2169_s19 = int_to_ptr.vmem [resolvable:$true] %s2168_s19 }
 0xc2f   : > { %s3305_s11 = smov 256   ;;  %s3306_s10 = smov 512  }
 0xc30   : > { %s3307_s29 = smov 2   ;;  %s3308_s9 = smov 128  }
 0xc31   : > { %s3309_s24 = smov 8   ;;  %s3310_s17 = smov [#allocation25]  }
 0xc32   : > { %s3311_s14 = smov 0  }
 0xc33   : > { %p4436_p12 = scmp.ne.s32.totalorder %s4434_s20, 0 }
 0xc34   : > { %s2151_s6 = scalar_lea.hbm %s4435_s5, %s2568_s16 }
 0xc35   : > { %2750 = sst [smem:[#allocation26]] (%p4436_p12), %s3305_s11 }
 0xc36   : > { %2751 = sst [smem:[#allocation26 + $0x1]] (%p4436_p12), %s3306_s10 }
 0xc37   : > { %2752 = sst [smem:[#allocation26 + $0x2]] (%p4436_p12), %s3307_s29 }
 0xc38   : > { %2753 = sst [smem:[#allocation26 + $0x3]] (%p4436_p12), %s3308_s9 }
 0xc39   : > { %2754 = sst [smem:[#allocation26 + $0x4]] (%p4436_p12), %s3308_s9 }
 0xc3a   : > { %2755 = sst [smem:[#allocation26 + $0x5]] (%p4436_p12), %s3309_s24 }
 0xc3b   : > { %2756 = dma.general (%p4436_p12), %s2169_s19, 512, %s2151_s6, %s4241_s30, %s3310_s17, [#allocation26], %s3311_s14, 0  }
 0xc3c   : > { %s4437_s15 = sld [smem:[#allocation57_spill]]  ;;  %s2213_s28 = sshll.u32 %s3698_s13, 4  ;;  %s2214_s28 = int_to_ptr.vmem [resolvable:$true] %s2213_s28 }
 0xc3d   : > { %s3312_s18 = smov 256   ;;  %s3313_s5 = smov 512  }
 0xc3e   : > { %2757 = sst [smem:[#allocation28]] (%p4436_p12), %s3312_s18  ;;  %s3314_s19 = smov 2  }
 0xc3f   : > { %2758 = sst [smem:[#allocation28 + $0x1]] (%p4436_p12), %s3313_s5  ;;  %s3315_s6 = smov 128  }
 0xc40   : > { %2759 = sst [smem:[#allocation28 + $0x2]] (%p4436_p12), %s3314_s19  ;;  %s3316_s11 = smov 8  }
 0xc41   : > { %2760 = sst [smem:[#allocation28 + $0x3]] (%p4436_p12), %s3315_s6  ;;  %s3318_s13 = smov 0  }
 0xc42   : > { %s2196_s23 = scalar_lea.hbm %s4437_s15, %s2568_s16  ;;  %2761 = sst [smem:[#allocation28 + $0x4]] (%p4436_p12), %s3315_s6 }
 0xc43   : > { %2762 = sst [smem:[#allocation28 + $0x5]] (%p4436_p12), %s3316_s11  ;;  %s3317_s16 = smov [#allocation27]  }
 0xc44   : > { %2763 = dma.general (%p4436_p12), %s2214_s28, 512, %s2196_s23, %s4241_s30, %s3317_s16, [#allocation28], %s3318_s13, 0  }
 0xc45 PF: > { %s4438_s10 = sld [smem:[#allocation41_spill]]  ;;  %s4439_s29 = sld [smem:[#allocation48_spill]] }
 0xc46   : > { %p2783_p13 = scmp.ge.s32.totalorder %s3264_s27, 2 }
 0xc4b   : > { %s2241_s9 = sand.u32 1, %s4438_s10   ;;  %p4440_p10 = scmp.ne.s32.totalorder %s4439_s29, 0 }
 0xc4c   : > { %s2242_s24 = scalar_lea.sflag [#allocation4], %s2241_s9 }
 0xc4d   : > { %p2768_p11 = pnand %p2783_p13, %p4440_p10 }
 0xc4f   : > { %3215 = dma.done.wait (!%p2768_p11), %s2242_s24, 384  }
 0xc50   : > { %3217 = vsyncadd (!%p2768_p11), %s2242_s24, 4294966912  ;;  %s4441_s17 = sadd.s32 4294967294, %s3264_s27   ;;  %s4442_s14 = sld [smem:[#allocation49_spill]] }
 0xc51   : > { %s2250_s3 = sand.u32 1, %s4441_s17  }
 0xc52   : > { %s2251_s12 = scalar_lea.sflag [#allocation15], %s2250_s3 }
 0xc56   : > { %p4443_p8 = scmp.ne.s32.totalorder %s4442_s14, 0 }
 0xc58   : > { %p2771_p9 = pnand %p2783_p13, %p4443_p8 }
 0xc5a   : > { %3219 = dma.done.wait (!%p2771_p9), %s2251_s12, 1024  }
 0xc5b   : > { %3221 = vsyncadd (!%p2771_p9), %s2251_s12, 4294966272  ;;  %s34_s27 = sadd.s32 1, %s3264_s27   ;;  %s4444_s17 = sld [smem:[#allocation39_spill]] }
 0xc5c   : > { %p31_p0 = scmp.ge.s32.totalorder %s34_s27, 8   ;;  %s4445_s18 = sld [smem:[#allocation40_spill]] }
 0xc5d   : > { %s4446_s19 = sld [smem:[#allocation45_spill]]  ;;  %s4447_s30 = sld [smem:[#allocation46_spill]] }
 0xc5e   : > { %s4448_s15 = sld [smem:[#allocation43_spill]]  ;;  %s4449_s28 = sld [smem:[#allocation44_spill]] }
 0xc5f   : > { %s4450_s20 = smov %s3240_s21  ;;  %s4451_s21 = smov %s3244_s22 }
 0xc60   : > { %s4453_s23 = smov %s3256_s25  ;;  %s4454_s24 = smov %s3260_s26 }
 0xc61   :  { %33 = sbr.rel (!%p31_p0) target bundleno = 22 (0x16), region = 195 }
 0xc63   : > { %s4452_s22 = smov %s4447_s30 }
 0xc64   : > { %s4455_s25 = smov %s4448_s15  ;;  %s4456_s26 = smov %s4449_s28 }
 0xc68   :  { %2265 = vsyncpa [#allocation3], 1 }
 0xc69   :  { %2267 = vsyncpa [#allocation3 + $0x1], 1 }
 0xc6a   :  { %2268 = vsyncpa [#allocation6], 1 }
 0xc6b   :  { %2269 = vsyncpa [#allocation9], 1 }
 0xc6c   :  { %2270 = vsyncpa [#allocation12], 1 }
 0xc6d   :  { %2271 = vsyncpa [#allocation4], 1 }
 0xc6e   :  { %2273 = vsyncpa [#allocation4 + $0x1], 1 }
 0xc6f   :  { %2274 = vsyncpa [#allocation15], 1 }
 0xc70   :  { %2276 = vsyncpa [#allocation15 + $0x1], 1 }

// kernel: tpu_custom_call.1
= control target key start
LH: loop header
LB: loop body
LE: loop exit
PB: predicated region body
PF: predicated region fallthrough
CT: control target
= control target key end

     0   :  { %s4437_s0 = inlined_call_operand.hbm [shape: bf16[9,32,32], index: 0, kind: input, shape index: {}]   ;;  %s4438_s1 = inlined_call_operand.hbm [shape: bf16[32,128], index: 1, kind: input, shape index: {}]   ;;  %s4439_s2 = inlined_call_operand.hbm [shape: bf16[32,128], index: 2, kind: input, shape index: {}]   ;;  %s4440_s3 = inlined_call_operand.vmem [shape: f32[1,128], index: 3, kind: input, shape index: {}]   ;;  %s4441_s4 = inlined_call_operand.hbm [shape: bf16[1,32,128], index: 4, kind: input, shape index: {}]   ;;  %s4442_s5 = inlined_call_operand.vmem [shape: bf16[1,32,128], index: 5, kind: input, shape index: {}]   ;;  %s4443_s6 = inlined_call_operand.vmem [shape: f32[1,1,128], index: 6, kind: input, shape index: {}]   ;;  %s4444_s7 = inlined_call_operand.hbm [shape: f32[2,32,32], index: 7, kind: input, shape index: {}]   ;;  %s4445_s8 = inlined_call_operand.hbm [shape: f32[2,32,32], index: 8, kind: input, shape index: {}]   ;;  %s4446_s9 = inlined_call_operand.hbm [shape: bf16[9,32,32], index: 9, kind: output, shape index: {0}]   ;;  %s4447_s10 = inlined_call_operand.hbm [shape: f32[2,32,32], index: 10, kind: output, shape index: {1}]   ;;  %s4448_s11 = inlined_call_operand.hbm [shape: f32[2,32,32], index: 11, kind: output, shape index: {2}]  }
   0x1   :  { %4475 = sst [smem:[#allocation52_spill]] %s4437_s0 }
   0x2   :  { %4476 = sst [smem:[#allocation53_spill]] %s4440_s3 }
   0x3   :  { %4477 = sst [smem:[#allocation54_spill]] %s4442_s5 }
   0x4   :  { %4478 = sst [smem:[#allocation55_spill]] %s4443_s6 }
   0x5   :  { %4479 = sst [smem:[#allocation56_spill]] %s4446_s9 }
   0x6   :  { %4480 = sst [smem:[#allocation57_spill]] %s4447_s10 }
   0x7   :  { %4481 = sst [smem:[#allocation58_spill]] %s4448_s11 }
   0x8   :  { %17 = vsyncpa [#allocation3], 0 }
   0x9   :  { %19 = vsyncpa [#allocation3 + $0x1], 0 }
   0xa   :  { %20 = vsyncpa [#allocation6], 0 }
   0xb   :  { %21 = vsyncpa [#allocation9], 0 }
   0xc   :  { %22 = vsyncpa [#allocation4], 0 }
   0xd   :  { %24 = vsyncpa [#allocation4 + $0x1], 0 }
   0xe   :  { %25 = vsyncpa [#allocation14], 0 }
   0xf   :  { %27 = vsyncpa [#allocation14 + $0x1], 0  ;;  %s3433_s17 = smov 0   ;;  %s3435_s18 = smov 0  }
  0x10   :  { %s3437_s19 = smov 0   ;;  %s3439_s20 = smov 0  }
  0x11   :  { %s3441_s21 = smov 0   ;;  %s3443_s22 = smov 0  }
  0x12   :  { %s3445_s23 = smov 0   ;;  %s3447_s24 = smov 0  }
  0x13   :  { %s3449_s25 = smov 0   ;;  %s3451_s26 = smov 0  }
  0x14   :  { %s3453_s27 = smov 0  }
  0x15 LB: > { %4482 = sst [smem:[#allocation37_spill]] %s3286_s18  ;;  %s3489_s28 = sadd.s32 4294967295, %s3322_s27   ;;  %s3322_s27 = sphi %s3453_s27, %s33_s27   ;;  %s3318_s26 = sphi %s3451_s26, %s4559_s26   ;;  %s3314_s25 = sphi %s3449_s25, %s4558_s25   ;;  %s3310_s24 = sphi %s3447_s24, %s4557_s24   ;;  %s3306_s23 = sphi %s3445_s23, %s4556_s23   ;;  %s3302_s22 = sphi %s3443_s22, %s4555_s22   ;;  %s3298_s21 = sphi %s3441_s21, %s4554_s21   ;;  %s3294_s20 = sphi %s3439_s20, %s4548_s20   ;;  %s3290_s19 = sphi %s3437_s19, %s4553_s19   ;;  %s3286_s18 = sphi %s3435_s18, %s4552_s18   ;;  %s3282_s17 = sphi %s3433_s17, %s4546_s17  }
  0x16   : > { %4483 = sst [smem:[#allocation38_spill]] %s3294_s20  ;;  %s42_s30 = sadd.s32 1, %s3314_s25 }
  0x17   : > { %4484 = sst [smem:[#allocation39_spill]] %s3298_s21  ;;  %s45_s12 = sadd.s32 1, %s3318_s26 }
  0x18   : > { %4485 = sst [smem:[#allocation40_spill]] %s3306_s23  ;;  %p43_p0 = scmp.ge.s32.totalorder %s42_s30, 3 }
  0x19   : > { %4486 = sst [smem:[#allocation41_spill]] %s3310_s24  ;;  %s54_s13 = sadd.s32 1, %s3302_s22 }
  0x1a   : > { %p61_p1 = scmp.ne.s32.totalorder %s3302_s22, %s3298_s21  ;;  %p62_p2 = scmp.eq.s32.totalorder %s3322_s27, 0 }
  0x1b   : > { %s4561_s30 = smov (%p43_p0, %s42_s30), 0  ;;  %s4563_s12 = smov (!%p43_p0, %s45_s12), %s3318_s26 }
  0x1c   : > { %4487 = sst [smem:[#allocation42_spill]] %s4561_s30  ;;  %s49_s14 = ssub.s32 %s3314_s25, %s4561_s30 }
  0x1d   : > { %p3508_p3 = por %p62_p2, %p61_p1  ;;  %p47_p4 = scmp.ge.s32.totalorder %s4563_s12, 2 }
  0x1e   : > { %p4451_p5 = scmp.ne.s32.totalorder %s3298_s21, %s3294_s20  ;;  %p4452_p6 = scmp.eq.s32.totalorder %s3489_s28, 0 }
  0x1f   : > { %s206_s16 = sadd.s32 1, %s3290_s19  ;;  %s4565_s12 = smov (%p47_p4, %s4563_s12), 0 }
  0x20   : > { %4489 = sst [smem:[#allocation43_spill]] %s4565_s12  ;;  %p3523_p7 = por %p4452_p6, %p4451_p5 }
  0x21   : > { %p213_p8 = scmp.ne.s32.totalorder %s3290_s19, %s3286_s18  ;;  %s50_s30 = ssub.s32 %s3318_s26, %s4565_s12 }
  0x22   : > { %s4490_s29 = scalar_select %p3523_p7, 1, 0 }
  0x23   : > { %p219_p9 = scmp.ne.s32.totalorder %s3286_s18, %s3282_s17  ;;  %s51_s11 = sor.u32 %s50_s30, %s49_s14 }
  0x24   : > { %4491 = sst [smem:[#allocation44_spill]] %s4490_s29  ;;  %p204_p10 = scmp.eq.s32.totalorder %s50_s30, 0 }
  0x25   : > { %p52_p11 = scmp.eq.s32.totalorder %s51_s11, 0  ;;  %p3538_p12 = por %p213_p8, %p62_p2 }
  0x26   : > { %s3543_s9 = scalar_select %p204_p10, %s3290_s19, %s206_s16  }
  0x27   : > { %s3546_s24 = scalar_select %p52_p11, %s3302_s22, %s54_s13  }
  0x28   : > { %4493 = sst [smem:[#allocation45_spill]] %s3543_s9  ;;  %p3553_p13 = por %p219_p9, %p4452_p6 }
  0x29   : > { %4494 = sst [smem:[#allocation46_spill]] %s3546_s24  ;;  %p271_p0 = scmp.eq.s32.totalorder %s3489_s28, 5 }
  0x2a   : > { %s4495_s6 = scalar_select %p3553_p13, 1, 0 }
  0x2b   : > { %s4497_s30 = sadd.s32 4294967294, %s3322_s27   ;;  %p2477_p5 = scmp.ge.s32.totalorder %s3322_s27, 1 }
  0x2c   : > { %4496 = sst [smem:[#allocation47_spill]] %s4495_s6  ;;  %p277_p4 = scmp.eq.s32.totalorder %s4497_s30, 5 }
  0x2d   : > { %p3564_p2 = por %p271_p0, %p61_p1  ;;  %p3571_p10 = por %p271_p0, %p213_p8 }
  0x2e   : > { %p4502_p11 = scmp.ne.s32.totalorder %s3298_s21, %s3294_s20  ;;  %p3585_p13 = por %p277_p4, %p219_p9 }
  0x2f   : > { %s4498_s11 = scalar_select %p3564_p2, 1, 0 }
  0x30   : > { %s4500_s13 = scalar_select %p3571_p10, 1, 0 }
  0x31   : > { %4499 = sst [smem:[#allocation48_spill]] %s4498_s11  ;;  %p3578_p6 = por %p277_p4, %p4502_p11 }
  0x32   : > { %4501 = sst [smem:[#allocation49_spill]] %s4500_s13  ;;  %p336_p7 = scmp.lt.s32.totalorder %s3322_s27, 7 }
  0x33   : > { %s4503_s14 = scalar_select %p3578_p6, 1, 0 }
  0x34   : > { %s4505_s16 = scalar_select %p3585_p13, 1, 0 }
  0x35   : > { %4504 = sst [smem:[#allocation50_spill]] %s4503_s14  ;;  %p3590_p1 = pnand %p2477_p5, %p336_p7 }
  0x36   : > { %4506 = sst [smem:[#allocation51_spill]] %s4505_s16  ;;  %s3324_s12 = smov [#allocation5]  }
  0x37   : > { %s4507_s30 = scalar_select %p3590_p1, 1, 0 }
  0x38   : > { %s348_s24 = sshll.u32 %s3324_s12, 4  ;;  %p2817_p8 = pneg %p3590_p1  ;;  %s3594_s24 = int_to_ptr.vmem [resolvable:$true] %s348_s24 }
  0x39   : > { %s3325_s9 = smov [#allocation7]   ;;  %p4508_p0 = scmp.eq.s32.totalorder %s3489_s28, 0 }
  0x3a   : > { %s361_s20 = sshll.u32 %s3325_s9, 4  ;;  %s3326_s16 = smov [#allocation8]   ;;  %s3604_s20 = int_to_ptr.vmem [resolvable:$true] %s361_s20 }
  0x3b   : > { %p3600_p11 = pnand %p2817_p8, %p4508_p0  ;;  %s377_s14 = sshll.u32 %s3326_s16, 4  ;;  %s3606_s14 = int_to_ptr.vmem [resolvable:$true] %s377_s14 }
  0x3c   : > { %s3128_s11 = scalar_lea.hbm %s4438_s1, 256 }
  0x3d   : > { %p3129_p5 = scmp.ne.s32.totalorder %s4438_s1, %s3128_s11  ;;  %p3616_p7 = pneg %p3600_p11 }
  0x3e   : > { %p3135_p8 = scmp.lt.u32.totalorder %s3128_s11, %s4438_s1 }
  0x3f   : > { %p3131_p9 = pnand %p3616_p7, %p3129_p5 }
  0x41   : > { %p3132_p4 = pneg %p3131_p9 }
  0x43   : > { %p3137_p0 = pnand %p3135_p8, %p3132_p4 }
  0x45   : > { %3140 = shalt.err (!%p3137_p0)
}
  0x46   : > { %s3141_s3 = scalar_lea.vmem %s3594_s24, 256  ;;  %p3149_p2 = scmp.lt.s32.totalorder %s3594_s24, %s3594_s24 }
  0x47   : > { %p3142_p13 = scmp.ne.s32.totalorder %s3594_s24, %s3141_s3  ;;  %p3150_p1 = scmp.lt.s32.totalorder %s3141_s3, %s3141_s3 }
  0x49   : > { %p3144_p6 = pnand %p3142_p13, %p3616_p7  ;;  %p3151_p5 = por %p3150_p1, %p3149_p2 }
  0x4b   : > { %p3145_p10 = pneg %p3144_p6 }
  0x4d   : > { %p3152_p9 = pnand %p3151_p5, %p3145_p10 }
  0x4f   : > { %3155 = shalt.err (!%p3152_p9)
}
  0x50   : > { %s3327_s5 = smov 64   ;;  %s3328_s23 = smov 4  }
  0x51   : > { %2820 = dma.hbm_to_vmem [thread:$0]  (!%p3600_p11), %s4438_s1, 256, %s3594_s24, [#allocation6], %s3327_s5, %s3327_s5, %s3328_s23  }
  0x52   : > { %s3156_s3 = scalar_lea.hbm %s4439_s2, 256 }
  0x53   : > { %p3157_p6 = scmp.ne.s32.totalorder %s4439_s2, %s3156_s3  ;;  %p3163_p10 = scmp.lt.u32.totalorder %s3156_s3, %s4439_s2 }
  0x55   : > { %p3159_p13 = pnand %p3157_p6, %p3616_p7 }
  0x57   : > { %p3160_p2 = pneg %p3159_p13 }
  0x59   : > { %p3165_p1 = pnand %p3163_p10, %p3160_p2 }
  0x5b   : > { %3168 = shalt.err (!%p3165_p1)
}
  0x5c   : > { %s3169_s24 = scalar_lea.vmem %s3604_s20, 256  ;;  %p3177_p5 = scmp.lt.s32.totalorder %s3604_s20, %s3604_s20 }
  0x5d   : > { %p3170_p4 = scmp.ne.s32.totalorder %s3604_s20, %s3169_s24  ;;  %p3178_p9 = scmp.lt.s32.totalorder %s3169_s24, %s3169_s24 }
  0x5f   : > { %p3172_p8 = pnand %p3170_p4, %p3616_p7  ;;  %p3179_p6 = por %p3178_p9, %p3177_p5 }
  0x61   : > { %p3173_p0 = pneg %p3172_p8 }
  0x63   : > { %p3180_p13 = pnand %p3179_p6, %p3173_p0 }
  0x65   : > { %3183 = shalt.err (!%p3180_p13)
}
  0x66   : > { %2823 = dma.hbm_to_vmem [thread:$0]  (!%p3600_p11), %s4439_s2, 256, %s3604_s20, [#allocation6], %s3327_s5, %s3327_s5, %s3328_s23  }
  0x67   : > { %s3184_s11 = scalar_lea.hbm %s4441_s4, 256 }
  0x68   : > { %p3185_p2 = scmp.ne.s32.totalorder %s4441_s4, %s3184_s11  ;;  %p3191_p4 = scmp.lt.u32.totalorder %s3184_s11, %s4441_s4 }
  0x6a   : > { %p3187_p10 = pnand %p3185_p2, %p3616_p7 }
  0x6c   : > { %p3188_p1 = pneg %p3187_p10 }
  0x6e   : > { %p3193_p8 = pnand %p3191_p4, %p3188_p1 }
  0x70   : > { %3196 = shalt.err (!%p3193_p8)
}
  0x71   : > { %s3197_s20 = scalar_lea.vmem %s3606_s14, 256  ;;  %p3205_p6 = scmp.lt.s32.totalorder %s3606_s14, %s3606_s14 }
  0x72   : > { %p3198_p0 = scmp.ne.s32.totalorder %s3606_s14, %s3197_s20  ;;  %p3206_p13 = scmp.lt.s32.totalorder %s3197_s20, %s3197_s20 }
  0x74   : > { %p3200_p5 = pnand %p3198_p0, %p3616_p7  ;;  %p3207_p2 = por %p3206_p13, %p3205_p6 }
  0x76   : > { %p3201_p9 = pneg %p3200_p5 }
  0x78   : > { %p3208_p10 = pnand %p3207_p2, %p3201_p9 }
  0x7a   : > { %3211 = shalt.err (!%p3208_p10)
}
  0x7b   : > { %2826 = dma.hbm_to_vmem [thread:$0]  (!%p3600_p11), %s4441_s4, 256, %s3606_s14, [#allocation9], %s3327_s5, %s3327_s5, %s3328_s23  }
  0x7c   : > { %p2481_p1 = scmp.ge.s32.totalorder %s3322_s27, 6 }
  0x7e   : > { %393 = sbr.rel (%p2481_p1) target bundleno = 177 (0xb1), region = 40 }
  0x85   : > { %s399_s9 = sand.u32 1, %s3302_s22   ;;  %s2482_s18 = sshll.u32 %s3318_s26, 1 }
  0x86   : > { %s2752_s17 = smul.u32 24, %s399_s9  ;;  %s397_s11 = sand.u32 1, %s3322_s27  }
  0x87   : > { %s2608_s21 = smul.u32 12, %s3314_s25  ;;  %s3329_s13 = smov 256  }
  0x88   : > { %s401_s14 = scalar_lea.vmem [#allocation2], %s2752_s17  ;;  %2761 = sst [smem:[#allocation17]] (%p3508_p3), %s3329_s13 }
  0x89   : > { %s408_s29 = sadd.s32 %s2608_s21, %s2482_s18  ;;  %s423_s5 = sshll.u32 %s401_s14, 4  ;;  %s424_s5 = int_to_ptr.vmem [resolvable:$true] %s423_s5 }
  0x8a   : > { %s2484_s23 = sshll.u32 %s408_s29, 6  ;;  %s3330_s3 = smov 128  }
  0x8b   : > { %s2760_s12 = scalar_select %p3508_p3, [#allocation0], [#allocation28] }
  0x8c   : > { %2762 = sst [smem:[#allocation17 + $0x1]] (%p3508_p3), %s3330_s3  ;;  %s3331_s20 = smov 2  }
  0x8d   : > { %s415_s16 = sld [smem:[%s2760_s12]]   ;;  %s3332_s24 = smov 64  }
  0x8e   : > { %2763 = sst [smem:[#allocation17 + $0x2]] (%p3508_p3), %s3331_s20  ;;  %s3333_s6 = smov 4  }
  0x8f   : > { %2764 = sst [smem:[#allocation17 + $0x3]] (%p3508_p3), %s3332_s24  ;;  %s4511_s0 = sld [smem:[#allocation52_spill]] }
  0x90   : > { %2765 = sst [smem:[#allocation17 + $0x4]] (%p3508_p3), %s3332_s24  ;;  %s3714_s14 = scalar_lea.sflag [#allocation3], %s397_s11 }
  0x91   : > { %2766 = sst [smem:[#allocation17 + $0x5]] (%p3508_p3), %s3333_s6  ;;  %s3334_s13 = smov [#allocation16]  }
  0x93   : > { %s2485_s21 = sshll.u32 %s415_s16, 26 }
  0x94   : > { %s2486_s29 = sadd.s32 134217728, %s2485_s21 }
  0x95   : > { %s410_s18 = scalar_lea.hbm %s4511_s0, %s2484_s23 }
  0x96   : > { %2767 = dma.general (%p3508_p3), %s410_s18, 384, %s424_s5, %s3714_s14, %s3334_s13, [#allocation17], %s2486_s29, 0  }
  0x97   : > { %s448_s12 = sand.u32 1, %s3290_s19   ;;  %s2609_s20 = sshll.u32 %s3318_s26, 8 }
  0x98   : > { %s2487_s3 = sshll.u32 %s448_s12, 5  ;;  %s456_s24 = scalar_lea.hbm %s4444_s7, %s2609_s20 }
  0x99   : > { %s2768_s23 = scalar_select %p3538_p12, [#allocation0], [#allocation29] }
  0x9a   : > { %s3335_s15 = smov 512   ;;  %s450_s6 = scalar_lea.vmem [#allocation10], %s2487_s3 }
  0x9b   : > { %2769 = sst [smem:[#allocation19]] (%p3538_p12), %s3335_s15  ;;  %s469_s9 = sshll.u32 %s450_s6, 4  ;;  %s470_s9 = int_to_ptr.vmem [resolvable:$true] %s469_s9 }
  0x9c   : > { %s461_s5 = sld [smem:[%s2768_s23]]   ;;  %s3336_s17 = smov 256  }
  0x9d   : > { %2770 = sst [smem:[#allocation19 + $0x1]] (%p3538_p12), %s3336_s17  ;;  %s3337_s18 = smov 2  }
  0x9e   : > { %2771 = sst [smem:[#allocation19 + $0x2]] (%p3538_p12), %s3337_s18  ;;  %s3338_s21 = smov 128  }
  0x9f   : > { %2772 = sst [smem:[#allocation19 + $0x3]] (%p3538_p12), %s3338_s21  ;;  %s3339_s13 = smov 8  }
  0xa0   : > { %2773 = sst [smem:[#allocation19 + $0x4]] (%p3538_p12), %s3338_s21  ;;  %s3340_s23 = smov [#allocation18]  }
  0xa1   : > { %2774 = sst [smem:[#allocation19 + $0x5]] (%p3538_p12), %s3339_s13 }
  0xa2   : > { %s2490_s29 = sshll.u32 %s461_s5, 26 }
  0xa3   : > { %s2491_s12 = sadd.s32 134217728, %s2490_s29 }
  0xa4   : > { %2775 = dma.general (%p3538_p12), %s456_s24, 512, %s470_s9, %s3714_s14, %s3340_s23, [#allocation19], %s2491_s12, 0  }
  0xa5   : > { %s502_s15 = scalar_lea.hbm %s4445_s8, %s2609_s20  ;;  %s496_s5 = scalar_lea.vmem [#allocation11], %s2487_s3 }
  0xa6   : > { %s2776_s6 = scalar_select %p3538_p12, [#allocation0], [#allocation30] }
  0xa7   : > { %s515_s17 = sshll.u32 %s496_s5, 4  ;;  %s3341_s24 = smov 512   ;;  %s516_s17 = int_to_ptr.vmem [resolvable:$true] %s515_s17 }
  0xa8   : > { %s507_s18 = sld [smem:[%s2776_s6]]   ;;  %s3342_s9 = smov 256  }
  0xa9   : > { %2777 = sst [smem:[#allocation21]] (%p3538_p12), %s3341_s24  ;;  %s3343_s21 = smov 2  }
  0xaa   : > { %2778 = sst [smem:[#allocation21 + $0x1]] (%p3538_p12), %s3342_s9  ;;  %s3344_s29 = smov 128  }
  0xab   : > { %2779 = sst [smem:[#allocation21 + $0x2]] (%p3538_p12), %s3343_s21  ;;  %s3345_s20 = smov 8  }
  0xac   : > { %2780 = sst [smem:[#allocation21 + $0x3]] (%p3538_p12), %s3344_s29  ;;  %s3346_s12 = smov [#allocation20]  }
  0xad   : > { %2781 = sst [smem:[#allocation21 + $0x4]] (%p3538_p12), %s3344_s29 }
  0xae   : > { %s2495_s3 = sshll.u32 %s507_s18, 26  ;;  %2782 = sst [smem:[#allocation21 + $0x5]] (%p3538_p12), %s3345_s20 }
  0xaf   : > { %s2496_s13 = sadd.s32 134217728, %s2495_s3 }
  0xb0   : > { %2783 = dma.general (%p3538_p12), %s502_s15, 512, %s516_s17, %s3714_s14, %s3346_s12, [#allocation21], %s2496_s13, 0  }
  0xb1 PF: > { %p4512_p3 = scmp.ne.s32.totalorder %s4507_s30, 0 }
  0xb2   : > { %s4513_s23 = sld [smem:[#allocation39_spill]] (!%p4512_p3)  ;;  %s542_s11 = sand.u32 (!%p4512_p3), 1, %s3489_s28  }
  0xb3   : > { %540 = sbr.rel (%p4512_p3) target bundleno = 3143 (0xc47), region = 56  ;;  %s4514_s16 = sld [smem:[#allocation44_spill]] (!%p4512_p3) }
  0xb4   : > { %s543_s18 = scalar_lea.sflag (!%p4512_p3), [#allocation3], %s542_s11 }
  0xb8   : > { %s544_s6 = sand.u32 (!%p4512_p3), 1, %s4513_s23  }
  0xb9   : > { %s2753_s5 = smul.u32 (!%p4512_p3), 24, %s544_s6  ;;  %p4515_p11 = scmp.ne.s32.totalorder (!%p4512_p3), %s4514_s16, 0 }
  0xbb   : > { %s3769_s24 = scalar_lea.vmem [#allocation2], %s2753_s5 }
  0xbc   : > { %3257 = dma.done.wait (%p4515_p11), %s543_s18, 384  }
  0xbd   : > { %3259 = vsyncadd (%p4515_p11), %s543_s18, 4294966912  ;;  %p4516_p12 = scmp.eq.s32.totalorder %s3489_s28, 0 }
  0xbf   : > { %3261 = dma.done.wait (%p4516_p12), [#allocation6], 512   ;;  %p4517_p7 = pmov %p4516_p12 }
  0xc1   : > { %3263 = vsyncadd (%p4517_p7), [#allocation6], 4294966784  ;;  %p4518_p4 = pmov %p4517_p7 }
  0xc3   : > { %3265 = dma.done.wait (%p4518_p4), [#allocation9], 256   ;;  %p4519_p8 = pmov %p4518_p4 }
  0xc4   : > { %s4520_s10 = sld [smem:[#allocation37_spill]]  ;;  %s4521_s30 = sld [smem:[#allocation47_spill]] }
  0xc5   : > { %3267 = vsyncadd (%p4519_p8), [#allocation9], 4294967040 }
  0xca   : > { %s565_s14 = sand.u32 1, %s4520_s10   ;;  %p4522_p0 = scmp.ne.s32.totalorder %s4521_s30, 0 }
  0xcb   : > { %s2501_s15 = sshll.u32 %s565_s14, 5 }
  0xcc   : > { %s567_s17 = scalar_lea.vmem [#allocation10], %s2501_s15 }
  0xcd   : > { %3269 = dma.done.wait (%p4522_p0), %s543_s18, 1024  }
  0xce   : > { %3271 = vsyncadd (%p4522_p0), %s543_s18, 4294966272  ;;  %s576_s9 = scalar_lea.vmem [#allocation11], %s2501_s15  ;;  %s3788_s21 = scalar_lea.vmem [#allocation12], %s2753_s5 }
  0xcf   : > { %s3790_s29 = scalar_lea.vmem [#allocation13], %s2501_s15  ;;  %s3792_s3 = scalar_lea.vmem [#allocation15], %s2501_s15 }
  0xd0   : > { %s4523_s20 = sld [smem:[#allocation40_spill]] }
  0xd6   : > { %p2505_p5 = scmp.ne.s32.totalorder %s4523_s20, 0 }
  0xd7   : > { %v648_v0 = vld [vmem:[%s567_s17] sm:$0xff] (!%p2505_p5)  ;;  %vm652_vm0 = vcmask (!%p2505_p5), 261120   ;;  %v649_v1 = vld [vmem:[%s567_s17 + $0x8] sm:$0xff] (!%p2505_p5)  ;;  %v650_v2 = vld [vmem:[%s567_s17 + $0x10] sm:$0xff] (!%p2505_p5) }
  0xd8   : > { %647 = sbr.rel (%p2505_p5) target bundleno = 223 (0xdf), region = 84  ;;  %653 = vst.msk [vmem:[%s3790_s29] sm:$0xff] (!%p2505_p5), %vm652_vm0, %v648_v0  ;;  %654 = vst.msk [vmem:[%s3790_s29 + $0x8] sm:$0xff] (!%p2505_p5), %vm652_vm0, %v649_v1  ;;  %v651_v3 = vld [vmem:[%s567_s17 + $0x18] sm:$0xff] (!%p2505_p5)  ;;  %v657_v4 = vld [vmem:[%s576_s9] sm:$0xff] (!%p2505_p5) }
  0xd9   : > { %655 = vst.msk [vmem:[%s3790_s29 + $0x10] sm:$0xff] (!%p2505_p5), %vm652_vm0, %v650_v2  ;;  %v658_v5 = vld [vmem:[%s576_s9 + $0x8] sm:$0xff] (!%p2505_p5)  ;;  %656 = vst.msk [vmem:[%s3790_s29 + $0x18] sm:$0xff] (!%p2505_p5), %vm652_vm0, %v651_v3  ;;  %v659_v6 = vld [vmem:[%s576_s9 + $0x10] sm:$0xff] (!%p2505_p5) }
  0xda   : > { %661 = vst.msk [vmem:[%s3792_s3] sm:$0xff] (!%p2505_p5), %vm652_vm0, %v657_v4  ;;  %662 = vst.msk [vmem:[%s3792_s3 + $0x8] sm:$0xff] (!%p2505_p5), %vm652_vm0, %v658_v5  ;;  %v660_v7 = vld [vmem:[%s576_s9 + $0x18] sm:$0xff] (!%p2505_p5) }
  0xdb   : > { %663 = vst.msk [vmem:[%s3792_s3 + $0x10] sm:$0xff] (!%p2505_p5), %vm652_vm0, %v659_v6  ;;  %664 = vst.msk [vmem:[%s3792_s3 + $0x18] sm:$0xff] (!%p2505_p5), %vm652_vm0, %v660_v7 }
  0xdf PF: > { %v2996_v8 = vld [vmem:[#allocation7] sm:$0xff]   ;;  %v3347_v9 = vmov 0.0   ;;  %v2997_v10 = vld [vmem:[#allocation5] sm:$0xff]   ;;  %v2998_v11 = vld [vmem:[#allocation7 + $0x8] sm:$0xff]   ;;  %vm3348_vm1 = vmmov 0   ;;  %vm708_vm2 = vcmask 261120  }
  0xe0   : > { %2656 = vmatprep.subr.bf16.mxu0 %v3347_v9  ;;  %2664 = vmatprep.subr.bf16.mxu1 %v3347_v9  ;;  %v2999_v12 = vld [vmem:[#allocation5 + $0x8] sm:$0xff]   ;;  %v683_v13 = vld [vmem:[%s3790_s29] sm:$0xff]  ;;  %s3349_s13 = smov 32   ;;  %s4524_s16 = sld [smem:[#allocation53_spill]]  ;;  %v3867_v63 = vld [vmem:[%s3790_s29 + $0x10] sm:$0xff]  ;;  %vm1154_vm6 = vcmask 257024  }
  0xe1   : > { %2657 = vmatpush3.bf16.msra.mxu0 %v2996_v8  ;;  %2660 = vmatprep.mubr.msk.bf16.mxu0 %vm3348_vm1, %v3347_v9  ;;  %v3813_v14 = vld [vmem:[%s3790_s29 + $0x8] sm:$0xff]  ;;  %v685_v17 = vld [vmem:[%s3792_s3] sm:$0xff]  ;;  %s3350_s5 = smov 64   ;;  %s3351_s18 = smov 96   ;;  %v3870_v0 = vld [vmem:[%s3790_s29 + $0x18] sm:$0xff] }
  0xe2   : > { %2665 = vmatpush3.bf16.msra.mxu1 %v2997_v10  ;;  %2658 = vmatprep.subr.bf16.mxu0 %v3347_v9  ;;  %v3816_v15 = vld [vmem:[%s3769_s24] sm:$0xff]   ;;  %v691_v16 = vpack.c.bf16 %v3813_v14, %v683_v13  ;;  %s4525_s10 = sld [smem:[#allocation40_spill]]  ;;  %s4526_s17 = sld [smem:[#allocation54_spill]]  ;;  %v3002_v60 = vld [vmem:[#allocation8] sm:$0xff]   ;;  %v930_v2 = vpack.c.bf16 %v3870_v0, %v3867_v63  ;;  %v3007_v8 = vld [vmem:[#allocation7 + $0x8] sm:$0xff]  }
  0xe3   : > { %2666 = vmatprep.subr.bf16.mxu1 %v3347_v9  ;;  %2668 = vmatprep.mubr.msk.bf16.mxu1 %vm3348_vm1, %v3347_v9  ;;  %v686_v18 = vld [vmem:[%s3792_s3 + $0x8] sm:$0xff]  ;;  %v907_v54 = vunpack.c.l.bf16 %v3816_v15  ;;  %v908_v55 = vunpack.c.h.bf16 %v3816_v15  ;;  %v3005_v3 = vld [vmem:[#allocation7] sm:$0xff]   ;;  %s4530_s15 = sld [smem:[#allocation55_spill]] }
  0xe4   : > { %832 = vrot.lane.b32.xlu1 %v685_v17, %s3349_s13  ;;  %v3004_v1 = vld [vmem:[#allocation8 + $0x8] sm:$0xff]  }
  0xe5   : > { %2659 = vmatpush3.bf16.msra.mxu0 %v2998_v11  ;;  %v2981_v57 = vpack.i.bf16 %v908_v55, %v907_v54 }
  0xe6   : > { %2667 = vmatpush3.bf16.msra.mxu1 %v2999_v12  ;;  %2672 = vmatprep.subr.bf16.mxu0 %v3347_v9  ;;  %v3835_v20 = vld [vmem:[%s4524_s16] ss:$0 sm:$0xff] }
  0xe7   : > { %2680 = vmatprep.subr.bf16.mxu1 %v3347_v9 }
  0xe8   : > { %2661 = vmatmul.mubr.msk.bf16.vlgmr.msra.gmra.mrb[0].mxu0 %vm708_vm2, %v691_v16  ;;  %834 = vrot.lane.b32.xlu1 %v686_v18, %s3349_s13  ;;  %s3855_s30 = smul.u32 3, %s4525_s10  ;;  %s4527_s9 = smov %s4526_s17  ;;  %v3001_v59 = vld [vmem:[%s4526_s17] sm:$0xff]  }
  0xe9   : > { %2669 = vmatmul.mubr.msk.bf16.vlgmr.msra.gmra.mrb[0].mxu1 %vm708_vm2, %v3816_v15  ;;  %2676 = vmatprep.mubr.msk.bf16.mxu0 %vm3348_vm1, %v3347_v9  ;;  %v3003_v61 = vld [vmem:[%s4527_s9 + $0x8] sm:$0xff]  }
  0xea   : > { %2684 = vmatprep.mubr.msk.bf16.mxu1 %vm3348_vm1, %v3347_v9  ;;  %p680_p9 = scmp.lt.s32.totalorder %s3855_s30, 8  ;;  %2673 = vmatpush3.bf16.msra.mxu0 %v3001_v59  ;;  %s1157_s17 = sadd.s32 1, %s3855_s30 }
  0xeb   : > { %2681 = vmatpush3.bf16.msra.mxu1 %v3002_v60  ;;  %2674 = vmatprep.subr.bf16.mxu0 %v3347_v9  ;;  %p1158_p6 = scmp.lt.s32.totalorder %s1157_s17, 8 }
  0xec   : > { %2682 = vmatprep.subr.bf16.mxu1 %v3347_v9  ;;  %s872_s23 = scalar_select %p680_p9, 1, 0 }
  0xed   : > { %s1350_s20 = scalar_select %p1158_p6, 1, 0 }
  0xee   : > { %2675 = vmatpush3.bf16.msra.mxu0 %v3003_v61  ;;  %v873_v4 = vstv %s872_s23  ;;  %v2519_v61 = vld [vmem:[%s3792_s3 + $0x10] sm:$0xff] }
  0xef   : > { %2688 = vmatprep.subr.bf16.mxu0 %v3347_v9  ;;  %2683 = vmatpush3.bf16.msra.mxu1 %v3004_v1  ;;  %vm3880_vm3 = vcmp.eq.s32.totalorder %v873_v4, 1  ;;  %v2520_v1 = vld [vmem:[%s3792_s3 + $0x18] sm:$0xff] }
  0xf0   : > { %2696 = vmatprep.subr.bf16.mxu1 %v3347_v9 }
  0xf1   : > { %2677 = vmatmul.mubr.msk.bf16.vlgmr.msra.gmra.mrb[4].mxu0 %vm708_vm2, %v930_v2 }
  0xf2   : > { %2689 = vmatpush3.bf16.msra.mxu0 %v3005_v3  ;;  %2692 = vmatprep.mubr.msk.bf16.mxu0 %vm3348_vm1, %v3347_v9 }
  0xf3   : > { %2690 = vmatprep.subr.bf16.mxu0 %v3347_v9 }
  0xf6   : > { %2691 = vmatpush3.bf16.msra.mxu0 %v3007_v8 }
  0xf7   : > { %2704 = vmatprep.subr.bf16.mxu0 %v3347_v9 }
 0x156   : > { %v833_v46 = vpop.permute.xlu1 %832 }
 0x15a   : > { %v3844_v48 = vpop.permute.xlu1 %834 }
 0x1bb   : > { %v746_v19 = vpop.f32.mrb[0].mxu0 }
 0x1bc   : > { %v807_v21 = vpop.f32.mrb[0].mxu1  ;;  %v2662_v22 = vpop.f32.mrb[1].mxu0 }
 0x1bd   : > { %v808_v23 = vadd.f32 %v807_v21, %v746_v19  ;;  %v2670_v24 = vpop.f32.mrb[1].mxu1  ;;  %v749_v25 = vpop.f32.mrb[2].mxu0 }
 0x1be   : > { %v810_v26 = vpop.f32.mrb[2].mxu1  ;;  %v2663_v27 = vpop.f32.mrb[3].mxu0  ;;  %v3006_v24 = vld [vmem:[#allocation5] sm:$0xff]  }
 0x1bf   : > { %v814_v28 = vadd.f32 %v3835_v20, %v808_v23  ;;  %v811_v29 = vadd.f32 %v810_v26, %v749_v25  ;;  %v2671_v30 = vpop.f32.mrb[3].mxu1  ;;  %v3008_v27 = vld [vmem:[#allocation5 + $0x8] sm:$0xff]  }
 0x1c1   : > { %3026 = vtanh.f32 %v814_v28  ;;  %v815_v31 = vadd.f32 %v3835_v20, %v811_v29  ;;  %v2515_v34 = vmul.f32 -1.442695, %v814_v28  ;;  %v3915_v28 = vld [vmem:[%s3769_s24 + $0x8] sm:$0xff]  }
 0x1c3   : > { %3028 = vtanh.f32 %v815_v31  ;;  %v2516_v35 = vmul.f32 -1.442695, %v815_v31 }
 0x1c4   : > { %3030 = vpow2.f32 %v2515_v34 }
 0x1c5   : > { %3032 = vpow2.f32 %v2516_v35 }
 0x1cb   : > { %v3027_v32 = vpop.eup %3026 }
 0x1cc   : > { %842 = vrot.lane.b32.xlu0 %v3027_v32, %s3350_s5 }
 0x1cd   : > { %v3029_v33 = vpop.eup %3028 }
 0x1ce   : > { %v3031_v36 = vpop.eup %3030 }
 0x1cf   : > { %v822_v37 = vadd.f32 1.0, %v3031_v36  ;;  %v3033_v38 = vpop.eup %3032 }
 0x1d0   : > { %844 = vrot.lane.b32.xlu0 %v3029_v33, %s3350_s5  ;;  %v823_v39 = vadd.f32 1.0, %v3033_v38  ;;  %v984_v33 = vpop.f32.mrb[4].mxu0 }
 0x1d1   : > { %3034 = vrcp.f32 %v822_v37  ;;  %v2678_v34 = vpop.f32.mrb[5].mxu0  ;;  %v3939_v37 = vld [vmem:[%s4530_s15] ss:$0 sm:$0xff] }
 0x1d2   : > { %3036 = vrcp.f32 %v823_v39  ;;  %v987_v35 = vpop.f32.mrb[6].mxu0 }
 0x1d3   : > { %v2679_v36 = vpop.f32.mrb[7].mxu0 }
 0x1db   : > { %v3035_v40 = vpop.eup %3034 }
 0x1dc   : > { %v3037_v43 = vpop.eup %3036  ;;  %v838_v47 = vmul.f32 %v3035_v40, %v833_v46 }
 0x1dd   : > { %v839_v51 = vmul.f32 %v3037_v43, %v3844_v48 }
 0x23e   : > { %v843_v41 = vpop.permute.xlu0 %842 }
 0x23f   : > { %v848_v42 = vmul.f32 %v3035_v40, %v843_v41 }
 0x241   : > { %852 = vrot.lane.b32.xlu0 %v848_v42, %s3349_s13 }
 0x242   : > { %v845_v44 = vpop.permute.xlu0 %844 }
 0x243   : > { %v849_v45 = vmul.f32 %v3037_v43, %v845_v44 }
 0x245   : > { %854 = vrot.lane.b32.xlu1 %v849_v45, %s3349_s13  ;;  %877 = vrot.lane.b32.xlu0 %v683_v13, %s3351_s18 }
 0x2b3   : > { %v853_v49 = vpop.permute.xlu0 %852 }
 0x2b4   : > { %v858_v50 = vadd.f32 %v853_v49, %v838_v47 }
 0x2b6   : > { %3038 = vtanh.f32 %v858_v50  ;;  %v885_v19 = vsel %vm3880_vm3, %v858_v50, %v833_v46 }
 0x2b7   : > { %v855_v52 = vpop.permute.xlu1 %854  ;;  %v878_v62 = vpop.permute.xlu0 %877 }
 0x2b8   : > { %v859_v53 = vadd.f32 %v855_v52, %v839_v51 }
 0x2ba   : > { %3040 = vtanh.f32 %v859_v53  ;;  %v886_v21 = vsel %vm3880_vm3, %v859_v53, %v3844_v48 }
 0x2c0   : > { %v3039_v56 = vpop.eup %3038 }
 0x2c1   : > { %864 = vrot.lane.b32.xlu0 %v3039_v56, %s3350_s5 }
 0x2c4   : > { %v3041_v58 = vpop.eup %3040 }
 0x2c5   : > { %866 = vrot.lane.b32.xlu1 %v3041_v58, %s3350_s5  ;;  %2982 = vrot.lane.b32.xlu0 %v2981_v57, %s3351_s18 }
 0x2c9   : > { %879 = vrot.lane.b32.xlu1 %v3813_v14, %s3351_s18 }
 0x333   : > { %v865_v5 = vpop.permute.xlu0 %864 }
 0x334   : > { %v870_v6 = vmul.f32 %v3035_v40, %v865_v5 }
 0x336   : > { %v883_v10 = vsel %vm3880_vm3, %v870_v6, %v878_v62 }
 0x337   : > { %v867_v11 = vpop.permute.xlu1 %866  ;;  %889 = vrot.lane.b32.xlu1 %v883_v10, %s3349_s13  ;;  %v2983_v12 = vpop.permute.xlu0 %2982 }
 0x338   : > { %v871_v13 = vmul.f32 %v3037_v43, %v867_v11  ;;  %v3890_v16 = vadd.low.f32.bf16 %v883_v10, %v2983_v12 }
 0x33b   : > { %v880_v14 = vpop.permute.xlu1 %879 }
 0x33c   : > { %v884_v15 = vsel %vm3880_vm3, %v871_v13, %v880_v14 }
 0x33d   : > { %891 = vrot.lane.b32.xlu0 %v884_v15, %s3349_s13  ;;  %v3893_v17 = vadd.high.f32.bf16 %v884_v15, %v2983_v12 }
 0x33f   : > { %v925_v18 = vpack.c.bf16 %v3893_v17, %v3890_v16 }
 0x341   : > { %899 = vrot.lane.b32.xlu0 %v885_v19, %s3351_s18  ;;  %992 = vrot.lane.b32.xlu1 %v925_v18, %s3349_s13 }
 0x345   : > { %901 = vrot.lane.b32.xlu1 %v886_v21, %s3351_s18 }
 0x3a9   : > { %v890_v22 = vpop.permute.xlu1 %889 }
 0x3aa   : > { %895 = vst.msk [vmem:[%s3790_s29] sm:$0xff] %vm708_vm2, %v890_v22 }
 0x3af   : > { %v892_v23 = vpop.permute.xlu0 %891 }
 0x3b0   : > { %896 = vst.msk [vmem:[%s3790_s29 + $0x8] sm:$0xff] %vm708_vm2, %v892_v23 }
 0x3b1   : > { %v3919_v30 = vld [vmem:[%s3790_s29] sm:$0xff] }
 0x3b3   : > { %v900_v25 = vpop.permute.xlu0 %899  ;;  %v993_v26 = vpop.permute.xlu1 %992 }
 0x3b4   : > { %905 = vst.msk [vmem:[%s3792_s3] sm:$0xff] %vm708_vm2, %v900_v25  ;;  %2685 = vmatmul.mubr.msk.bf16.vlgmr.msra.gmra.mrb[4].mxu1 %vm708_vm2, %v993_v26 }
 0x3b5   : > { %2697 = vmatpush3.bf16.msra.mxu1 %v3006_v24  ;;  %2700 = vmatprep.mubr.msk.bf16.mxu1 %vm3348_vm1, %v3347_v9 }
 0x3b6   : > { %2698 = vmatprep.subr.bf16.mxu1 %v3347_v9 }
 0x3b7   : > { %v902_v29 = vpop.permute.xlu1 %901  ;;  %v3922_v31 = vld [vmem:[%s3790_s29 + $0x8] sm:$0xff] }
 0x3b8   : > { %906 = vst.msk [vmem:[%s3792_s3 + $0x8] sm:$0xff] %vm708_vm2, %v902_v29  ;;  %v1170_v32 = vpack.c.bf16 %v3922_v31, %v3919_v30 }
 0x3b9   : > { %2699 = vmatpush3.bf16.msra.mxu1 %v3008_v27 }
 0x3ba   : > { %2693 = vmatmul.mubr.msk.bf16.vlgmr.msra.gmra.mrb[8].mxu0 %vm708_vm2, %v1170_v32  ;;  %2712 = vmatprep.subr.bf16.mxu1 %v3347_v9 }
 0x3bb   : > { %2708 = vmatprep.mubr.msk.bf16.mxu0 %vm3348_vm1, %v3347_v9  ;;  %v1164_v25 = vld [vmem:[%s3792_s3] sm:$0xff] }
 0x3bc   : > { %2701 = vmatmul.mubr.msk.bf16.vlgmr.msra.gmra.mrb[8].mxu1 %vm708_vm2, %v3915_v28 }
 0x3bd   : > { %2716 = vmatprep.mubr.msk.bf16.mxu1 %vm3348_vm1, %v3347_v9 }
 0x3bf   : > { %v1165_v32 = vld [vmem:[%s3792_s3 + $0x8] sm:$0xff] }
 0x487   : > { %v1043_v38 = vpop.f32.mrb[4].mxu1 }
 0x488   : > { %v1044_v39 = vadd.f32 %v1043_v38, %v984_v33  ;;  %v2686_v40 = vpop.f32.mrb[5].mxu1 }
 0x489   : > { %v1046_v41 = vpop.f32.mrb[6].mxu1 }
 0x48a   : > { %v1050_v42 = vadd.f32 %v3939_v37, %v1044_v39  ;;  %v1047_v43 = vadd.f32 %v1046_v41, %v987_v35  ;;  %v2687_v44 = vpop.f32.mrb[7].mxu1 }
 0x48b   : > { %v3991_v44 = vstv %s1350_s20 }
 0x48c   : > { %3042 = vtanh.f32 %v1050_v42  ;;  %v1051_v45 = vadd.f32 %v3939_v37, %v1047_v43  ;;  %v2527_v2 = vmul.f32 -1.442695, %v1050_v42  ;;  %vm1352_vm4 = vcmp.eq.s32.totalorder %v3991_v44, 1 }
 0x48d   : > { %v1224_v46 = vpop.f32.mrb[8].mxu0 }
 0x48e   : > { %v2694_v47 = vpop.f32.mrb[9].mxu0  ;;  %3044 = vtanh.f32 %v1051_v45  ;;  %v2528_v3 = vmul.f32 -1.442695, %v1051_v45 }
 0x48f   : > { %v1227_v48 = vpop.f32.mrb[10].mxu0  ;;  %v1285_v49 = vpop.f32.mrb[8].mxu1 }
 0x490   : > { %v1286_v50 = vadd.f32 %v1285_v49, %v1224_v46  ;;  %v2695_v51 = vpop.f32.mrb[11].mxu0  ;;  %v2702_v52 = vpop.f32.mrb[9].mxu1 }
 0x491   : > { %v1288_v53 = vpop.f32.mrb[10].mxu1 }
 0x492   : > { %v1292_v54 = vadd.f32 %v3835_v20, %v1286_v50  ;;  %v1289_v55 = vadd.f32 %v1288_v53, %v1227_v48  ;;  %v2703_v56 = vpop.f32.mrb[11].mxu1 }
 0x493   : > { %v1385_v56 = vunpack.c.l.bf16 %v3915_v28 }
 0x494   : > { %3046 = vtanh.f32 %v1292_v54  ;;  %v1293_v57 = vadd.f32 %v3835_v20, %v1289_v55  ;;  %v2544_v4 = vmul.f32 -1.442695, %v1292_v54 }
 0x496   : > { %v3043_v58 = vpop.eup %3042  ;;  %3048 = vtanh.f32 %v1293_v57  ;;  %v2545_v5 = vmul.f32 -1.442695, %v1293_v57  ;;  %v1386_v57 = vunpack.c.h.bf16 %v3915_v28  ;;  %v3011_v28 = vld [vmem:[#allocation8] sm:$0xff]  }
 0x497   : > { %1078 = vrot.lane.b32.xlu0 %v3043_v58, %s3350_s5  ;;  %3050 = vpow2.f32 %v2527_v2  ;;  %2713 = vmatpush3.bf16.msra.mxu1 %v3011_v28 }
 0x498   : > { %v3045_v59 = vpop.eup %3044  ;;  %3052 = vpow2.f32 %v2528_v3  ;;  %2714 = vmatprep.subr.bf16.mxu1 %v3347_v9 }
 0x499   : > { %1080 = vrot.lane.b32.xlu1 %v3045_v59, %s3350_s5  ;;  %3054 = vpow2.f32 %v2544_v4  ;;  %v2986_v59 = vpack.i.bf16 %v1386_v57, %v1385_v56 }
 0x49a   : > { %3056 = vpow2.f32 %v2545_v5  ;;  %v3013_v5 = vld [vmem:[#allocation8 + $0x8] sm:$0xff]  }
 0x49b   : > { %2715 = vmatpush3.bf16.msra.mxu1 %v3013_v5 }
 0x49c   : > { %2728 = vmatprep.subr.bf16.mxu1 %v3347_v9 }
 0x49e   : > { %v3047_v60 = vpop.eup %3046 }
 0x49f   : > { %1320 = vrot.lane.b32.xlu0 %v3047_v60, %s3350_s5 }
 0x4a0   : > { %v3049_v62 = vpop.eup %3048 }
 0x4a1   : > { %1322 = vrot.lane.b32.xlu1 %v3049_v62, %s3350_s5  ;;  %v3051_v6 = vpop.eup %3050 }
 0x4a2   : > { %v3053_v8 = vpop.eup %3052  ;;  %v1058_v10 = vadd.f32 1.0, %v3051_v6 }
 0x4a3   : > { %1068 = vrot.lane.b32.xlu0 %v2519_v61, %s3349_s13  ;;  %v1059_v11 = vadd.f32 1.0, %v3053_v8  ;;  %v3055_v12 = vpop.eup %3054 }
 0x4a4   : > { %3058 = vrcp.f32 %v1058_v10  ;;  %v3057_v13 = vpop.eup %3056  ;;  %v1300_v14 = vadd.f32 1.0, %v3055_v12 }
 0x4a5   : > { %1070 = vrot.lane.b32.xlu1 %v2520_v1, %s3349_s13  ;;  %3060 = vrcp.f32 %v1059_v11  ;;  %v1301_v15 = vadd.f32 1.0, %v3057_v13  ;;  %v3012_v1 = vld [vmem:[%s4527_s9 + $0x8] sm:$0xff]  }
 0x4a6   : > { %3062 = vrcp.f32 %v1300_v14 }
 0x4a7   : > { %3064 = vrcp.f32 %v1301_v15 }
 0x4ae   : > { %v3953_v18 = vpop.eup %3058 }
 0x4af   : > { %v3956_v22 = vpop.eup %3060 }
 0x4b0   : > { %v3963_v26 = vpop.eup %3062 }
 0x4b1   : > { %v3968_v33 = vpop.eup %3064 }
 0x509   : > { %v1079_v19 = vpop.permute.xlu0 %1078 }
 0x50a   : > { %v1084_v21 = vmul.f32 %v3953_v18, %v1079_v19 }
 0x50b   : > { %v1081_v23 = vpop.permute.xlu1 %1080 }
 0x50c   : > { %1088 = vrot.lane.b32.xlu0 %v1084_v21, %s3349_s13  ;;  %v1085_v24 = vmul.f32 %v3956_v22, %v1081_v23 }
 0x50e   : > { %1090 = vrot.lane.b32.xlu1 %v1085_v24, %s3349_s13 }
 0x510   : > { %1310 = vrot.lane.b32.xlu0 %v1164_v25, %s3349_s13 }
 0x511   : > { %v1321_v27 = vpop.permute.xlu0 %1320 }
 0x512   : > { %v1326_v29 = vmul.f32 %v3963_v26, %v1321_v27  ;;  %1312 = vrot.lane.b32.xlu1 %v1165_v32, %s3349_s13 }
 0x513   : > { %v1323_v34 = vpop.permute.xlu1 %1322 }
 0x514   : > { %1330 = vrot.lane.b32.xlu0 %v1326_v29, %s3349_s13  ;;  %v1327_v35 = vmul.f32 %v3968_v33, %v1323_v34  ;;  %v3014_v34 = vld [vmem:[#allocation7] sm:$0xff]  }
 0x515   : > { %v3978_v36 = vpop.permute.xlu0 %1068 }
 0x516   : > { %1332 = vrot.lane.b32.xlu1 %v1327_v35, %s3349_s13  ;;  %v1074_v38 = vmul.f32 %v3953_v18, %v3978_v36 }
 0x517   : > { %v3982_v39 = vpop.permute.xlu1 %1070 }
 0x518   : > { %1110 = vrot.lane.b32.xlu0 %v3867_v63, %s3351_s18  ;;  %v1075_v42 = vmul.f32 %v3956_v22, %v3982_v39 }
 0x51a   : > { %1112 = vrot.lane.b32.xlu1 %v3870_v0, %s3351_s18 }
 0x57e   : > { %v1089_v40 = vpop.permute.xlu0 %1088 }
 0x57f   : > { %v3984_v41 = vadd.f32 %v1089_v40, %v1074_v38  ;;  %v3015_v38 = vld [vmem:[#allocation5] sm:$0xff]  }
 0x580   : > { %v1091_v63 = vpop.permute.xlu1 %1090 }
 0x581   : > { %3066 = vtanh.f32 %v3984_v41  ;;  %v3989_v0 = vadd.f32 %v1091_v63, %v1075_v42  ;;  %v1118_v25 = vsel %vm3880_vm3, %v3984_v41, %v3978_v36  ;;  %v3017_v42 = vld [vmem:[#allocation5 + $0x8] sm:$0xff]   ;;  %v4087_v63 = vld [vmem:[%s3769_s24 + $0x10] sm:$0xff]   ;;  %s1633_s24 = sadd.s32 2, %s3855_s30 }
 0x582   : > { %v1311_v43 = vpop.permute.xlu0 %1310  ;;  %p1634_p13 = scmp.lt.s32.totalorder %s1633_s24, 8 }
 0x583   : > { %3068 = vtanh.f32 %v3989_v0  ;;  %v1316_v45 = vmul.f32 %v3963_v26, %v1311_v43 }
 0x584   : > { %v1313_v46 = vpop.permute.xlu1 %1312  ;;  %s1826_s15 = scalar_select %p1634_p13, 1, 0 }
 0x585   : > { %v1317_v49 = vmul.f32 %v3968_v33, %v1313_v46 }
 0x586   : > { %v1331_v47 = vpop.permute.xlu0 %1330 }
 0x587   : > { %v1336_v48 = vadd.f32 %v1331_v47, %v1316_v45 }
 0x588   : > { %v1333_v50 = vpop.permute.xlu1 %1332 }
 0x589   : > { %3070 = vtanh.f32 %v1336_v48  ;;  %v1363_v51 = vsel %vm1352_vm4, %v1336_v48, %v1311_v43  ;;  %v1337_v52 = vadd.f32 %v1333_v50, %v1317_v49 }
 0x58a   : > { %v1111_v61 = vpop.permute.xlu0 %1110 }
 0x58b   : > { %v3067_v53 = vpop.eup %3066  ;;  %3072 = vtanh.f32 %v1337_v52  ;;  %v1364_v54 = vsel %vm1352_vm4, %v1337_v52, %v1313_v46 }
 0x58c   : > { %1100 = vrot.lane.b32.xlu0 %v3067_v53, %s3350_s5  ;;  %v1113_v62 = vpop.permute.xlu1 %1112 }
 0x58d   : > { %v3069_v55 = vpop.eup %3068 }
 0x58e   : > { %1102 = vrot.lane.b32.xlu1 %v3069_v55, %s3350_s5 }
 0x590   : > { %1355 = vrot.lane.b32.xlu0 %v3919_v30, %s3351_s18  ;;  %v3010_v30 = vld [vmem:[%s4527_s9] sm:$0xff]  }
 0x591   : > { %2705 = vmatpush3.bf16.msra.mxu0 %v3010_v30 }
 0x592   : > { %2706 = vmatprep.subr.bf16.mxu0 %v3347_v9 }
 0x593   : > { %v3071_v58 = vpop.eup %3070 }
 0x594   : > { %1342 = vrot.lane.b32.xlu0 %v3071_v58, %s3350_s5 }
 0x595   : > { %v3073_v60 = vpop.eup %3072  ;;  %2707 = vmatpush3.bf16.msra.mxu0 %v3012_v1 }
 0x596   : > { %1344 = vrot.lane.b32.xlu1 %v3073_v60, %s3350_s5  ;;  %2720 = vmatprep.subr.bf16.mxu0 %v3347_v9 }
 0x598   : > { %2987 = vrot.lane.b32.xlu0 %v2986_v59, %s3351_s18 }
 0x59a   : > { %1357 = vrot.lane.b32.xlu1 %v3922_v31, %s3351_s18 }
 0x5fe   : > { %v1101_v2 = vpop.permute.xlu0 %1100 }
 0x5ff   : > { %v1106_v3 = vmul.f32 %v3953_v18, %v1101_v2 }
 0x600   : > { %v1103_v31 = vpop.permute.xlu1 %1102 }
 0x601   : > { %v4024_v4 = vsel %vm3880_vm3, %v1106_v3, %v1111_v61  ;;  %v1107_v6 = vmul.f32 %v3956_v22, %v1103_v31 }
 0x602   : > { %v1356_v8 = vpop.permute.xlu0 %1355  ;;  %1122 = vrot.lane.b32.xlu1 %v4024_v4, %s3349_s13 }
 0x603   : > { %v4031_v10 = vsel %vm3880_vm3, %v1107_v6, %v1113_v62 }
 0x604   : > { %1124 = vrot.lane.b32.xlu0 %v4031_v10, %s3349_s13 }
 0x606   : > { %v1343_v11 = vpop.permute.xlu0 %1342 }
 0x607   : > { %v1348_v12 = vmul.f32 %v3963_v26, %v1343_v11  ;;  %v1119_v26 = vsel %vm3880_vm3, %v3989_v0, %v3982_v39  ;;  %v3016_v39 = vld [vmem:[#allocation7 + $0x8] sm:$0xff]  }
 0x608   : > { %v1345_v13 = vpop.permute.xlu1 %1344 }
 0x609   : > { %v1361_v14 = vsel %vm1352_vm4, %v1348_v12, %v1356_v8  ;;  %v1349_v18 = vmul.f32 %v3968_v33, %v1345_v13 }
 0x60a   : > { %v2988_v15 = vpop.permute.xlu0 %2987  ;;  %1367 = vrot.lane.b32.xlu1 %v1361_v14, %s3349_s13 }
 0x60b   : > { %v4041_v19 = vadd.low.f32.bf16 %v1361_v14, %v2988_v15 }
 0x60c   : > { %v1358_v21 = vpop.permute.xlu1 %1357 }
 0x60d   : > { %v1362_v22 = vsel %vm1352_vm4, %v1349_v18, %v1358_v21 }
 0x60e   : > { %1369 = vrot.lane.b32.xlu0 %v1362_v22, %s3349_s13  ;;  %v4046_v23 = vadd.high.f32.bf16 %v1362_v22, %v2988_v15 }
 0x610   : > { %v1401_v24 = vpack.c.bf16 %v4046_v23, %v4041_v19 }
 0x612   : > { %1132 = vrot.lane.b32.xlu0 %v1118_v25, %s3351_s18  ;;  %1468 = vrot.lane.b32.xlu1 %v1401_v24, %s3349_s13 }
 0x616   : > { %1377 = vrot.lane.b32.xlu0 %v1363_v51, %s3351_s18  ;;  %1134 = vrot.lane.b32.xlu1 %v1119_v26, %s3351_s18 }
 0x61a   : > { %1379 = vrot.lane.b32.xlu1 %v1364_v54, %s3351_s18 }
 0x674   : > { %v1123_v27 = vpop.permute.xlu1 %1122 }
 0x675   : > { %2529 = vst.msk [vmem:[%s3790_s29 + $0x10] sm:$0xff] %vm708_vm2, %v1123_v27 }
 0x676   : > { %v1125_v29 = vpop.permute.xlu0 %1124 }
 0x677   : > { %2530 = vst.msk [vmem:[%s3790_s29 + $0x18] sm:$0xff] %vm708_vm2, %v1125_v29 }
 0x67c   : > { %v1368_v32 = vpop.permute.xlu1 %1367  ;;  %v4070_v33 = vld [vmem:[%s3790_s29 + $0x10] sm:$0xff] }
 0x67d   : > { %1373 = vst.msk [vmem:[%s3790_s29] sm:$0xff] %vm708_vm2, %v1368_v32 }
 0x67e   : > { %v4073_v7 = vld [vmem:[%s3790_s29 + $0x18] sm:$0xff] }
 0x67f   : > { %v1406_v35 = vpack.c.bf16 %v4073_v7, %v4070_v33 }
 0x680   : > { %v1370_v36 = vpop.permute.xlu0 %1369 }
 0x681   : > { %1374 = vst.msk [vmem:[%s3790_s29 + $0x8] sm:$0xff] %vm708_vm2, %v1370_v36  ;;  %2709 = vmatmul.mubr.msk.bf16.vlgmr.msra.gmra.mrb[12].mxu0 %vm708_vm2, %v1406_v35 }
 0x682   : > { %2721 = vmatpush3.bf16.msra.mxu0 %v3014_v34  ;;  %2724 = vmatprep.mubr.msk.bf16.mxu0 %vm3348_vm1, %v3347_v9 }
 0x683   : > { %2722 = vmatprep.subr.bf16.mxu0 %v3347_v9 }
 0x684   : > { %v1133_v40 = vpop.permute.xlu0 %1132  ;;  %v1469_v41 = vpop.permute.xlu1 %1468  ;;  %v4093_v45 = vld [vmem:[%s3790_s29] sm:$0xff] }
 0x685   : > { %2531 = vst.msk [vmem:[%s3792_s3 + $0x10] sm:$0xff] %vm708_vm2, %v1133_v40  ;;  %2717 = vmatmul.mubr.msk.bf16.vlgmr.msra.gmra.mrb[12].mxu1 %vm708_vm2, %v1469_v41 }
 0x686   : > { %2729 = vmatpush3.bf16.msra.mxu1 %v3015_v38  ;;  %2723 = vmatpush3.bf16.msra.mxu0 %v3016_v39 }
 0x687   : > { %2730 = vmatprep.subr.bf16.mxu1 %v3347_v9  ;;  %2732 = vmatprep.mubr.msk.bf16.mxu1 %vm3348_vm1, %v3347_v9 }
 0x688   : > { %v1378_v0 = vpop.permute.xlu0 %1377  ;;  %v1135_v43 = vpop.permute.xlu1 %1134  ;;  %v4096_v46 = vld [vmem:[%s3790_s29 + $0x8] sm:$0xff]  ;;  %2736 = vmatprep.subr.bf16.mxu0 %v3347_v9 }
 0x689   : > { %1383 = vst.msk [vmem:[%s3792_s3] sm:$0xff] %vm708_vm2, %v1378_v0  ;;  %2532 = vst.msk [vmem:[%s3792_s3 + $0x18] sm:$0xff] %vm708_vm2, %v1135_v43  ;;  %v1646_v47 = vpack.c.bf16 %v4096_v46, %v4093_v45 }
 0x68a   : > { %2731 = vmatpush3.bf16.msra.mxu1 %v3017_v42 }
 0x68b   : > { %2725 = vmatmul.mubr.msk.bf16.vlgmr.msra.gmra.mrb[16].mxu0 %vm708_vm2, %v1646_v47  ;;  %2744 = vmatprep.subr.bf16.mxu1 %v3347_v9 }
 0x68c   : > { %v1380_v48 = vpop.permute.xlu1 %1379  ;;  %2740 = vmatprep.mubr.msk.bf16.mxu0 %vm3348_vm1, %v3347_v9  ;;  %v2548_v18 = vld [vmem:[%s3792_s3 + $0x10] sm:$0xff] }
 0x68d   : > { %1384 = vst.msk [vmem:[%s3792_s3 + $0x8] sm:$0xff] %vm708_vm2, %v1380_v48  ;;  %2733 = vmatmul.mubr.msk.bf16.vlgmr.msra.gmra.mrb[16].mxu1 %vm708_vm2, %v4087_v63 }
 0x68e   : > { %2748 = vmatprep.mubr.msk.bf16.mxu1 %vm3348_vm1, %v3347_v9 }
 0x690   : > { %v2549_v21 = vld [vmem:[%s3792_s3 + $0x18] sm:$0xff]  ;;  %v1640_v47 = vld [vmem:[%s3792_s3] sm:$0xff] }
 0x754   : > { %v1460_v49 = vpop.f32.mrb[12].mxu0 }
 0x755   : > { %v2710_v50 = vpop.f32.mrb[13].mxu0 }
 0x756   : > { %v1463_v51 = vpop.f32.mrb[14].mxu0 }
 0x757   : > { %v2711_v52 = vpop.f32.mrb[15].mxu0 }
 0x758   : > { %v1519_v53 = vpop.f32.mrb[12].mxu1 }
 0x759   : > { %v1520_v54 = vadd.f32 %v1519_v53, %v1460_v49  ;;  %v2718_v55 = vpop.f32.mrb[13].mxu1 }
 0x75a   : > { %v1522_v56 = vpop.f32.mrb[14].mxu1 }
 0x75b   : > { %v1526_v57 = vadd.f32 %v3939_v37, %v1520_v54  ;;  %v1523_v58 = vadd.f32 %v1522_v56, %v1463_v51  ;;  %v2719_v59 = vpop.f32.mrb[15].mxu1  ;;  %v1641_v51 = vld [vmem:[%s3792_s3 + $0x8] sm:$0xff] }
 0x75d   : > { %3074 = vtanh.f32 %v1526_v57  ;;  %v1527_v60 = vadd.f32 %v3939_v37, %v1523_v58 }
 0x75e   : > { %v1700_v61 = vpop.f32.mrb[16].mxu0 }
 0x75f   : > { %v2726_v30 = vpop.f32.mrb[17].mxu0  ;;  %3076 = vtanh.f32 %v1527_v60  ;;  %v2557_v22 = vmul.f32 -1.442695, %v1527_v60 }
 0x760   : > { %v1703_v62 = vpop.f32.mrb[18].mxu0  ;;  %v1761_v28 = vpop.f32.mrb[16].mxu1  ;;  %v4162_v30 = vstv %s1826_s15 }
 0x761   : > { %v1762_v1 = vadd.f32 %v1761_v28, %v1700_v61  ;;  %v2727_v2 = vpop.f32.mrb[19].mxu0  ;;  %v2734_v3 = vpop.f32.mrb[17].mxu1  ;;  %vm1828_vm5 = vcmp.eq.s32.totalorder %v4162_v30, 1 }
 0x762   : > { %v1764_v31 = vpop.f32.mrb[18].mxu1 }
 0x763   : > { %v1768_v5 = vadd.f32 %v3835_v20, %v1762_v1  ;;  %v1765_v6 = vadd.f32 %v1764_v31, %v1703_v62  ;;  %v2735_v8 = vpop.f32.mrb[19].mxu1 }
 0x765   : > { %3078 = vtanh.f32 %v1768_v5  ;;  %v1769_v11 = vadd.f32 %v3835_v20, %v1765_v6  ;;  %v2556_v20 = vmul.f32 -1.442695, %v1526_v57  ;;  %v2575_v24 = vmul.f32 -1.442695, %v1768_v5 }
 0x767   : > { %v3075_v12 = vpop.eup %3074  ;;  %3080 = vtanh.f32 %v1769_v11  ;;  %v2576_v25 = vmul.f32 -1.442695, %v1769_v11 }
 0x768   : > { %1554 = vrot.lane.b32.xlu0 %v3075_v12, %s3350_s5  ;;  %3082 = vpow2.f32 %v2556_v20 }
 0x769   : > { %v3077_v13 = vpop.eup %3076  ;;  %3084 = vpow2.f32 %v2557_v22  ;;  %v3021_v22 = vld [vmem:[%s4527_s9 + $0x8] sm:$0xff]  }
 0x76a   : > { %1556 = vrot.lane.b32.xlu1 %v3077_v13, %s3350_s5  ;;  %3086 = vpow2.f32 %v2575_v24  ;;  %v1861_v13 = vunpack.c.l.bf16 %v4087_v63 }
 0x76b   : > { %3088 = vpow2.f32 %v2576_v25 }
 0x76f   : > { %v3079_v14 = vpop.eup %3078 }
 0x770   : > { %1796 = vrot.lane.b32.xlu0 %v3079_v14, %s3350_s5  ;;  %v1862_v14 = vunpack.c.h.bf16 %v4087_v63  ;;  %v3020_v63 = vld [vmem:[#allocation8] sm:$0xff]  }
 0x771   : > { %v3081_v15 = vpop.eup %3080  ;;  %2745 = vmatpush3.bf16.msra.mxu1 %v3020_v63 }
 0x772   : > { %1798 = vrot.lane.b32.xlu1 %v3081_v15, %s3350_s5  ;;  %v3083_v26 = vpop.eup %3082  ;;  %2746 = vmatprep.subr.bf16.mxu1 %v3347_v9 }
 0x773   : > { %v3085_v27 = vpop.eup %3084  ;;  %v1534_v29 = vadd.f32 1.0, %v3083_v26 }
 0x774   : > { %1544 = vrot.lane.b32.xlu0 %v2548_v18, %s3349_s13  ;;  %v1535_v32 = vadd.f32 1.0, %v3085_v27  ;;  %v3087_v34 = vpop.eup %3086  ;;  %v2991_v18 = vpack.i.bf16 %v1862_v14, %v1861_v13 }
 0x775   : > { %3090 = vrcp.f32 %v1534_v29  ;;  %v3089_v35 = vpop.eup %3088  ;;  %v1776_v36 = vadd.f32 1.0, %v3087_v34  ;;  %v3022_v29 = vld [vmem:[#allocation8 + $0x8] sm:$0xff]  }
 0x776   : > { %1546 = vrot.lane.b32.xlu1 %v2549_v21, %s3349_s13  ;;  %3092 = vrcp.f32 %v1535_v32  ;;  %v1777_v38 = vadd.f32 1.0, %v3089_v35  ;;  %2747 = vmatpush3.bf16.msra.mxu1 %v3022_v29 }
 0x777   : > { %3094 = vrcp.f32 %v1776_v36 }
 0x778   : > { %3096 = vrcp.f32 %v1777_v38 }
 0x77f   : > { %v4127_v39 = vpop.eup %3090 }
 0x780   : > { %v4130_v42 = vpop.eup %3092 }
 0x781   : > { %v4137_v48 = vpop.eup %3094 }
 0x782   : > { %v4142_v52 = vpop.eup %3096 }
 0x7da   : > { %v1555_v40 = vpop.permute.xlu0 %1554 }
 0x7db   : > { %v1560_v41 = vmul.f32 %v4127_v39, %v1555_v40 }
 0x7dc   : > { %v1557_v0 = vpop.permute.xlu1 %1556 }
 0x7dd   : > { %1564 = vrot.lane.b32.xlu0 %v1560_v41, %s3349_s13  ;;  %v1561_v43 = vmul.f32 %v4130_v42, %v1557_v0 }
 0x7df   : > { %1566 = vrot.lane.b32.xlu1 %v1561_v43, %s3349_s13 }
 0x7e1   : > { %1786 = vrot.lane.b32.xlu0 %v1640_v47, %s3349_s13 }
 0x7e2   : > { %v1797_v49 = vpop.permute.xlu0 %1796 }
 0x7e3   : > { %v1802_v50 = vmul.f32 %v4137_v48, %v1797_v49  ;;  %1788 = vrot.lane.b32.xlu1 %v1641_v51, %s3349_s13 }
 0x7e4   : > { %v1799_v53 = vpop.permute.xlu1 %1798 }
 0x7e5   : > { %1806 = vrot.lane.b32.xlu0 %v1802_v50, %s3349_s13  ;;  %v1803_v54 = vmul.f32 %v4142_v52, %v1799_v53 }
 0x7e6   : > { %v4152_v55 = vpop.permute.xlu0 %1544 }
 0x7e7   : > { %1808 = vrot.lane.b32.xlu1 %v1803_v54, %s3349_s13  ;;  %v1550_v56 = vmul.f32 %v4127_v39, %v4152_v55 }
 0x7e8   : > { %v4156_v57 = vpop.permute.xlu1 %1546 }
 0x7e9   : > { %1586 = vrot.lane.b32.xlu0 %v4070_v33, %s3351_s18  ;;  %v1551_v60 = vmul.f32 %v4130_v42, %v4156_v57 }
 0x7eb   : > { %1588 = vrot.lane.b32.xlu1 %v4073_v7, %s3351_s18 }
 0x84f   : > { %v1565_v58 = vpop.permute.xlu0 %1564 }
 0x850   : > { %v1570_v59 = vadd.f32 %v1565_v58, %v1550_v56 }
 0x851   : > { %v1567_v33 = vpop.permute.xlu1 %1566 }
 0x852   : > { %3098 = vtanh.f32 %v1570_v59  ;;  %v4160_v61 = vadd.f32 %v1567_v33, %v1551_v60  ;;  %v1594_v38 = vsel %vm1352_vm4, %v1570_v59, %v4152_v55 }
 0x853   : > { %v1787_v7 = vpop.permute.xlu0 %1786 }
 0x854   : > { %3100 = vtanh.f32 %v4160_v61  ;;  %v1792_v62 = vmul.f32 %v4137_v48, %v1787_v7  ;;  %v1595_v50 = vsel %vm1352_vm4, %v4160_v61, %v4156_v57 }
 0x855   : > { %v1789_v28 = vpop.permute.xlu1 %1788 }
 0x856   : > { %v1793_v3 = vmul.f32 %v4142_v52, %v1789_v28 }
 0x857   : > { %v1807_v1 = vpop.permute.xlu0 %1806 }
 0x858   : > { %v1812_v2 = vadd.f32 %v1807_v1, %v1792_v62 }
 0x859   : > { %v1809_v31 = vpop.permute.xlu1 %1808 }
 0x85a   : > { %3102 = vtanh.f32 %v1812_v2  ;;  %v4170_v5 = vsel %vm1828_vm5, %v1812_v2, %v1787_v7  ;;  %v1813_v6 = vadd.f32 %v1809_v31, %v1793_v3 }
 0x85b   : > { %v1587_v20 = vpop.permute.xlu0 %1586 }
 0x85c   : > { %v3099_v8 = vpop.eup %3098  ;;  %3104 = vtanh.f32 %v1813_v6  ;;  %v4175_v11 = vsel %vm1828_vm5, %v1813_v6, %v1789_v28 }
 0x85d   : > { %1576 = vrot.lane.b32.xlu0 %v3099_v8, %s3350_s5  ;;  %v1589_v24 = vpop.permute.xlu1 %1588 }
 0x85e   : > { %v3101_v12 = vpop.eup %3100 }
 0x85f   : > { %1578 = vrot.lane.b32.xlu1 %v3101_v12, %s3350_s5 }
 0x861   : > { %1831 = vrot.lane.b32.xlu0 %v4093_v45, %s3351_s18  ;;  %v3019_v45 = vld [vmem:[%s4527_s9] sm:$0xff]  }
 0x862   : > { %2737 = vmatpush3.bf16.msra.mxu0 %v3019_v45 }
 0x863   : > { %2738 = vmatprep.subr.bf16.mxu0 %v3347_v9 }
 0x864   : > { %v3103_v15 = vpop.eup %3102 }
 0x865   : > { %1818 = vrot.lane.b32.xlu0 %v3103_v15, %s3350_s5 }
 0x866   : > { %v3105_v21 = vpop.eup %3104  ;;  %2739 = vmatpush3.bf16.msra.mxu0 %v3021_v22 }
 0x867   : > { %1820 = vrot.lane.b32.xlu1 %v3105_v21, %s3350_s5 }
 0x869   : > { %2992 = vrot.lane.b32.xlu0 %v2991_v18, %s3351_s18 }
 0x86b   : > { %1833 = vrot.lane.b32.xlu1 %v4096_v46, %s3351_s18 }
 0x8cf   : > { %v1577_v25 = vpop.permute.xlu0 %1576 }
 0x8d0   : > { %v1582_v26 = vmul.f32 %v4127_v39, %v1577_v25 }
 0x8d1   : > { %v1579_v46 = vpop.permute.xlu1 %1578 }
 0x8d2   : > { %v4198_v27 = vsel %vm1352_vm4, %v1582_v26, %v1587_v20  ;;  %v1583_v32 = vmul.f32 %v4130_v42, %v1579_v46 }
 0x8d3   : > { %v1832_v34 = vpop.permute.xlu0 %1831  ;;  %1598 = vrot.lane.b32.xlu1 %v4198_v27, %s3349_s13 }
 0x8d4   : > { %v4205_v35 = vsel %vm1352_vm4, %v1583_v32, %v1589_v24 }
 0x8d5   : > { %1600 = vrot.lane.b32.xlu0 %v4205_v35, %s3349_s13 }
 0x8d7   : > { %v1819_v9 = vpop.permute.xlu0 %1818 }
 0x8d8   : > { %v1824_v36 = vmul.f32 %v4137_v48, %v1819_v9 }
 0x8d9   : > { %1608 = vrot.lane.b32.xlu0 %v1594_v38, %s3351_s18  ;;  %v1821_v39 = vpop.permute.xlu1 %1820 }
 0x8da   : > { %v1825_v41 = vmul.f32 %v4142_v52, %v1821_v39  ;;  %v4217_v42 = vsel %vm1828_vm5, %v1824_v36, %v1832_v34 }
 0x8db   : > { %v2993_v40 = vpop.permute.xlu0 %2992 }
 0x8dc   : > { %v4220_v0 = vadd.low.f32.bf16 %v4217_v42, %v2993_v40 }
 0x8dd   : > { %v1834_v43 = vpop.permute.xlu1 %1833 }
 0x8de   : > { %v4224_v47 = vsel %vm1828_vm5, %v1825_v41, %v1834_v43  ;;  %v1140_v43 = vadd.f32 %v3890_v16, %v4024_v4  ;;  %v1617_v16 = vadd.f32 %v4046_v23, %v4205_v35 }
 0x8df   : > { %v4227_v48 = vadd.high.f32.bf16 %v4224_v47, %v2993_v40 }
 0x8e1   : > { %v1877_v49 = vpack.c.bf16 %v4227_v48, %v4220_v0 }
 0x8e3   : > { %1944 = vrot.lane.b32.xlu1 %v1877_v49, %s3349_s13  ;;  %v1141_v49 = vadd.f32 %v3893_v17, %v4031_v10 }
 0x8e7   : > { %1610 = vrot.lane.b32.xlu1 %v1595_v50, %s3351_s18  ;;  %v2611_v50 = vpack.c.bf16 %v1140_v43, %v1140_v43 }
 0x945   : > { %v1599_v51 = vpop.permute.xlu1 %1598 }
 0x946   : > { %2558 = vst.msk [vmem:[%s3790_s29 + $0x10] sm:$0xff] %vm708_vm2, %v1599_v51  ;;  %v1616_v51 = vadd.f32 %v4041_v19, %v4198_v27 }
 0x947   : > { %v1601_v52 = vpop.permute.xlu0 %1600 }
 0x948   : > { %2559 = vst.msk [vmem:[%s3790_s29 + $0x18] sm:$0xff] %vm708_vm2, %v1601_v52  ;;  %v2612_v52 = vpack.c.bf16 %v1141_v49, %v1141_v49  ;;  %v2613_v4 = vpack.c.bf16 %v1616_v51, %v1616_v51 }
 0x94b   : > { %v1609_v53 = vpop.permute.xlu0 %1608 }
 0x94c   : > { %2560 = vst.msk [vmem:[%s3792_s3 + $0x10] sm:$0xff] %vm708_vm2, %v1609_v53  ;;  %v2614_v53 = vpack.c.bf16 %v1617_v16, %v1617_v16 }
 0x94d   : > { %v2577_v54 = vld [vmem:[%s3790_s29 + $0x10] sm:$0xff] }
 0x94f   : > { %v4245_v55 = vld [vmem:[%s3790_s29 + $0x18] sm:$0xff] }
 0x950   : > { %v1882_v56 = vpack.c.bf16 %v4245_v55, %v2577_v54 }
 0x952   : > { %2741 = vmatmul.mubr.msk.bf16.vlgmr.msra.gmra.mrb[20].mxu0 %vm708_vm2, %v1882_v56 }
 0x953   : > { %v2579_v12 = vld [vmem:[%s3792_s3 + $0x10] sm:$0xff] }
 0x955   : > { %v1945_v44 = vpop.permute.xlu1 %1944 }
 0x956   : > { %2749 = vmatmul.mubr.msk.bf16.vlgmr.msra.gmra.mrb[20].mxu1 %vm708_vm2, %v1945_v44 }
 0x959   : > { %v1611_v57 = vpop.permute.xlu1 %1610 }
 0x95a   : > { %2561 = vst.msk [vmem:[%s3792_s3 + $0x18] sm:$0xff] %vm708_vm2, %v1611_v57 }
 0x961   : > { %v2580_v13 = vld [vmem:[%s3792_s3 + $0x18] sm:$0xff] }
 0xa25   : > { %v1936_v58 = vpop.f32.mrb[20].mxu0 }
 0xa26   : > { %v2742_v59 = vpop.f32.mrb[21].mxu0 }
 0xa27   : > { %v1939_v60 = vpop.f32.mrb[22].mxu0 }
 0xa28   : > { %v2743_v33 = vpop.f32.mrb[23].mxu0 }
 0xa29   : > { %v1995_v61 = vpop.f32.mrb[20].mxu1 }
 0xa2a   : > { %v1996_v7 = vadd.f32 %v1995_v61, %v1936_v58  ;;  %v2750_v62 = vpop.f32.mrb[21].mxu1 }
 0xa2b   : > { %v1998_v28 = vpop.f32.mrb[22].mxu1 }
 0xa2c   : > { %v2002_v1 = vadd.f32 %v3939_v37, %v1996_v7  ;;  %v1999_v2 = vadd.f32 %v1998_v28, %v1939_v60  ;;  %v2751_v3 = vpop.f32.mrb[23].mxu1 }
 0xa2e   : > { %3106 = vtanh.f32 %v2002_v1  ;;  %v2003_v31 = vadd.f32 %v3939_v37, %v1999_v2  ;;  %v2587_v14 = vmul.f32 -1.442695, %v2002_v1 }
 0xa30   : > { %3108 = vtanh.f32 %v2003_v31  ;;  %v2588_v15 = vmul.f32 -1.442695, %v2003_v31 }
 0xa31   : > { %3110 = vpow2.f32 %v2587_v14 }
 0xa32   : > { %3112 = vpow2.f32 %v2588_v15 }
 0xa38   : > { %v3107_v6 = vpop.eup %3106 }
 0xa39   : > { %2030 = vrot.lane.b32.xlu0 %v3107_v6, %s3350_s5 }
 0xa3a   : > { %v3109_v8 = vpop.eup %3108 }
 0xa3b   : > { %2032 = vrot.lane.b32.xlu1 %v3109_v8, %s3350_s5  ;;  %v3111_v18 = vpop.eup %3110 }
 0xa3c   : > { %v3113_v21 = vpop.eup %3112  ;;  %v2010_v37 = vadd.f32 1.0, %v3111_v18 }
 0xa3d   : > { %2020 = vrot.lane.b32.xlu0 %v2579_v12, %s3349_s13  ;;  %v2011_v45 = vadd.f32 1.0, %v3113_v21 }
 0xa3e   : > { %3114 = vrcp.f32 %v2010_v37 }
 0xa3f   : > { %2022 = vrot.lane.b32.xlu1 %v2580_v13, %s3349_s13  ;;  %3116 = vrcp.f32 %v2011_v45 }
 0xa48   : > { %v3115_v20 = vpop.eup %3114 }
 0xa49   : > { %v3117_v24 = vpop.eup %3116 }
 0xaab   : > { %v2031_v63 = vpop.permute.xlu0 %2030 }
 0xaac   : > { %v2036_v22 = vmul.f32 %v3115_v20, %v2031_v63 }
 0xaad   : > { %v2033_v25 = vpop.permute.xlu1 %2032 }
 0xaae   : > { %2040 = vrot.lane.b32.xlu0 %v2036_v22, %s3349_s13  ;;  %v2037_v26 = vmul.f32 %v3117_v24, %v2033_v25 }
 0xaaf   : > { %v2021_v46 = vpop.permute.xlu0 %2020 }
 0xab0   : > { %2042 = vrot.lane.b32.xlu1 %v2037_v26, %s3349_s13  ;;  %v2026_v29 = vmul.f32 %v3115_v20, %v2021_v46 }
 0xab1   : > { %v2023_v32 = vpop.permute.xlu1 %2022 }
 0xab2   : > { %v2027_v36 = vmul.f32 %v3117_v24, %v2023_v32 }
 0xb20   : > { %v2041_v34 = vpop.permute.xlu0 %2040 }
 0xb21   : > { %v2046_v9 = vadd.f32 %v2041_v34, %v2026_v29 }
 0xb22   : > { %v2043_v38 = vpop.permute.xlu1 %2042 }
 0xb23   : > { %3118 = vtanh.f32 %v2046_v9  ;;  %v2047_v39 = vadd.f32 %v2043_v38, %v2027_v36  ;;  %v2070_v17 = vsel %vm1828_vm5, %v2046_v9, %v2021_v46 }
 0xb25   : > { %3120 = vtanh.f32 %v2047_v39  ;;  %v2071_v10 = vsel %vm1828_vm5, %v2047_v39, %v2023_v32 }
 0xb2d   : > { %v3119_v40 = vpop.eup %3118 }
 0xb2e   : > { %2052 = vrot.lane.b32.xlu0 %v3119_v40, %s3350_s5 }
 0xb2f   : > { %v3121_v41 = vpop.eup %3120 }
 0xb30   : > { %2054 = vrot.lane.b32.xlu1 %v3121_v41, %s3350_s5 }
 0xb32   : > { %2062 = vrot.lane.b32.xlu0 %v2577_v54, %s3351_s18 }
 0xb34   : > { %2064 = vrot.lane.b32.xlu1 %v4245_v55, %s3351_s18 }
 0xb36   : > { %1148 = vrot.lane.b32.xlu0 %v2611_v50, %s3349_s13 }
 0xb38   : > { %1150 = vrot.lane.b32.xlu1 %v2612_v52, %s3349_s13 }
 0xb3a   : > { %1624 = vrot.lane.b32.xlu0 %v2613_v4, %s3349_s13 }
 0xb3c   : > { %1626 = vrot.lane.b32.xlu1 %v2614_v53, %s3349_s13 }
 0xb3e   : > { %1843 = vrot.lane.b32.xlu0 %v4217_v42, %s3349_s13 }
 0xb40   : > { %1845 = vrot.lane.b32.xlu1 %v4224_v47, %s3349_s13 }
 0xb42   : > { %1853 = vrot.lane.b32.xlu0 %v4170_v5, %s3351_s18 }
 0xb44   : > { %1855 = vrot.lane.b32.xlu1 %v4175_v11, %s3351_s18 }
 0xb46   : > { %2084 = vrot.lane.b32.xlu0 %v2070_v17, %s3351_s18 }
 0xb48   : > { %2086 = vrot.lane.b32.xlu1 %v2071_v10, %s3351_s18  ;;  %s4335_s18 = scalar_lea.sflag [#allocation14], %s542_s11 }
 0xba0   : > { %v2053_v19 = vpop.permute.xlu0 %2052 }
 0xba1   : > { %v2058_v23 = vmul.f32 %v3115_v20, %v2053_v19 }
 0xba2   : > { %v2055_v27 = vpop.permute.xlu1 %2054 }
 0xba3   : > { %v2059_v11 = vmul.f32 %v3117_v24, %v2055_v27 }
 0xba4   : > { %v2063_v35 = vpop.permute.xlu0 %2062 }
 0xba5   : > { %v2068_v5 = vsel %vm1828_vm5, %v2058_v23, %v2063_v35 }
 0xba6   : > { %2074 = vrot.lane.b32.xlu0 %v2068_v5, %s3349_s13  ;;  %v2092_v42 = vadd.f32 %v4220_v0, %v2068_v5  ;;  %v2065_v47 = vpop.permute.xlu1 %2064 }
 0xba7   : > { %v2069_v56 = vsel %vm1828_vm5, %v2059_v11, %v2065_v47 }
 0xba8   : > { %v2615_v54 = vpack.c.bf16 %v2092_v42, %v2092_v42  ;;  %v1149_v55 = vpop.permute.xlu0 %1148  ;;  %2076 = vrot.lane.b32.xlu1 %v2069_v56, %s3349_s13  ;;  %v2093_v44 = vadd.f32 %v4227_v48, %v2069_v56 }
 0xba9   : > { %1155 = vst.msk [vmem:[%s3788_s21] sm:$0xf] %vm1154_vm6, %v1149_v55 }
 0xbaa   : > { %2100 = vrot.lane.b32.xlu0 %v2615_v54, %s3349_s13  ;;  %v2616_v0 = vpack.c.bf16 %v2093_v44, %v2093_v44  ;;  %v1151_v57 = vpop.permute.xlu1 %1150 }
 0xbab   : > { %1156 = vst.msk [vmem:[%s3788_s21 + $0x4] sm:$0xf] %vm1154_vm6, %v1151_v57 }
 0xbac   : > { %v1625_v58 = vpop.permute.xlu0 %1624  ;;  %2102 = vrot.lane.b32.xlu1 %v2616_v0, %s3349_s13  ;;  %s2110_s13 = scalar_lea.sflag [#allocation4], %s544_s6 }
 0xbad   : > { %2564 = vst.msk [vmem:[%s3788_s21 + $0x8] sm:$0xf] %vm1154_vm6, %v1625_v58 }
 0xbae   : > { %v1627_v30 = vpop.permute.xlu1 %1626 }
 0xbaf   : > { %2565 = vst.msk [vmem:[%s3788_s21 + $0xc] sm:$0xf] %vm1154_vm6, %v1627_v30 }
 0xbb0   : > { %v1844_v48 = vpop.permute.xlu0 %1843 }
 0xbb1   : > { %1849 = vst.msk [vmem:[%s3790_s29] sm:$0xff] %vm708_vm2, %v1844_v48 }
 0xbb2   : > { %v1846_v59 = vpop.permute.xlu1 %1845 }
 0xbb3   : > { %1850 = vst.msk [vmem:[%s3790_s29 + $0x8] sm:$0xff] %vm708_vm2, %v1846_v59 }
 0xbb4   : > { %v1854_v60 = vpop.permute.xlu0 %1853 }
 0xbb5   : > { %1859 = vst.msk [vmem:[%s3792_s3] sm:$0xff] %vm708_vm2, %v1854_v60 }
 0xbb6   : > { %v1856_v33 = vpop.permute.xlu1 %1855 }
 0xbb7   : > { %1860 = vst.msk [vmem:[%s3792_s3 + $0x8] sm:$0xff] %vm708_vm2, %v1856_v33 }
 0xbb8   : > { %v2085_v61 = vpop.permute.xlu0 %2084 }
 0xbb9   : > { %2591 = vst.msk [vmem:[%s3792_s3 + $0x10] sm:$0xff] %vm708_vm2, %v2085_v61 }
 0xbba   : > { %v2087_v7 = vpop.permute.xlu1 %2086 }
 0xbbb   : > { %2592 = vst.msk [vmem:[%s3792_s3 + $0x18] sm:$0xff] %vm708_vm2, %v2087_v7 }
 0xc18   : > { %v2075_v62 = vpop.permute.xlu0 %2074 }
 0xc19   : > { %2589 = vst.msk [vmem:[%s3790_s29 + $0x10] sm:$0xff] %vm708_vm2, %v2075_v62 }
 0xc1a   : > { %v2077_v28 = vpop.permute.xlu1 %2076 }
 0xc1b   : > { %2590 = vst.msk [vmem:[%s3790_s29 + $0x18] sm:$0xff] %vm708_vm2, %v2077_v28 }
 0xc1c   : > { %v2101_v1 = vpop.permute.xlu0 %2100 }
 0xc1d   : > { %2595 = vst.msk [vmem:[%s3788_s21 + $0x10] sm:$0xf] %vm1154_vm6, %v2101_v1 }
 0xc1e   : > { %v2103_v2 = vpop.permute.xlu1 %2102 }
 0xc1f   : > { %2596 = vst.msk [vmem:[%s3788_s21 + $0x14] sm:$0xf] %vm1154_vm6, %v2103_v2 }
 0xc20   : > { %s4532_s23 = sld [smem:[#allocation41_spill]]  ;;  %s4533_s16 = sld [smem:[#allocation48_spill]] }
 0xc21   : > { %s2617_s24 = smul.u32 12, %s4525_s10  ;;  %s2152_s15 = sshll.u32 %s3788_s21, 4  ;;  %s2153_s15 = int_to_ptr.vmem [resolvable:$true] %s2152_s15 }
 0xc22   : > { %s3352_s6 = smov 128   ;;  %s4535_s20 = sld [smem:[#allocation56_spill]] }
 0xc23   : > { %s3353_s5 = smov 256   ;;  %s3354_s0 = smov 2  }
 0xc24   : > { %s3355_s10 = smov 64   ;;  %s3356_s21 = smov 4  }
 0xc26   : > { %s2599_s14 = sshll.u32 %s4532_s23, 1  ;;  %p4534_p2 = scmp.ne.s32.totalorder %s4533_s16, 0 }
 0xc27   : > { %s2133_s30 = sadd.s32 %s2617_s24, %s2599_s14  ;;  %s3357_s14 = smov [#allocation22]  }
 0xc28   : > { %s2601_s17 = sshll.u32 %s2133_s30, 6  ;;  %2793 = sst [smem:[#allocation23]] (%p4534_p2), %s3352_s6 }
 0xc29   : > { %s2135_s12 = scalar_lea.hbm %s4535_s20, %s2601_s17  ;;  %2794 = sst [smem:[#allocation23 + $0x1]] (%p4534_p2), %s3353_s5 }
 0xc2a   : > { %2795 = sst [smem:[#allocation23 + $0x2]] (%p4534_p2), %s3354_s0  ;;  %s3358_s24 = smov 0  }
 0xc2b   : > { %2796 = sst [smem:[#allocation23 + $0x3]] (%p4534_p2), %s3355_s10 }
 0xc2c   : > { %2797 = sst [smem:[#allocation23 + $0x4]] (%p4534_p2), %s3355_s10 }
 0xc2d   : > { %2798 = sst [smem:[#allocation23 + $0x5]] (%p4534_p2), %s3356_s21 }
 0xc2e   : > { %2799 = dma.general (%p4534_p2), %s2153_s15, 384, %s2135_s12, %s2110_s13, %s3357_s14, [#allocation23], %s3358_s24, 0  }
 0xc2f   : > { %s4536_s30 = sld [smem:[#allocation49_spill]]  ;;  %s2618_s0 = sshll.u32 %s4532_s23, 8 }
 0xc30   : > { %s2197_s17 = sshll.u32 %s3790_s29, 4  ;;  %s4537_s11 = sld [smem:[#allocation57_spill]]  ;;  %s2198_s17 = int_to_ptr.vmem [resolvable:$true] %s2197_s17 }
 0xc31   : > { %s3359_s5 = smov 256   ;;  %s3360_s13 = smov 512  }
 0xc32   : > { %s3361_s16 = smov 2   ;;  %s3362_s15 = smov 128  }
 0xc33   : > { %s3363_s29 = smov 8   ;;  %s3364_s23 = smov [#allocation24]  }
 0xc34   : > { %s3365_s12 = smov 0  }
 0xc35   : > { %p4538_p10 = scmp.ne.s32.totalorder %s4536_s30, 0 }
 0xc36   : > { %s2180_s20 = scalar_lea.hbm %s4537_s11, %s2618_s0 }
 0xc37   : > { %2800 = sst [smem:[#allocation25]] (%p4538_p10), %s3359_s5 }
 0xc38   : > { %2801 = sst [smem:[#allocation25 + $0x1]] (%p4538_p10), %s3360_s13 }
 0xc39   : > { %2802 = sst [smem:[#allocation25 + $0x2]] (%p4538_p10), %s3361_s16 }
 0xc3a   : > { %2803 = sst [smem:[#allocation25 + $0x3]] (%p4538_p10), %s3362_s15 }
 0xc3b   : > { %2804 = sst [smem:[#allocation25 + $0x4]] (%p4538_p10), %s3362_s15 }
 0xc3c   : > { %2805 = sst [smem:[#allocation25 + $0x5]] (%p4538_p10), %s3363_s29 }
 0xc3d   : > { %2806 = dma.general (%p4538_p10), %s2198_s17, 512, %s2180_s20, %s4335_s18, %s3364_s23, [#allocation25], %s3365_s12, 0  }
 0xc3e   : > { %s4539_s14 = sld [smem:[#allocation58_spill]]  ;;  %s2242_s6 = sshll.u32 %s3792_s3, 4  ;;  %s2243_s6 = int_to_ptr.vmem [resolvable:$true] %s2242_s6 }
 0xc3f   : > { %s3366_s28 = smov 256   ;;  %s3367_s11 = smov 512  }
 0xc40   : > { %2807 = sst [smem:[#allocation27]] (%p4538_p10), %s3366_s28  ;;  %s3368_s17 = smov 2  }
 0xc41   : > { %2808 = sst [smem:[#allocation27 + $0x1]] (%p4538_p10), %s3367_s11  ;;  %s3369_s20 = smov 128  }
 0xc42   : > { %2809 = sst [smem:[#allocation27 + $0x2]] (%p4538_p10), %s3368_s17  ;;  %s3370_s5 = smov 8  }
 0xc43   : > { %2810 = sst [smem:[#allocation27 + $0x3]] (%p4538_p10), %s3369_s20  ;;  %s3372_s3 = smov 0  }
 0xc44   : > { %s2225_s24 = scalar_lea.hbm %s4539_s14, %s2618_s0  ;;  %2811 = sst [smem:[#allocation27 + $0x4]] (%p4538_p10), %s3369_s20 }
 0xc45   : > { %2812 = sst [smem:[#allocation27 + $0x5]] (%p4538_p10), %s3370_s5  ;;  %s3371_s0 = smov [#allocation26]  }
 0xc46   : > { %2813 = dma.general (%p4538_p10), %s2243_s6, 512, %s2225_s24, %s4335_s18, %s3371_s0, [#allocation27], %s3372_s3, 0  }
 0xc47 PF: > { %s4540_s13 = sld [smem:[#allocation38_spill]]  ;;  %s4541_s16 = sld [smem:[#allocation50_spill]] }
 0xc48   : > { %p2843_p1 = scmp.ge.s32.totalorder %s3322_s27, 2 }
 0xc4d   : > { %s2270_s15 = sand.u32 1, %s4540_s13   ;;  %p4542_p3 = scmp.ne.s32.totalorder %s4541_s16, 0 }
 0xc4e   : > { %s2271_s29 = scalar_lea.sflag [#allocation4], %s2270_s15 }
 0xc4f   : > { %p2828_p11 = pnand %p2843_p1, %p4542_p3 }
 0xc51   : > { %3273 = dma.done.wait (!%p2828_p11), %s2271_s29, 384  }
 0xc52   : > { %3275 = vsyncadd (!%p2828_p11), %s2271_s29, 4294966912  ;;  %s4543_s23 = sadd.s32 4294967294, %s3322_s27   ;;  %s4544_s12 = sld [smem:[#allocation51_spill]] }
 0xc53   : > { %s2279_s10 = sand.u32 1, %s4543_s23  }
 0xc54   : > { %s2280_s21 = scalar_lea.sflag [#allocation14], %s2279_s10 }
 0xc58   : > { %p4545_p12 = scmp.ne.s32.totalorder %s4544_s12, 0 }
 0xc5a   : > { %p2831_p7 = pnand %p2843_p1, %p4545_p12 }
 0xc5c   : > { %3277 = dma.done.wait (!%p2831_p7), %s2280_s21, 1024  }
 0xc5d   : > { %3279 = vsyncadd (!%p2831_p7), %s2280_s21, 4294966272  ;;  %s33_s27 = sadd.s32 1, %s3322_s27   ;;  %s4546_s17 = sld [smem:[#allocation37_spill]] }
 0xc5e   : > { %p30_p4 = scmp.ge.s32.totalorder %s33_s27, 8   ;;  %s4547_s30 = sld [smem:[#allocation45_spill]] }
 0xc5f   : > { %s4548_s20 = sld [smem:[#allocation39_spill]]  ;;  %s4549_s14 = sld [smem:[#allocation46_spill]] }
 0xc60   : > { %s4550_s6 = sld [smem:[#allocation42_spill]]  ;;  %s4551_s28 = sld [smem:[#allocation43_spill]] }
 0xc61   : > { %s4552_s18 = smov %s3290_s19  ;;  %s4554_s21 = smov %s3302_s22 }
 0xc62   : > { %s4556_s23 = smov %s3314_s25  ;;  %s4557_s24 = smov %s3318_s26 }
 0xc63   :  { %32 = sbr.rel (!%p30_p4) target bundleno = 21 (0x15), region = 207 }
 0xc64   : > { %s4553_s19 = smov %s4547_s30 }
 0xc65   : > { %s4555_s22 = smov %s4549_s14 }
 0xc66   : > { %s4558_s25 = smov %s4550_s6  ;;  %s4559_s26 = smov %s4551_s28 }
 0xc6a   :  { %2294 = vsyncpa [#allocation3], 1 }
 0xc6b   :  { %2296 = vsyncpa [#allocation3 + $0x1], 1 }
 0xc6c   :  { %2297 = vsyncpa [#allocation6], 1 }
 0xc6d   :  { %2298 = vsyncpa [#allocation9], 1 }
 0xc6e   :  { %2299 = vsyncpa [#allocation4], 1 }
 0xc6f   :  { %2301 = vsyncpa [#allocation4 + $0x1], 1 }
 0xc70   :  { %2302 = vsyncpa [#allocation14], 1 }
 0xc71   :  { %2304 = vsyncpa [#allocation14 + $0x1], 1 }

</bundles_post_ra>
